<compile_context>
chip_gen: v7x
topology: tpu7x:2x2x1
jax: 0.10.0
libtpu: 0.0.40
codegen_flags: <defaults>
</compile_context>

<pallas_src>
import functools

import jax
import jax.numpy as jnp
import numpy as np
from jax.experimental import pallas as pl
from jax.experimental.pallas import tpu as pltpu


def _ceil_div(a, b):
    return -(-a // b)


def _fwd_attention_kernel(params_ref, x_ref, m_ref, wx_ref, wm_ref,
                          conv_out_ref, mask_upd_ref, conv_f_ref, mask_act_ref,
                          *, kh, kw, stride, th, ow):
    """One (sample, C_out tile, row tile): in-VMEM im2col + per-tap dots + gating.

    params_ref: (5,) f32 SMEM  [a, mu, sigma1, sigma2, alpha]  (already clamped)
    x_ref:      (s, s, C_in,  H', W')  space-to-depth'd padded features (VMEM, resident per sample)
    m_ref:      (s, s, C_mask, H', W') space-to-depth'd padded masks
    wx_ref:     (kh*kw, TC, C_in)      conv weights for this C_out tile
    wm_ref:     (kh*kw, TC, C_mask)    mask-conv weights for this C_out tile
    outputs:    (TC, th*ow) each       [convOut, maskUpdate, convFeatures, maskActiv]
    """
    tc = conv_f_ref.shape[0]
    tm = th * ow
    t = pl.program_id(2)
    row0 = pl.multiple_of(t * th, th)

    acc_x = jnp.zeros((tc, tm), jnp.float32)
    acc_m = jnp.zeros((tc, tm), jnp.float32)

    # kh*kw static taps; the conv stride was folded away by the wrapper's
    # space-to-depth, so every tap is a unit-stride (C, th, ow) window of the
    # VMEM-resident image (no HBM im2col, no strided lane loads).
    for ki in range(kh):
        ai, bi = ki // stride, ki % stride
        for kj in range(kw):
            aj, bj = kj // stride, kj % stride
            tap = ki * kw + kj
            px = x_ref[bi, bj, :, pl.ds(row0 + ai, th), aj:aj + ow]
            pm = m_ref[bi, bj, :, pl.ds(row0 + ai, th), aj:aj + ow]
            px2 = px.reshape(px.shape[0], tm)
            pm2 = pm.reshape(pm.shape[0], tm)
            # Two separate dots sharing the patch window (no block-diagonal waste);
            # f32 accumulate regardless of the input compute dtype.
            acc_x = acc_x + jnp.dot(wx_ref[tap], px2,
                                    preferred_element_type=jnp.float32)
            acc_m = acc_m + jnp.dot(wm_ref[tap], pm2,
                                    preferred_element_type=jnp.float32)

    a = params_ref[0]
    mu = params_ref[1]
    s1 = params_ref[2]
    s2 = params_ref[3]
    alpha = params_ref[4]

    conv_f = acc_x
    mask_f = acc_m

    # GaussActivation: a*exp(-s1*(x-mu)^2) if x < mu else 1 + (a-1)*exp(-s2*(x-mu)^2).
    # One EUP exp via a sigma select (exact for any sigma1, sigma2).
    d2 = (mask_f - mu) * (mask_f - mu)
    is_left = mask_f < mu
    e = jnp.exp(-jnp.where(is_left, s1, s2) * d2)
    mask_act = jnp.where(is_left, a * e, 1.0 + (a - 1.0) * e)

    conv_out = conv_f * mask_act

    # MaskUpdate: relu(x) ** alpha.  Clamp inside log so the dead where-branch
    # stays finite (pow(0, alpha) == 0, no -inf * 0 NaNs).
    relu_m = jnp.maximum(mask_f, 0.0)
    mask_upd = jnp.where(relu_m > 0.0,
                         jnp.exp(alpha * jnp.log(jnp.maximum(relu_m, 1e-30))),
                         0.0)

    conv_out_ref[...] = conv_out.astype(conv_out_ref.dtype)
    mask_upd_ref[...] = mask_upd.astype(mask_upd_ref.dtype)
    conv_f_ref[...] = conv_f.astype(conv_f_ref.dtype)
    mask_act_ref[...] = mask_act.astype(mask_act_ref.dtype)


def _space_to_depth(x, padding, stride):
    """(N, C, H, W) -> (N, s, s, C, H', W') with
    xr[n, bi, bj, c, hh, ww] == x_padded[n, c, hh*s + bi, ww*s + bj].
    Folds the conv stride away so every kernel tap is a unit-stride window."""
    n, c, h, w = x.shape
    s = stride
    hp = _ceil_div(h + 2 * padding, s)
    wp = _ceil_div(w + 2 * padding, s)
    xpad = jnp.pad(x, ((0, 0), (0, 0),
                       (padding, hp * s - h - padding),
                       (padding, wp * s - w - padding)))
    xr = xpad.reshape(n, c, hp, s, wp, s).transpose(0, 3, 5, 1, 2, 4)
    return xr, hp, wp


def _pick_row_tile(oh, ow, target_tm):
    """Largest divisor th of OH with th*OW a 128-lane multiple and <= target_tm;
    fall back to th == OH (block last dim == full array dim, always layout-legal)."""
    best = None
    for d in range(1, oh + 1):
        if oh % d:
            continue
        tm = d * ow
        if tm <= target_tm and tm % 128 == 0:
            best = d
    return best if best is not None else oh


def _pick_cout_tile(c_out):
    """Bound per-step weight/output VMEM for big layers (v7x 64 MiB)."""
    if c_out <= 256:
        return c_out
    for tc in (256, 128, 64):
        if c_out % tc == 0:
            return tc
    return c_out


def _vmem_capacity_bytes():
    try:
        return int(pltpu.get_tpu_info().vmem_capacity_bytes)
    except Exception:
        return 64 * 1024 * 1024  # conservative (v7x-sized) fallback


@functools.partial(jax.jit,
                   static_argnames=("stride", "padding", "target_tm",
                                    "bf16_matmul", "out_dtype"))
def forward_attention_layer(input_features, input_masks, w_conv, w_mask,
                            gauss_mask_params=None, *, stride, padding,
                            target_tm=2048, bf16_matmul=False,
                            out_dtype=jnp.float32):
    """Pallas implementation of ForwardAttentionLayer.forward.

    input_features:    (N, C_in, H, W)        float32, NCHW
    input_masks:       (N, C_mask, H, W)      float32, NCHW
    w_conv:            (C_out, C_in, kh, kw)  float32 (PyTorch Conv2d weight layout)
    w_mask:            (C_out, C_mask, kh, kw)
    gauss_mask_params: (5,) [a, mu, sigma1, sigma2, alpha] (learnable scalars)
    Returns (convOut, maskUpdate, convFeatures, maskActiv), each (N, C_out, OH, OW).
    """
    n, c_in, h, w = input_features.shape
    c_mask = input_masks.shape[1]
    c_out, _, kh, kw = w_conv.shape
    s = stride

    oh = (h + 2 * padding - kh) // s + 1
    ow = (w + 2 * padding - kw) // s + 1
    assert oh > 0 and ow > 0

    # Learnable GaussActivation / MaskUpdate parameters as runtime SMEM scalars,
    # clamped exactly like GaussActivation.forward.
    if gauss_mask_params is None:
        gauss_mask_params = jnp.array([1.1, 2.0, 1.0, 1.0, 0.8], jnp.float32)
    p = gauss_mask_params.astype(jnp.float32)
    params = jnp.stack([jnp.clip(p[0], 1.01, 6.0),
                        jnp.clip(p[1], 0.1, 3.0),
                        jnp.clip(p[2], 0.5, 2.0),
                        jnp.clip(p[3], 0.5, 2.0),
                        p[4]])

    cdt = jnp.bfloat16 if bf16_matmul else jnp.float32

    # The only wrapper-side HBM passes: pad + space-to-depth of the two inputs.
    x_r, hp, wp = _space_to_depth(input_features, padding, s)
    m_r, _, _ = _space_to_depth(input_masks, padding, s)
    x_r = x_r.astype(cdt)
    m_r = m_r.astype(cdt)

    # Weights as (kh*kw, C_out, C_in): w?[ki*kw+kj, o, c] == torch_weight[o, c, ki, kj].
    wx = jnp.transpose(w_conv, (2, 3, 0, 1)).reshape(kh * kw, c_out, c_in).astype(cdt)
    wm = jnp.transpose(w_mask, (2, 3, 0, 1)).reshape(kh * kw, c_out, c_mask).astype(cdt)

    th = _pick_row_tile(oh, ow, target_tm)
    tm = th * ow
    tc = _pick_cout_tile(c_out)
    grid = (n, c_out // tc, oh // th)  # row tiles innermost -> inputs stay resident

    # VMEM budget from an explicit footprint estimate, capped per generation.
    in_bytes = 2 if bf16_matmul else 4
    out_bytes = jnp.dtype(out_dtype).itemsize
    x_blk = s * s * c_in * hp * wp * in_bytes
    m_blk = s * s * c_mask * hp * wp * in_bytes
    w_blk = kh * kw * tc * (c_in + c_mask) * in_bytes
    o_blk = tc * tm * out_bytes
    est = (2 * (x_blk + m_blk)              # double-buffered resident images
           + 2 * w_blk                      # weights (see TODO on Buffered(1))
           + 2 * 4 * o_blk                  # 4 outputs, double-buffered
           + 16 * tc * tm * 4               # accumulators + elementwise temporaries
           + 4 * (c_in + c_mask) * tm * 4)  # per-tap slice/reshape temporaries
    cap = _vmem_capacity_bytes()
    vmem_limit = int(min(max(2 * est, 32 * 1024 * 1024), 0.75 * cap))
    # TODO(synk): if `est` ever exceeds ~0.75*cap (very large images), band the H'
    # axis with a manual double-buffered DMA (pl.ANY + make_async_copy) instead of
    # keeping the whole per-sample image resident.

    kernel = functools.partial(_fwd_attention_kernel,
                               kh=kh, kw=kw, stride=s, th=th, ow=ow)

    out_struct = jax.ShapeDtypeStruct((n, c_out, oh * ow), out_dtype)
    out_block = pl.BlockSpec((None, tc, tm), lambda n_, c_, t_: (n_, c_, t_))

    outs = pl.pallas_call(
        kernel,
        out_shape=(out_struct,) * 4,
        grid_spec=pl.GridSpec(
            grid=grid,
            in_specs=[
                # Learnable scalars -> SMEM.
                pl.BlockSpec(memory_space=pltpu.MemorySpace.SMEM),
                # Per-sample s2d images: constant block index across (c, t) ->
                # fetched once per sample, resident across all inner steps.
                pl.BlockSpec((None, s, s, c_in, hp, wp),
                             lambda n_, c_, t_: (n_, 0, 0, 0, 0, 0)),
                pl.BlockSpec((None, s, s, c_mask, hp, wp),
                             lambda n_, c_, t_: (n_, 0, 0, 0, 0, 0)),
                # Per-C_out-tile weights (refetched only when the C_out tile changes).
                pl.BlockSpec((kh * kw, tc, c_in),
                             lambda n_, c_, t_: (0, c_, 0)),
                pl.BlockSpec((kh * kw, tc, c_mask),
                             lambda n_, c_, t_: (0, c_, 0)),
            ],
            out_specs=[out_block] * 4,
        ),
        compiler_params=pltpu.CompilerParams(
            dimension_semantics=("parallel", "parallel", "parallel"),
            vmem_limit_bytes=vmem_limit),
    )(params, x_r, m_r, wx, wm)

    conv_out, mask_upd, conv_f, mask_act = outs

    # Channels-first flat-spatial output -> NCHW is a free reshape (no transpose passes).
    def to_nchw(y):
        return y.reshape(n, c_out, oh, ow)

    return (to_nchw(conv_out), to_nchw(mask_upd), to_nchw(conv_f), to_nchw(mask_act))


def _reference(input_features, input_masks, w_conv, w_mask, stride, padding, params):
    """Plain-JAX reference (lax conv + jnp elementwise) for correctness check."""
    pr = np.asarray(params, dtype=np.float64)
    a = float(np.clip(pr[0], 1.01, 6.0))
    mu = float(np.clip(pr[1], 0.1, 3.0))
    s1 = float(np.clip(pr[2], 0.5, 2.0))
    s2 = float(np.clip(pr[3], 0.5, 2.0))
    alpha = float(pr[4])

    dn = jax.lax.conv_dimension_numbers(
        input_features.shape, w_conv.shape, ("NCHW", "OIHW", "NCHW"))
    conv_f = jax.lax.conv_general_dilated(
        input_features, w_conv, (stride, stride),
        [(padding, padding), (padding, padding)], dimension_numbers=dn)
    dn2 = jax.lax.conv_dimension_numbers(
        input_masks.shape, w_mask.shape, ("NCHW", "OIHW", "NCHW"))
    mask_f = jax.lax.conv_general_dilated(
        input_masks, w_mask, (stride, stride),
        [(padding, padding), (padding, padding)], dimension_numbers=dn2)

    d2 = (mask_f - mu) ** 2
    left = a * jnp.exp(-s1 * d2)
    right = 1.0 + (a - 1.0) * jnp.exp(-s2 * d2)
    mask_act = jnp.where(mask_f < mu, left, right)
    conv_out = conv_f * mask_act
    mask_upd = jnp.power(jnp.maximum(mask_f, 0.0), alpha)
    return conv_out, mask_upd, conv_f, mask_act


if __name__ == "__main__":
    # Typical LBAM encoder attention layer at small demo shapes:
    # inputChannels=4 (so maskConv takes 3 channels per the module), outputChannels=64,
    # kernelSize=4, stride=2, padding=1.
    N, C_IN, H, W = 2, 4, 16, 16
    C_MASK = 3
    C_OUT, K, STRIDE, PAD = 64, 4, 2, 1

    key = jax.random.PRNGKey(0)
    k1, k2, k3, k4 = jax.random.split(key, 4)

    # LBAM weights_init: conv weights ~ N(0, 0.02).
    w_conv = 0.02 * jax.random.normal(k1, (C_OUT, C_IN, K, K), jnp.float32)
    w_mask = 0.02 * jax.random.normal(k2, (C_OUT, C_MASK, K, K), jnp.float32)

    input_features = jax.random.normal(k3, (N, C_IN, H, W), jnp.float32)
    # Masks in [0, 1], like binary/soft inpainting masks.
    input_masks = jax.random.uniform(k4, (N, C_MASK, H, W), jnp.float32)

    # Module __init__ values: GaussActivation(1.1, 2.0, 1.0, 1.0), MaskUpdate(0.8).
    gauss_mask_params = jnp.array([1.1, 2.0, 1.0, 1.0, 0.8], jnp.float32)

    outs = forward_attention_layer(
        input_features, input_masks, w_conv, w_mask, gauss_mask_params,
        stride=STRIDE, padding=PAD)
    outs = jax.block_until_ready(outs)

    refs = _reference(input_features, input_masks, w_conv, w_mask, STRIDE, PAD,
                      gauss_mask_params)
    for got, want in zip(outs, refs):
        np.testing.assert_allclose(np.asarray(got), np.asarray(want),
                                   rtol=1e-5, atol=2e-5)

    print("KERNEL_OK")
</pallas_src>

<mosaic_0001>
module attributes {stable_mosaic.version = 11 : i64} {
  func.func @_fwd_attention_kernel(%arg0: i32, %arg1: i32, %arg2: i32, %arg3: memref<5xf32, #tpu.memory_space<smem>>, %arg4: memref<1x2x2x4x9x9xf32, #tpu.memory_space<vmem>>, %arg5: memref<1x2x2x3x9x9xf32, #tpu.memory_space<vmem>>, %arg6: memref<16x64x4xf32, #tpu.memory_space<vmem>>, %arg7: memref<16x64x3xf32, #tpu.memory_space<vmem>>, %arg8: memref<1x64x64xf32, #tpu.memory_space<vmem>>, %arg9: memref<1x64x64xf32, #tpu.memory_space<vmem>>, %arg10: memref<1x64x64xf32, #tpu.memory_space<vmem>>, %arg11: memref<1x64x64xf32, #tpu.memory_space<vmem>>) attributes {dimension_semantics = [#tpu.dimension_semantics<parallel>, #tpu.dimension_semantics<parallel>, #tpu.dimension_semantics<parallel>], iteration_bounds = array<i64: 2, 1, 1>, scalar_prefetch = 0 : i64, scratch_operands = 0 : i64, tpu.core_type = #tpu.core_type<tc>, window_params = [{transform_indices = @transform_0, window_bounds = array<i64: 5>}, {transform_indices = @transform_1, window_bounds = array<i64: 1, 2, 2, 4, 9, 9>}, {transform_indices = @transform_2, window_bounds = array<i64: 1, 2, 2, 3, 9, 9>}, {transform_indices = @transform_3, window_bounds = array<i64: 16, 64, 4>}, {transform_indices = @transform_4, window_bounds = array<i64: 16, 64, 3>}, {transform_indices = @transform_5, window_bounds = array<i64: 1, 64, 64>}, {transform_indices = @transform_6, window_bounds = array<i64: 1, 64, 64>}, {transform_indices = @transform_7, window_bounds = array<i64: 1, 64, 64>}, {transform_indices = @transform_8, window_bounds = array<i64: 1, 64, 64>}]} {
    %c8_i32 = arith.constant 8 : i32
    %0 = arith.muli %arg2, %c8_i32 : i32
    %1 = tpu.assume_multiple %0, 8 : i32
    %cst = arith.constant 0.000000e+00 : f32
    %2 = vector.broadcast %cst : f32 to vector<64x64xf32>
    %cst_0 = arith.constant 0.000000e+00 : f32
    %3 = vector.broadcast %cst_0 : f32 to vector<64x64xf32>
    %c0_i32 = arith.constant 0 : i32
    %4 = arith.addi %1, %c0_i32 : i32
    %c0 = arith.constant 0 : index
    %c0_1 = arith.constant 0 : index
    %c0_2 = arith.constant 0 : index
    %c0_3 = arith.constant 0 : index
    %5 = arith.index_cast %4 : i32 to index
    %c0_4 = arith.constant 0 : index
    %6 = vector.load %arg4[%c0, %c0_1, %c0_2, %c0_3, %5, %c0_4] : memref<1x2x2x4x9x9xf32, #tpu.memory_space<vmem>>, vector<1x1x1x4x8x8xf32>
    %7 = vector.shape_cast %6 : vector<1x1x1x4x8x8xf32> to vector<4x8x8xf32>
    %c0_i32_5 = arith.constant 0 : i32
    %8 = arith.addi %1, %c0_i32_5 : i32
    %c0_6 = arith.constant 0 : index
    %c0_7 = arith.constant 0 : index
    %c0_8 = arith.constant 0 : index
    %c0_9 = arith.constant 0 : index
    %9 = arith.index_cast %8 : i32 to index
    %c0_10 = arith.constant 0 : index
    %10 = vector.load %arg5[%c0_6, %c0_7, %c0_8, %c0_9, %9, %c0_10] : memref<1x2x2x3x9x9xf32, #tpu.memory_space<vmem>>, vector<1x1x1x3x8x8xf32>
    %11 = vector.shape_cast %10 : vector<1x1x1x3x8x8xf32> to vector<3x8x8xf32>
    %12 = vector.shape_cast %7 : vector<4x8x8xf32> to vector<4x64xf32>
    %13 = vector.shape_cast %11 : vector<3x8x8xf32> to vector<3x64xf32>
    %c0_11 = arith.constant 0 : index
    %c0_12 = arith.constant 0 : index
    %c0_13 = arith.constant 0 : index
    %14 = vector.load %arg6[%c0_11, %c0_12, %c0_13] : memref<16x64x4xf32, #tpu.memory_space<vmem>>, vector<1x64x4xf32>
    %15 = vector.shape_cast %14 : vector<1x64x4xf32> to vector<64x4xf32>
    %cst_14 = arith.constant dense<0.000000e+00> : vector<64x64xf32>
    %16 = tpu.matmul %15, %12, %cst_14 {dimension_numbers = #tpu.dot_dimension_numbers<[1], [0], [0], [1], [0, 0, 1, 1], [], []>} : vector<64x4xf32>, vector<4x64xf32>, vector<64x64xf32> -> vector<64x64xf32>
    %17 = arith.addf %2, %16 : vector<64x64xf32>
    %c0_15 = arith.constant 0 : index
    %c0_16 = arith.constant 0 : index
    %c0_17 = arith.constant 0 : index
    %18 = vector.load %arg7[%c0_15, %c0_16, %c0_17] : memref<16x64x3xf32, #tpu.memory_space<vmem>>, vector<1x64x3xf32>
    %19 = vector.shape_cast %18 : vector<1x64x3xf32> to vector<64x3xf32>
    %cst_18 = arith.constant dense<0.000000e+00> : vector<64x64xf32>
    %20 = tpu.matmul %19, %13, %cst_18 {dimension_numbers = #tpu.dot_dimension_numbers<[1], [0], [0], [1], [0, 0, 1, 1], [], []>} : vector<64x3xf32>, vector<3x64xf32>, vector<64x64xf32> -> vector<64x64xf32>
    %21 = arith.addf %3, %20 : vector<64x64xf32>
    %c0_i32_19 = arith.constant 0 : i32
    %22 = arith.addi %1, %c0_i32_19 : i32
    %c0_20 = arith.constant 0 : index
    %c0_21 = arith.constant 0 : index
    %c1 = arith.constant 1 : index
    %c0_22 = arith.constant 0 : index
    %23 = arith.index_cast %22 : i32 to index
    %c0_23 = arith.constant 0 : index
    %24 = vector.load %arg4[%c0_20, %c0_21, %c1, %c0_22, %23, %c0_23] : memref<1x2x2x4x9x9xf32, #tpu.memory_space<vmem>>, vector<1x1x1x4x8x8xf32>
    %25 = vector.shape_cast %24 : vector<1x1x1x4x8x8xf32> to vector<4x8x8xf32>
    %c0_i32_24 = arith.constant 0 : i32
    %26 = arith.addi %1, %c0_i32_24 : i32
    %c0_25 = arith.constant 0 : index
    %c0_26 = arith.constant 0 : index
    %c1_27 = arith.constant 1 : index
    %c0_28 = arith.constant 0 : index
    %27 = arith.index_cast %26 : i32 to index
    %c0_29 = arith.constant 0 : index
    %28 = vector.load %arg5[%c0_25, %c0_26, %c1_27, %c0_28, %27, %c0_29] : memref<1x2x2x3x9x9xf32, #tpu.memory_space<vmem>>, vector<1x1x1x3x8x8xf32>
    %29 = vector.shape_cast %28 : vector<1x1x1x3x8x8xf32> to vector<3x8x8xf32>
    %30 = vector.shape_cast %25 : vector<4x8x8xf32> to vector<4x64xf32>
    %31 = vector.shape_cast %29 : vector<3x8x8xf32> to vector<3x64xf32>
    %c1_30 = arith.constant 1 : index
    %c0_31 = arith.constant 0 : index
    %c0_32 = arith.constant 0 : index
    %32 = vector.load %arg6[%c1_30, %c0_31, %c0_32] : memref<16x64x4xf32, #tpu.memory_space<vmem>>, vector<1x64x4xf32>
    %33 = vector.shape_cast %32 : vector<1x64x4xf32> to vector<64x4xf32>
    %cst_33 = arith.constant dense<0.000000e+00> : vector<64x64xf32>
    %34 = tpu.matmul %33, %30, %cst_33 {dimension_numbers = #tpu.dot_dimension_numbers<[1], [0], [0], [1], [0, 0, 1, 1], [], []>} : vector<64x4xf32>, vector<4x64xf32>, vector<64x64xf32> -> vector<64x64xf32>
    %35 = arith.addf %17, %34 : vector<64x64xf32>
    %c1_34 = arith.constant 1 : index
    %c0_35 = arith.constant 0 : index
    %c0_36 = arith.constant 0 : index
    %36 = vector.load %arg7[%c1_34, %c0_35, %c0_36] : memref<16x64x3xf32, #tpu.memory_space<vmem>>, vector<1x64x3xf32>
    %37 = vector.shape_cast %36 : vector<1x64x3xf32> to vector<64x3xf32>
    %cst_37 = arith.constant dense<0.000000e+00> : vector<64x64xf32>
    %38 = tpu.matmul %37, %31, %cst_37 {dimension_numbers = #tpu.dot_dimension_numbers<[1], [0], [0], [1], [0, 0, 1, 1], [], []>} : vector<64x3xf32>, vector<3x64xf32>, vector<64x64xf32> -> vector<64x64xf32>
    %39 = arith.addf %21, %38 : vector<64x64xf32>
    %c0_i32_38 = arith.constant 0 : i32
    %40 = arith.addi %1, %c0_i32_38 : i32
    %c0_39 = arith.constant 0 : index
    %c0_40 = arith.constant 0 : index
    %c0_41 = arith.constant 0 : index
    %c0_42 = arith.constant 0 : index
    %41 = arith.index_cast %40 : i32 to index
    %c1_43 = arith.constant 1 : index
    %42 = vector.load %arg4[%c0_39, %c0_40, %c0_41, %c0_42, %41, %c1_43] : memref<1x2x2x4x9x9xf32, #tpu.memory_space<vmem>>, vector<1x1x1x4x8x8xf32>
    %43 = vector.shape_cast %42 : vector<1x1x1x4x8x8xf32> to vector<4x8x8xf32>
    %c0_i32_44 = arith.constant 0 : i32
    %44 = arith.addi %1, %c0_i32_44 : i32
    %c0_45 = arith.constant 0 : index
    %c0_46 = arith.constant 0 : index
    %c0_47 = arith.constant 0 : index
    %c0_48 = arith.constant 0 : index
    %45 = arith.index_cast %44 : i32 to index
    %c1_49 = arith.constant 1 : index
    %46 = vector.load %arg5[%c0_45, %c0_46, %c0_47, %c0_48, %45, %c1_49] : memref<1x2x2x3x9x9xf32, #tpu.memory_space<vmem>>, vector<1x1x1x3x8x8xf32>
    %47 = vector.shape_cast %46 : vector<1x1x1x3x8x8xf32> to vector<3x8x8xf32>
    %48 = vector.shape_cast %43 : vector<4x8x8xf32> to vector<4x64xf32>
    %49 = vector.shape_cast %47 : vector<3x8x8xf32> to vector<3x64xf32>
    %c2 = arith.constant 2 : index
    %c0_50 = arith.constant 0 : index
    %c0_51 = arith.constant 0 : index
    %50 = vector.load %arg6[%c2, %c0_50, %c0_51] : memref<16x64x4xf32, #tpu.memory_space<vmem>>, vector<1x64x4xf32>
    %51 = vector.shape_cast %50 : vector<1x64x4xf32> to vector<64x4xf32>
    %cst_52 = arith.constant dense<0.000000e+00> : vector<64x64xf32>
    %52 = tpu.matmul %51, %48, %cst_52 {dimension_numbers = #tpu.dot_dimension_numbers<[1], [0], [0], [1], [0, 0, 1, 1], [], []>} : vector<64x4xf32>, vector<4x64xf32>, vector<64x64xf32> -> vector<64x64xf32>
    %53 = arith.addf %35, %52 : vector<64x64xf32>
    %c2_53 = arith.constant 2 : index
    %c0_54 = arith.constant 0 : index
    %c0_55 = arith.constant 0 : index
    %54 = vector.load %arg7[%c2_53, %c0_54, %c0_55] : memref<16x64x3xf32, #tpu.memory_space<vmem>>, vector<1x64x3xf32>
    %55 = vector.shape_cast %54 : vector<1x64x3xf32> to vector<64x3xf32>
    %cst_56 = arith.constant dense<0.000000e+00> : vector<64x64xf32>
    %56 = tpu.matmul %55, %49, %cst_56 {dimension_numbers = #tpu.dot_dimension_numbers<[1], [0], [0], [1], [0, 0, 1, 1], [], []>} : vector<64x3xf32>, vector<3x64xf32>, vector<64x64xf32> -> vector<64x64xf32>
    %57 = arith.addf %39, %56 : vector<64x64xf32>
    %c0_i32_57 = arith.constant 0 : i32
    %58 = arith.addi %1, %c0_i32_57 : i32
    %c0_58 = arith.constant 0 : index
    %c0_59 = arith.constant 0 : index
    %c1_60 = arith.constant 1 : index
    %c0_61 = arith.constant 0 : index
    %59 = arith.index_cast %58 : i32 to index
    %c1_62 = arith.constant 1 : index
    %60 = vector.load %arg4[%c0_58, %c0_59, %c1_60, %c0_61, %59, %c1_62] : memref<1x2x2x4x9x9xf32, #tpu.memory_space<vmem>>, vector<1x1x1x4x8x8xf32>
    %61 = vector.shape_cast %60 : vector<1x1x1x4x8x8xf32> to vector<4x8x8xf32>
    %c0_i32_63 = arith.constant 0 : i32
    %62 = arith.addi %1, %c0_i32_63 : i32
    %c0_64 = arith.constant 0 : index
    %c0_65 = arith.constant 0 : index
    %c1_66 = arith.constant 1 : index
    %c0_67 = arith.constant 0 : index
    %63 = arith.index_cast %62 : i32 to index
    %c1_68 = arith.constant 1 : index
    %64 = vector.load %arg5[%c0_64, %c0_65, %c1_66, %c0_67, %63, %c1_68] : memref<1x2x2x3x9x9xf32, #tpu.memory_space<vmem>>, vector<1x1x1x3x8x8xf32>
    %65 = vector.shape_cast %64 : vector<1x1x1x3x8x8xf32> to vector<3x8x8xf32>
    %66 = vector.shape_cast %61 : vector<4x8x8xf32> to vector<4x64xf32>
    %67 = vector.shape_cast %65 : vector<3x8x8xf32> to vector<3x64xf32>
    %c3 = arith.constant 3 : index
    %c0_69 = arith.constant 0 : index
    %c0_70 = arith.constant 0 : index
    %68 = vector.load %arg6[%c3, %c0_69, %c0_70] : memref<16x64x4xf32, #tpu.memory_space<vmem>>, vector<1x64x4xf32>
    %69 = vector.shape_cast %68 : vector<1x64x4xf32> to vector<64x4xf32>
    %cst_71 = arith.constant dense<0.000000e+00> : vector<64x64xf32>
    %70 = tpu.matmul %69, %66, %cst_71 {dimension_numbers = #tpu.dot_dimension_numbers<[1], [0], [0], [1], [0, 0, 1, 1], [], []>} : vector<64x4xf32>, vector<4x64xf32>, vector<64x64xf32> -> vector<64x64xf32>
    %71 = arith.addf %53, %70 : vector<64x64xf32>
    %c3_72 = arith.constant 3 : index
    %c0_73 = arith.constant 0 : index
    %c0_74 = arith.constant 0 : index
    %72 = vector.load %arg7[%c3_72, %c0_73, %c0_74] : memref<16x64x3xf32, #tpu.memory_space<vmem>>, vector<1x64x3xf32>
    %73 = vector.shape_cast %72 : vector<1x64x3xf32> to vector<64x3xf32>
    %cst_75 = arith.constant dense<0.000000e+00> : vector<64x64xf32>
    %74 = tpu.matmul %73, %67, %cst_75 {dimension_numbers = #tpu.dot_dimension_numbers<[1], [0], [0], [1], [0, 0, 1, 1], [], []>} : vector<64x3xf32>, vector<3x64xf32>, vector<64x64xf32> -> vector<64x64xf32>
    %75 = arith.addf %57, %74 : vector<64x64xf32>
    %c0_i32_76 = arith.constant 0 : i32
    %76 = arith.addi %1, %c0_i32_76 : i32
    %c0_77 = arith.constant 0 : index
    %c1_78 = arith.constant 1 : index
    %c0_79 = arith.constant 0 : index
    %c0_80 = arith.constant 0 : index
    %77 = arith.index_cast %76 : i32 to index
    %c0_81 = arith.constant 0 : index
    %78 = vector.load %arg4[%c0_77, %c1_78, %c0_79, %c0_80, %77, %c0_81] : memref<1x2x2x4x9x9xf32, #tpu.memory_space<vmem>>, vector<1x1x1x4x8x8xf32>
    %79 = vector.shape_cast %78 : vector<1x1x1x4x8x8xf32> to vector<4x8x8xf32>
    %c0_i32_82 = arith.constant 0 : i32
    %80 = arith.addi %1, %c0_i32_82 : i32
    %c0_83 = arith.constant 0 : index
    %c1_84 = arith.constant 1 : index
    %c0_85 = arith.constant 0 : index
    %c0_86 = arith.constant 0 : index
    %81 = arith.index_cast %80 : i32 to index
    %c0_87 = arith.constant 0 : index
    %82 = vector.load %arg5[%c0_83, %c1_84, %c0_85, %c0_86, %81, %c0_87] : memref<1x2x2x3x9x9xf32, #tpu.memory_space<vmem>>, vector<1x1x1x3x8x8xf32>
    %83 = vector.shape_cast %82 : vector<1x1x1x3x8x8xf32> to vector<3x8x8xf32>
    %84 = vector.shape_cast %79 : vector<4x8x8xf32> to vector<4x64xf32>
    %85 = vector.shape_cast %83 : vector<3x8x8xf32> to vector<3x64xf32>
    %c4 = arith.constant 4 : index
    %c0_88 = arith.constant 0 : index
    %c0_89 = arith.constant 0 : index
    %86 = vector.load %arg6[%c4, %c0_88, %c0_89] : memref<16x64x4xf32, #tpu.memory_space<vmem>>, vector<1x64x4xf32>
    %87 = vector.shape_cast %86 : vector<1x64x4xf32> to vector<64x4xf32>
    %cst_90 = arith.constant dense<0.000000e+00> : vector<64x64xf32>
    %88 = tpu.matmul %87, %84, %cst_90 {dimension_numbers = #tpu.dot_dimension_numbers<[1], [0], [0], [1], [0, 0, 1, 1], [], []>} : vector<64x4xf32>, vector<4x64xf32>, vector<64x64xf32> -> vector<64x64xf32>
    %89 = arith.addf %71, %88 : vector<64x64xf32>
    %c4_91 = arith.constant 4 : index
    %c0_92 = arith.constant 0 : index
    %c0_93 = arith.constant 0 : index
    %90 = vector.load %arg7[%c4_91, %c0_92, %c0_93] : memref<16x64x3xf32, #tpu.memory_space<vmem>>, vector<1x64x3xf32>
    %91 = vector.shape_cast %90 : vector<1x64x3xf32> to vector<64x3xf32>
    %cst_94 = arith.constant dense<0.000000e+00> : vector<64x64xf32>
    %92 = tpu.matmul %91, %85, %cst_94 {dimension_numbers = #tpu.dot_dimension_numbers<[1], [0], [0], [1], [0, 0, 1, 1], [], []>} : vector<64x3xf32>, vector<3x64xf32>, vector<64x64xf32> -> vector<64x64xf32>
    %93 = arith.addf %75, %92 : vector<64x64xf32>
    %c0_i32_95 = arith.constant 0 : i32
    %94 = arith.addi %1, %c0_i32_95 : i32
    %c0_96 = arith.constant 0 : index
    %c1_97 = arith.constant 1 : index
    %c1_98 = arith.constant 1 : index
    %c0_99 = arith.constant 0 : index
    %95 = arith.index_cast %94 : i32 to index
    %c0_100 = arith.constant 0 : index
    %96 = vector.load %arg4[%c0_96, %c1_97, %c1_98, %c0_99, %95, %c0_100] : memref<1x2x2x4x9x9xf32, #tpu.memory_space<vmem>>, vector<1x1x1x4x8x8xf32>
    %97 = vector.shape_cast %96 : vector<1x1x1x4x8x8xf32> to vector<4x8x8xf32>
    %c0_i32_101 = arith.constant 0 : i32
    %98 = arith.addi %1, %c0_i32_101 : i32
    %c0_102 = arith.constant 0 : index
    %c1_103 = arith.constant 1 : index
    %c1_104 = arith.constant 1 : index
    %c0_105 = arith.constant 0 : index
    %99 = arith.index_cast %98 : i32 to index
    %c0_106 = arith.constant 0 : index
    %100 = vector.load %arg5[%c0_102, %c1_103, %c1_104, %c0_105, %99, %c0_106] : memref<1x2x2x3x9x9xf32, #tpu.memory_space<vmem>>, vector<1x1x1x3x8x8xf32>
    %101 = vector.shape_cast %100 : vector<1x1x1x3x8x8xf32> to vector<3x8x8xf32>
    %102 = vector.shape_cast %97 : vector<4x8x8xf32> to vector<4x64xf32>
    %103 = vector.shape_cast %101 : vector<3x8x8xf32> to vector<3x64xf32>
    %c5 = arith.constant 5 : index
    %c0_107 = arith.constant 0 : index
    %c0_108 = arith.constant 0 : index
    %104 = vector.load %arg6[%c5, %c0_107, %c0_108] : memref<16x64x4xf32, #tpu.memory_space<vmem>>, vector<1x64x4xf32>
    %105 = vector.shape_cast %104 : vector<1x64x4xf32> to vector<64x4xf32>
    %cst_109 = arith.constant dense<0.000000e+00> : vector<64x64xf32>
    %106 = tpu.matmul %105, %102, %cst_109 {dimension_numbers = #tpu.dot_dimension_numbers<[1], [0], [0], [1], [0, 0, 1, 1], [], []>} : vector<64x4xf32>, vector<4x64xf32>, vector<64x64xf32> -> vector<64x64xf32>
    %107 = arith.addf %89, %106 : vector<64x64xf32>
    %c5_110 = arith.constant 5 : index
    %c0_111 = arith.constant 0 : index
    %c0_112 = arith.constant 0 : index
    %108 = vector.load %arg7[%c5_110, %c0_111, %c0_112] : memref<16x64x3xf32, #tpu.memory_space<vmem>>, vector<1x64x3xf32>
    %109 = vector.shape_cast %108 : vector<1x64x3xf32> to vector<64x3xf32>
    %cst_113 = arith.constant dense<0.000000e+00> : vector<64x64xf32>
    %110 = tpu.matmul %109, %103, %cst_113 {dimension_numbers = #tpu.dot_dimension_numbers<[1], [0], [0], [1], [0, 0, 1, 1], [], []>} : vector<64x3xf32>, vector<3x64xf32>, vector<64x64xf32> -> vector<64x64xf32>
    %111 = arith.addf %93, %110 : vector<64x64xf32>
    %c0_i32_114 = arith.constant 0 : i32
    %112 = arith.addi %1, %c0_i32_114 : i32
    %c0_115 = arith.constant 0 : index
    %c1_116 = arith.constant 1 : index
    %c0_117 = arith.constant 0 : index
    %c0_118 = arith.constant 0 : index
    %113 = arith.index_cast %112 : i32 to index
    %c1_119 = arith.constant 1 : index
    %114 = vector.load %arg4[%c0_115, %c1_116, %c0_117, %c0_118, %113, %c1_119] : memref<1x2x2x4x9x9xf32, #tpu.memory_space<vmem>>, vector<1x1x1x4x8x8xf32>
    %115 = vector.shape_cast %114 : vector<1x1x1x4x8x8xf32> to vector<4x8x8xf32>
    %c0_i32_120 = arith.constant 0 : i32
    %116 = arith.addi %1, %c0_i32_120 : i32
    %c0_121 = arith.constant 0 : index
    %c1_122 = arith.constant 1 : index
    %c0_123 = arith.constant 0 : index
    %c0_124 = arith.constant 0 : index
    %117 = arith.index_cast %116 : i32 to index
    %c1_125 = arith.constant 1 : index
    %118 = vector.load %arg5[%c0_121, %c1_122, %c0_123, %c0_124, %117, %c1_125] : memref<1x2x2x3x9x9xf32, #tpu.memory_space<vmem>>, vector<1x1x1x3x8x8xf32>
    %119 = vector.shape_cast %118 : vector<1x1x1x3x8x8xf32> to vector<3x8x8xf32>
    %120 = vector.shape_cast %115 : vector<4x8x8xf32> to vector<4x64xf32>
    %121 = vector.shape_cast %119 : vector<3x8x8xf32> to vector<3x64xf32>
    %c6 = arith.constant 6 : index
    %c0_126 = arith.constant 0 : index
    %c0_127 = arith.constant 0 : index
    %122 = vector.load %arg6[%c6, %c0_126, %c0_127] : memref<16x64x4xf32, #tpu.memory_space<vmem>>, vector<1x64x4xf32>
    %123 = vector.shape_cast %122 : vector<1x64x4xf32> to vector<64x4xf32>
    %cst_128 = arith.constant dense<0.000000e+00> : vector<64x64xf32>
    %124 = tpu.matmul %123, %120, %cst_128 {dimension_numbers = #tpu.dot_dimension_numbers<[1], [0], [0], [1], [0, 0, 1, 1], [], []>} : vector<64x4xf32>, vector<4x64xf32>, vector<64x64xf32> -> vector<64x64xf32>
    %125 = arith.addf %107, %124 : vector<64x64xf32>
    %c6_129 = arith.constant 6 : index
    %c0_130 = arith.constant 0 : index
    %c0_131 = arith.constant 0 : index
    %126 = vector.load %arg7[%c6_129, %c0_130, %c0_131] : memref<16x64x3xf32, #tpu.memory_space<vmem>>, vector<1x64x3xf32>
    %127 = vector.shape_cast %126 : vector<1x64x3xf32> to vector<64x3xf32>
    %cst_132 = arith.constant dense<0.000000e+00> : vector<64x64xf32>
    %128 = tpu.matmul %127, %121, %cst_132 {dimension_numbers = #tpu.dot_dimension_numbers<[1], [0], [0], [1], [0, 0, 1, 1], [], []>} : vector<64x3xf32>, vector<3x64xf32>, vector<64x64xf32> -> vector<64x64xf32>
    %129 = arith.addf %111, %128 : vector<64x64xf32>
    %c0_i32_133 = arith.constant 0 : i32
    %130 = arith.addi %1, %c0_i32_133 : i32
    %c0_134 = arith.constant 0 : index
    %c1_135 = arith.constant 1 : index
    %c1_136 = arith.constant 1 : index
    %c0_137 = arith.constant 0 : index
    %131 = arith.index_cast %130 : i32 to index
    %c1_138 = arith.constant 1 : index
    %132 = vector.load %arg4[%c0_134, %c1_135, %c1_136, %c0_137, %131, %c1_138] : memref<1x2x2x4x9x9xf32, #tpu.memory_space<vmem>>, vector<1x1x1x4x8x8xf32>
    %133 = vector.shape_cast %132 : vector<1x1x1x4x8x8xf32> to vector<4x8x8xf32>
    %c0_i32_139 = arith.constant 0 : i32
    %134 = arith.addi %1, %c0_i32_139 : i32
    %c0_140 = arith.constant 0 : index
    %c1_141 = arith.constant 1 : index
    %c1_142 = arith.constant 1 : index
    %c0_143 = arith.constant 0 : index
    %135 = arith.index_cast %134 : i32 to index
    %c1_144 = arith.constant 1 : index
    %136 = vector.load %arg5[%c0_140, %c1_141, %c1_142, %c0_143, %135, %c1_144] : memref<1x2x2x3x9x9xf32, #tpu.memory_space<vmem>>, vector<1x1x1x3x8x8xf32>
    %137 = vector.shape_cast %136 : vector<1x1x1x3x8x8xf32> to vector<3x8x8xf32>
    %138 = vector.shape_cast %133 : vector<4x8x8xf32> to vector<4x64xf32>
    %139 = vector.shape_cast %137 : vector<3x8x8xf32> to vector<3x64xf32>
    %c7 = arith.constant 7 : index
    %c0_145 = arith.constant 0 : index
    %c0_146 = arith.constant 0 : index
    %140 = vector.load %arg6[%c7, %c0_145, %c0_146] : memref<16x64x4xf32, #tpu.memory_space<vmem>>, vector<1x64x4xf32>
    %141 = vector.shape_cast %140 : vector<1x64x4xf32> to vector<64x4xf32>
    %cst_147 = arith.constant dense<0.000000e+00> : vector<64x64xf32>
    %142 = tpu.matmul %141, %138, %cst_147 {dimension_numbers = #tpu.dot_dimension_numbers<[1], [0], [0], [1], [0, 0, 1, 1], [], []>} : vector<64x4xf32>, vector<4x64xf32>, vector<64x64xf32> -> vector<64x64xf32>
    %143 = arith.addf %125, %142 : vector<64x64xf32>
    %c7_148 = arith.constant 7 : index
    %c0_149 = arith.constant 0 : index
    %c0_150 = arith.constant 0 : index
    %144 = vector.load %arg7[%c7_148, %c0_149, %c0_150] : memref<16x64x3xf32, #tpu.memory_space<vmem>>, vector<1x64x3xf32>
    %145 = vector.shape_cast %144 : vector<1x64x3xf32> to vector<64x3xf32>
    %cst_151 = arith.constant dense<0.000000e+00> : vector<64x64xf32>
    %146 = tpu.matmul %145, %139, %cst_151 {dimension_numbers = #tpu.dot_dimension_numbers<[1], [0], [0], [1], [0, 0, 1, 1], [], []>} : vector<64x3xf32>, vector<3x64xf32>, vector<64x64xf32> -> vector<64x64xf32>
    %147 = arith.addf %129, %146 : vector<64x64xf32>
    %c1_i32 = arith.constant 1 : i32
    %148 = arith.addi %1, %c1_i32 : i32
    %c0_152 = arith.constant 0 : index
    %c0_153 = arith.constant 0 : index
    %c0_154 = arith.constant 0 : index
    %c0_155 = arith.constant 0 : index
    %149 = arith.index_cast %148 : i32 to index
    %c0_156 = arith.constant 0 : index
    %150 = vector.load %arg4[%c0_152, %c0_153, %c0_154, %c0_155, %149, %c0_156] : memref<1x2x2x4x9x9xf32, #tpu.memory_space<vmem>>, vector<1x1x1x4x8x8xf32>
    %151 = vector.shape_cast %150 : vector<1x1x1x4x8x8xf32> to vector<4x8x8xf32>
    %c1_i32_157 = arith.constant 1 : i32
    %152 = arith.addi %1, %c1_i32_157 : i32
    %c0_158 = arith.constant 0 : index
    %c0_159 = arith.constant 0 : index
    %c0_160 = arith.constant 0 : index
    %c0_161 = arith.constant 0 : index
    %153 = arith.index_cast %152 : i32 to index
    %c0_162 = arith.constant 0 : index
    %154 = vector.load %arg5[%c0_158, %c0_159, %c0_160, %c0_161, %153, %c0_162] : memref<1x2x2x3x9x9xf32, #tpu.memory_space<vmem>>, vector<1x1x1x3x8x8xf32>
    %155 = vector.shape_cast %154 : vector<1x1x1x3x8x8xf32> to vector<3x8x8xf32>
    %156 = vector.shape_cast %151 : vector<4x8x8xf32> to vector<4x64xf32>
    %157 = vector.shape_cast %155 : vector<3x8x8xf32> to vector<3x64xf32>
    %c8 = arith.constant 8 : index
    %c0_163 = arith.constant 0 : index
    %c0_164 = arith.constant 0 : index
    %158 = vector.load %arg6[%c8, %c0_163, %c0_164] : memref<16x64x4xf32, #tpu.memory_space<vmem>>, vector<1x64x4xf32>
    %159 = vector.shape_cast %158 : vector<1x64x4xf32> to vector<64x4xf32>
    %cst_165 = arith.constant dense<0.000000e+00> : vector<64x64xf32>
    %160 = tpu.matmul %159, %156, %cst_165 {dimension_numbers = #tpu.dot_dimension_numbers<[1], [0], [0], [1], [0, 0, 1, 1], [], []>} : vector<64x4xf32>, vector<4x64xf32>, vector<64x64xf32> -> vector<64x64xf32>
    %161 = arith.addf %143, %160 : vector<64x64xf32>
    %c8_166 = arith.constant 8 : index
    %c0_167 = arith.constant 0 : index
    %c0_168 = arith.constant 0 : index
    %162 = vector.load %arg7[%c8_166, %c0_167, %c0_168] : memref<16x64x3xf32, #tpu.memory_space<vmem>>, vector<1x64x3xf32>
    %163 = vector.shape_cast %162 : vector<1x64x3xf32> to vector<64x3xf32>
    %cst_169 = arith.constant dense<0.000000e+00> : vector<64x64xf32>
    %164 = tpu.matmul %163, %157, %cst_169 {dimension_numbers = #tpu.dot_dimension_numbers<[1], [0], [0], [1], [0, 0, 1, 1], [], []>} : vector<64x3xf32>, vector<3x64xf32>, vector<64x64xf32> -> vector<64x64xf32>
    %165 = arith.addf %147, %164 : vector<64x64xf32>
    %c1_i32_170 = arith.constant 1 : i32
    %166 = arith.addi %1, %c1_i32_170 : i32
    %c0_171 = arith.constant 0 : index
    %c0_172 = arith.constant 0 : index
    %c1_173 = arith.constant 1 : index
    %c0_174 = arith.constant 0 : index
    %167 = arith.index_cast %166 : i32 to index
    %c0_175 = arith.constant 0 : index
    %168 = vector.load %arg4[%c0_171, %c0_172, %c1_173, %c0_174, %167, %c0_175] : memref<1x2x2x4x9x9xf32, #tpu.memory_space<vmem>>, vector<1x1x1x4x8x8xf32>
    %169 = vector.shape_cast %168 : vector<1x1x1x4x8x8xf32> to vector<4x8x8xf32>
    %c1_i32_176 = arith.constant 1 : i32
    %170 = arith.addi %1, %c1_i32_176 : i32
    %c0_177 = arith.constant 0 : index
    %c0_178 = arith.constant 0 : index
    %c1_179 = arith.constant 1 : index
    %c0_180 = arith.constant 0 : index
    %171 = arith.index_cast %170 : i32 to index
    %c0_181 = arith.constant 0 : index
    %172 = vector.load %arg5[%c0_177, %c0_178, %c1_179, %c0_180, %171, %c0_181] : memref<1x2x2x3x9x9xf32, #tpu.memory_space<vmem>>, vector<1x1x1x3x8x8xf32>
    %173 = vector.shape_cast %172 : vector<1x1x1x3x8x8xf32> to vector<3x8x8xf32>
    %174 = vector.shape_cast %169 : vector<4x8x8xf32> to vector<4x64xf32>
    %175 = vector.shape_cast %173 : vector<3x8x8xf32> to vector<3x64xf32>
    %c9 = arith.constant 9 : index
    %c0_182 = arith.constant 0 : index
    %c0_183 = arith.constant 0 : index
    %176 = vector.load %arg6[%c9, %c0_182, %c0_183] : memref<16x64x4xf32, #tpu.memory_space<vmem>>, vector<1x64x4xf32>
    %177 = vector.shape_cast %176 : vector<1x64x4xf32> to vector<64x4xf32>
    %cst_184 = arith.constant dense<0.000000e+00> : vector<64x64xf32>
    %178 = tpu.matmul %177, %174, %cst_184 {dimension_numbers = #tpu.dot_dimension_numbers<[1], [0], [0], [1], [0, 0, 1, 1], [], []>} : vector<64x4xf32>, vector<4x64xf32>, vector<64x64xf32> -> vector<64x64xf32>
    %179 = arith.addf %161, %178 : vector<64x64xf32>
    %c9_185 = arith.constant 9 : index
    %c0_186 = arith.constant 0 : index
    %c0_187 = arith.constant 0 : index
    %180 = vector.load %arg7[%c9_185, %c0_186, %c0_187] : memref<16x64x3xf32, #tpu.memory_space<vmem>>, vector<1x64x3xf32>
    %181 = vector.shape_cast %180 : vector<1x64x3xf32> to vector<64x3xf32>
    %cst_188 = arith.constant dense<0.000000e+00> : vector<64x64xf32>
    %182 = tpu.matmul %181, %175, %cst_188 {dimension_numbers = #tpu.dot_dimension_numbers<[1], [0], [0], [1], [0, 0, 1, 1], [], []>} : vector<64x3xf32>, vector<3x64xf32>, vector<64x64xf32> -> vector<64x64xf32>
    %183 = arith.addf %165, %182 : vector<64x64xf32>
    %c1_i32_189 = arith.constant 1 : i32
    %184 = arith.addi %1, %c1_i32_189 : i32
    %c0_190 = arith.constant 0 : index
    %c0_191 = arith.constant 0 : index
    %c0_192 = arith.constant 0 : index
    %c0_193 = arith.constant 0 : index
    %185 = arith.index_cast %184 : i32 to index
    %c1_194 = arith.constant 1 : index
    %186 = vector.load %arg4[%c0_190, %c0_191, %c0_192, %c0_193, %185, %c1_194] : memref<1x2x2x4x9x9xf32, #tpu.memory_space<vmem>>, vector<1x1x1x4x8x8xf32>
    %187 = vector.shape_cast %186 : vector<1x1x1x4x8x8xf32> to vector<4x8x8xf32>
    %c1_i32_195 = arith.constant 1 : i32
    %188 = arith.addi %1, %c1_i32_195 : i32
    %c0_196 = arith.constant 0 : index
    %c0_197 = arith.constant 0 : index
    %c0_198 = arith.constant 0 : index
    %c0_199 = arith.constant 0 : index
    %189 = arith.index_cast %188 : i32 to index
    %c1_200 = arith.constant 1 : index
    %190 = vector.load %arg5[%c0_196, %c0_197, %c0_198, %c0_199, %189, %c1_200] : memref<1x2x2x3x9x9xf32, #tpu.memory_space<vmem>>, vector<1x1x1x3x8x8xf32>
    %191 = vector.shape_cast %190 : vector<1x1x1x3x8x8xf32> to vector<3x8x8xf32>
    %192 = vector.shape_cast %187 : vector<4x8x8xf32> to vector<4x64xf32>
    %193 = vector.shape_cast %191 : vector<3x8x8xf32> to vector<3x64xf32>
    %c10 = arith.constant 10 : index
    %c0_201 = arith.constant 0 : index
    %c0_202 = arith.constant 0 : index
    %194 = vector.load %arg6[%c10, %c0_201, %c0_202] : memref<16x64x4xf32, #tpu.memory_space<vmem>>, vector<1x64x4xf32>
    %195 = vector.shape_cast %194 : vector<1x64x4xf32> to vector<64x4xf32>
    %cst_203 = arith.constant dense<0.000000e+00> : vector<64x64xf32>
    %196 = tpu.matmul %195, %192, %cst_203 {dimension_numbers = #tpu.dot_dimension_numbers<[1], [0], [0], [1], [0, 0, 1, 1], [], []>} : vector<64x4xf32>, vector<4x64xf32>, vector<64x64xf32> -> vector<64x64xf32>
    %197 = arith.addf %179, %196 : vector<64x64xf32>
    %c10_204 = arith.constant 10 : index
    %c0_205 = arith.constant 0 : index
    %c0_206 = arith.constant 0 : index
    %198 = vector.load %arg7[%c10_204, %c0_205, %c0_206] : memref<16x64x3xf32, #tpu.memory_space<vmem>>, vector<1x64x3xf32>
    %199 = vector.shape_cast %198 : vector<1x64x3xf32> to vector<64x3xf32>
    %cst_207 = arith.constant dense<0.000000e+00> : vector<64x64xf32>
    %200 = tpu.matmul %199, %193, %cst_207 {dimension_numbers = #tpu.dot_dimension_numbers<[1], [0], [0], [1], [0, 0, 1, 1], [], []>} : vector<64x3xf32>, vector<3x64xf32>, vector<64x64xf32> -> vector<64x64xf32>
    %201 = arith.addf %183, %200 : vector<64x64xf32>
    %c1_i32_208 = arith.constant 1 : i32
    %202 = arith.addi %1, %c1_i32_208 : i32
    %c0_209 = arith.constant 0 : index
    %c0_210 = arith.constant 0 : index
    %c1_211 = arith.constant 1 : index
    %c0_212 = arith.constant 0 : index
    %203 = arith.index_cast %202 : i32 to index
    %c1_213 = arith.constant 1 : index
    %204 = vector.load %arg4[%c0_209, %c0_210, %c1_211, %c0_212, %203, %c1_213] : memref<1x2x2x4x9x9xf32, #tpu.memory_space<vmem>>, vector<1x1x1x4x8x8xf32>
    %205 = vector.shape_cast %204 : vector<1x1x1x4x8x8xf32> to vector<4x8x8xf32>
    %c1_i32_214 = arith.constant 1 : i32
    %206 = arith.addi %1, %c1_i32_214 : i32
    %c0_215 = arith.constant 0 : index
    %c0_216 = arith.constant 0 : index
    %c1_217 = arith.constant 1 : index
    %c0_218 = arith.constant 0 : index
    %207 = arith.index_cast %206 : i32 to index
    %c1_219 = arith.constant 1 : index
    %208 = vector.load %arg5[%c0_215, %c0_216, %c1_217, %c0_218, %207, %c1_219] : memref<1x2x2x3x9x9xf32, #tpu.memory_space<vmem>>, vector<1x1x1x3x8x8xf32>
    %209 = vector.shape_cast %208 : vector<1x1x1x3x8x8xf32> to vector<3x8x8xf32>
    %210 = vector.shape_cast %205 : vector<4x8x8xf32> to vector<4x64xf32>
    %211 = vector.shape_cast %209 : vector<3x8x8xf32> to vector<3x64xf32>
    %c11 = arith.constant 11 : index
    %c0_220 = arith.constant 0 : index
    %c0_221 = arith.constant 0 : index
    %212 = vector.load %arg6[%c11, %c0_220, %c0_221] : memref<16x64x4xf32, #tpu.memory_space<vmem>>, vector<1x64x4xf32>
    %213 = vector.shape_cast %212 : vector<1x64x4xf32> to vector<64x4xf32>
    %cst_222 = arith.constant dense<0.000000e+00> : vector<64x64xf32>
    %214 = tpu.matmul %213, %210, %cst_222 {dimension_numbers = #tpu.dot_dimension_numbers<[1], [0], [0], [1], [0, 0, 1, 1], [], []>} : vector<64x4xf32>, vector<4x64xf32>, vector<64x64xf32> -> vector<64x64xf32>
    %215 = arith.addf %197, %214 : vector<64x64xf32>
    %c11_223 = arith.constant 11 : index
    %c0_224 = arith.constant 0 : index
    %c0_225 = arith.constant 0 : index
    %216 = vector.load %arg7[%c11_223, %c0_224, %c0_225] : memref<16x64x3xf32, #tpu.memory_space<vmem>>, vector<1x64x3xf32>
    %217 = vector.shape_cast %216 : vector<1x64x3xf32> to vector<64x3xf32>
    %cst_226 = arith.constant dense<0.000000e+00> : vector<64x64xf32>
    %218 = tpu.matmul %217, %211, %cst_226 {dimension_numbers = #tpu.dot_dimension_numbers<[1], [0], [0], [1], [0, 0, 1, 1], [], []>} : vector<64x3xf32>, vector<3x64xf32>, vector<64x64xf32> -> vector<64x64xf32>
    %219 = arith.addf %201, %218 : vector<64x64xf32>
    %c1_i32_227 = arith.constant 1 : i32
    %220 = arith.addi %1, %c1_i32_227 : i32
    %c0_228 = arith.constant 0 : index
    %c1_229 = arith.constant 1 : index
    %c0_230 = arith.constant 0 : index
    %c0_231 = arith.constant 0 : index
    %221 = arith.index_cast %220 : i32 to index
    %c0_232 = arith.constant 0 : index
    %222 = vector.load %arg4[%c0_228, %c1_229, %c0_230, %c0_231, %221, %c0_232] : memref<1x2x2x4x9x9xf32, #tpu.memory_space<vmem>>, vector<1x1x1x4x8x8xf32>
    %223 = vector.shape_cast %222 : vector<1x1x1x4x8x8xf32> to vector<4x8x8xf32>
    %c1_i32_233 = arith.constant 1 : i32
    %224 = arith.addi %1, %c1_i32_233 : i32
    %c0_234 = arith.constant 0 : index
    %c1_235 = arith.constant 1 : index
    %c0_236 = arith.constant 0 : index
    %c0_237 = arith.constant 0 : index
    %225 = arith.index_cast %224 : i32 to index
    %c0_238 = arith.constant 0 : index
    %226 = vector.load %arg5[%c0_234, %c1_235, %c0_236, %c0_237, %225, %c0_238] : memref<1x2x2x3x9x9xf32, #tpu.memory_space<vmem>>, vector<1x1x1x3x8x8xf32>
    %227 = vector.shape_cast %226 : vector<1x1x1x3x8x8xf32> to vector<3x8x8xf32>
    %228 = vector.shape_cast %223 : vector<4x8x8xf32> to vector<4x64xf32>
    %229 = vector.shape_cast %227 : vector<3x8x8xf32> to vector<3x64xf32>
    %c12 = arith.constant 12 : index
    %c0_239 = arith.constant 0 : index
    %c0_240 = arith.constant 0 : index
    %230 = vector.load %arg6[%c12, %c0_239, %c0_240] : memref<16x64x4xf32, #tpu.memory_space<vmem>>, vector<1x64x4xf32>
    %231 = vector.shape_cast %230 : vector<1x64x4xf32> to vector<64x4xf32>
    %cst_241 = arith.constant dense<0.000000e+00> : vector<64x64xf32>
    %232 = tpu.matmul %231, %228, %cst_241 {dimension_numbers = #tpu.dot_dimension_numbers<[1], [0], [0], [1], [0, 0, 1, 1], [], []>} : vector<64x4xf32>, vector<4x64xf32>, vector<64x64xf32> -> vector<64x64xf32>
    %233 = arith.addf %215, %232 : vector<64x64xf32>
    %c12_242 = arith.constant 12 : index
    %c0_243 = arith.constant 0 : index
    %c0_244 = arith.constant 0 : index
    %234 = vector.load %arg7[%c12_242, %c0_243, %c0_244] : memref<16x64x3xf32, #tpu.memory_space<vmem>>, vector<1x64x3xf32>
    %235 = vector.shape_cast %234 : vector<1x64x3xf32> to vector<64x3xf32>
    %cst_245 = arith.constant dense<0.000000e+00> : vector<64x64xf32>
    %236 = tpu.matmul %235, %229, %cst_245 {dimension_numbers = #tpu.dot_dimension_numbers<[1], [0], [0], [1], [0, 0, 1, 1], [], []>} : vector<64x3xf32>, vector<3x64xf32>, vector<64x64xf32> -> vector<64x64xf32>
    %237 = arith.addf %219, %236 : vector<64x64xf32>
    %c1_i32_246 = arith.constant 1 : i32
    %238 = arith.addi %1, %c1_i32_246 : i32
    %c0_247 = arith.constant 0 : index
    %c1_248 = arith.constant 1 : index
    %c1_249 = arith.constant 1 : index
    %c0_250 = arith.constant 0 : index
    %239 = arith.index_cast %238 : i32 to index
    %c0_251 = arith.constant 0 : index
    %240 = vector.load %arg4[%c0_247, %c1_248, %c1_249, %c0_250, %239, %c0_251] : memref<1x2x2x4x9x9xf32, #tpu.memory_space<vmem>>, vector<1x1x1x4x8x8xf32>
    %241 = vector.shape_cast %240 : vector<1x1x1x4x8x8xf32> to vector<4x8x8xf32>
    %c1_i32_252 = arith.constant 1 : i32
    %242 = arith.addi %1, %c1_i32_252 : i32
    %c0_253 = arith.constant 0 : index
    %c1_254 = arith.constant 1 : index
    %c1_255 = arith.constant 1 : index
    %c0_256 = arith.constant 0 : index
    %243 = arith.index_cast %242 : i32 to index
    %c0_257 = arith.constant 0 : index
    %244 = vector.load %arg5[%c0_253, %c1_254, %c1_255, %c0_256, %243, %c0_257] : memref<1x2x2x3x9x9xf32, #tpu.memory_space<vmem>>, vector<1x1x1x3x8x8xf32>
    %245 = vector.shape_cast %244 : vector<1x1x1x3x8x8xf32> to vector<3x8x8xf32>
    %246 = vector.shape_cast %241 : vector<4x8x8xf32> to vector<4x64xf32>
    %247 = vector.shape_cast %245 : vector<3x8x8xf32> to vector<3x64xf32>
    %c13 = arith.constant 13 : index
    %c0_258 = arith.constant 0 : index
    %c0_259 = arith.constant 0 : index
    %248 = vector.load %arg6[%c13, %c0_258, %c0_259] : memref<16x64x4xf32, #tpu.memory_space<vmem>>, vector<1x64x4xf32>
    %249 = vector.shape_cast %248 : vector<1x64x4xf32> to vector<64x4xf32>
    %cst_260 = arith.constant dense<0.000000e+00> : vector<64x64xf32>
    %250 = tpu.matmul %249, %246, %cst_260 {dimension_numbers = #tpu.dot_dimension_numbers<[1], [0], [0], [1], [0, 0, 1, 1], [], []>} : vector<64x4xf32>, vector<4x64xf32>, vector<64x64xf32> -> vector<64x64xf32>
    %251 = arith.addf %233, %250 : vector<64x64xf32>
    %c13_261 = arith.constant 13 : index
    %c0_262 = arith.constant 0 : index
    %c0_263 = arith.constant 0 : index
    %252 = vector.load %arg7[%c13_261, %c0_262, %c0_263] : memref<16x64x3xf32, #tpu.memory_space<vmem>>, vector<1x64x3xf32>
    %253 = vector.shape_cast %252 : vector<1x64x3xf32> to vector<64x3xf32>
    %cst_264 = arith.constant dense<0.000000e+00> : vector<64x64xf32>
    %254 = tpu.matmul %253, %247, %cst_264 {dimension_numbers = #tpu.dot_dimension_numbers<[1], [0], [0], [1], [0, 0, 1, 1], [], []>} : vector<64x3xf32>, vector<3x64xf32>, vector<64x64xf32> -> vector<64x64xf32>
    %255 = arith.addf %237, %254 : vector<64x64xf32>
    %c1_i32_265 = arith.constant 1 : i32
    %256 = arith.addi %1, %c1_i32_265 : i32
    %c0_266 = arith.constant 0 : index
    %c1_267 = arith.constant 1 : index
    %c0_268 = arith.constant 0 : index
    %c0_269 = arith.constant 0 : index
    %257 = arith.index_cast %256 : i32 to index
    %c1_270 = arith.constant 1 : index
    %258 = vector.load %arg4[%c0_266, %c1_267, %c0_268, %c0_269, %257, %c1_270] : memref<1x2x2x4x9x9xf32, #tpu.memory_space<vmem>>, vector<1x1x1x4x8x8xf32>
    %259 = vector.shape_cast %258 : vector<1x1x1x4x8x8xf32> to vector<4x8x8xf32>
    %c1_i32_271 = arith.constant 1 : i32
    %260 = arith.addi %1, %c1_i32_271 : i32
    %c0_272 = arith.constant 0 : index
    %c1_273 = arith.constant 1 : index
    %c0_274 = arith.constant 0 : index
    %c0_275 = arith.constant 0 : index
    %261 = arith.index_cast %260 : i32 to index
    %c1_276 = arith.constant 1 : index
    %262 = vector.load %arg5[%c0_272, %c1_273, %c0_274, %c0_275, %261, %c1_276] : memref<1x2x2x3x9x9xf32, #tpu.memory_space<vmem>>, vector<1x1x1x3x8x8xf32>
    %263 = vector.shape_cast %262 : vector<1x1x1x3x8x8xf32> to vector<3x8x8xf32>
    %264 = vector.shape_cast %259 : vector<4x8x8xf32> to vector<4x64xf32>
    %265 = vector.shape_cast %263 : vector<3x8x8xf32> to vector<3x64xf32>
    %c14 = arith.constant 14 : index
    %c0_277 = arith.constant 0 : index
    %c0_278 = arith.constant 0 : index
    %266 = vector.load %arg6[%c14, %c0_277, %c0_278] : memref<16x64x4xf32, #tpu.memory_space<vmem>>, vector<1x64x4xf32>
    %267 = vector.shape_cast %266 : vector<1x64x4xf32> to vector<64x4xf32>
    %cst_279 = arith.constant dense<0.000000e+00> : vector<64x64xf32>
    %268 = tpu.matmul %267, %264, %cst_279 {dimension_numbers = #tpu.dot_dimension_numbers<[1], [0], [0], [1], [0, 0, 1, 1], [], []>} : vector<64x4xf32>, vector<4x64xf32>, vector<64x64xf32> -> vector<64x64xf32>
    %269 = arith.addf %251, %268 : vector<64x64xf32>
    %c14_280 = arith.constant 14 : index
    %c0_281 = arith.constant 0 : index
    %c0_282 = arith.constant 0 : index
    %270 = vector.load %arg7[%c14_280, %c0_281, %c0_282] : memref<16x64x3xf32, #tpu.memory_space<vmem>>, vector<1x64x3xf32>
    %271 = vector.shape_cast %270 : vector<1x64x3xf32> to vector<64x3xf32>
    %cst_283 = arith.constant dense<0.000000e+00> : vector<64x64xf32>
    %272 = tpu.matmul %271, %265, %cst_283 {dimension_numbers = #tpu.dot_dimension_numbers<[1], [0], [0], [1], [0, 0, 1, 1], [], []>} : vector<64x3xf32>, vector<3x64xf32>, vector<64x64xf32> -> vector<64x64xf32>
    %273 = arith.addf %255, %272 : vector<64x64xf32>
    %c1_i32_284 = arith.constant 1 : i32
    %274 = arith.addi %1, %c1_i32_284 : i32
    %c0_285 = arith.constant 0 : index
    %c1_286 = arith.constant 1 : index
    %c1_287 = arith.constant 1 : index
    %c0_288 = arith.constant 0 : index
    %275 = arith.index_cast %274 : i32 to index
    %c1_289 = arith.constant 1 : index
    %276 = vector.load %arg4[%c0_285, %c1_286, %c1_287, %c0_288, %275, %c1_289] : memref<1x2x2x4x9x9xf32, #tpu.memory_space<vmem>>, vector<1x1x1x4x8x8xf32>
    %277 = vector.shape_cast %276 : vector<1x1x1x4x8x8xf32> to vector<4x8x8xf32>
    %c1_i32_290 = arith.constant 1 : i32
    %278 = arith.addi %1, %c1_i32_290 : i32
    %c0_291 = arith.constant 0 : index
    %c1_292 = arith.constant 1 : index
    %c1_293 = arith.constant 1 : index
    %c0_294 = arith.constant 0 : index
    %279 = arith.index_cast %278 : i32 to index
    %c1_295 = arith.constant 1 : index
    %280 = vector.load %arg5[%c0_291, %c1_292, %c1_293, %c0_294, %279, %c1_295] : memref<1x2x2x3x9x9xf32, #tpu.memory_space<vmem>>, vector<1x1x1x3x8x8xf32>
    %281 = vector.shape_cast %280 : vector<1x1x1x3x8x8xf32> to vector<3x8x8xf32>
    %282 = vector.shape_cast %277 : vector<4x8x8xf32> to vector<4x64xf32>
    %283 = vector.shape_cast %281 : vector<3x8x8xf32> to vector<3x64xf32>
    %c15 = arith.constant 15 : index
    %c0_296 = arith.constant 0 : index
    %c0_297 = arith.constant 0 : index
    %284 = vector.load %arg6[%c15, %c0_296, %c0_297] : memref<16x64x4xf32, #tpu.memory_space<vmem>>, vector<1x64x4xf32>
    %285 = vector.shape_cast %284 : vector<1x64x4xf32> to vector<64x4xf32>
    %cst_298 = arith.constant dense<0.000000e+00> : vector<64x64xf32>
    %286 = tpu.matmul %285, %282, %cst_298 {dimension_numbers = #tpu.dot_dimension_numbers<[1], [0], [0], [1], [0, 0, 1, 1], [], []>} : vector<64x4xf32>, vector<4x64xf32>, vector<64x64xf32> -> vector<64x64xf32>
    %287 = arith.addf %269, %286 : vector<64x64xf32>
    %c15_299 = arith.constant 15 : index
    %c0_300 = arith.constant 0 : index
    %c0_301 = arith.constant 0 : index
    %288 = vector.load %arg7[%c15_299, %c0_300, %c0_301] : memref<16x64x3xf32, #tpu.memory_space<vmem>>, vector<1x64x3xf32>
    %289 = vector.shape_cast %288 : vector<1x64x3xf32> to vector<64x3xf32>
    %cst_302 = arith.constant dense<0.000000e+00> : vector<64x64xf32>
    %290 = tpu.matmul %289, %283, %cst_302 {dimension_numbers = #tpu.dot_dimension_numbers<[1], [0], [0], [1], [0, 0, 1, 1], [], []>} : vector<64x3xf32>, vector<3x64xf32>, vector<64x64xf32> -> vector<64x64xf32>
    %291 = arith.addf %273, %290 : vector<64x64xf32>
    %c0_303 = arith.constant 0 : index
    %292 = memref.load %arg3[%c0_303] : memref<5xf32, #tpu.memory_space<smem>>
    %c1_304 = arith.constant 1 : index
    %293 = memref.load %arg3[%c1_304] : memref<5xf32, #tpu.memory_space<smem>>
    %c2_305 = arith.constant 2 : index
    %294 = memref.load %arg3[%c2_305] : memref<5xf32, #tpu.memory_space<smem>>
    %c3_306 = arith.constant 3 : index
    %295 = memref.load %arg3[%c3_306] : memref<5xf32, #tpu.memory_space<smem>>
    %c4_307 = arith.constant 4 : index
    %296 = memref.load %arg3[%c4_307] : memref<5xf32, #tpu.memory_space<smem>>
    %297 = vector.broadcast %293 : f32 to vector<64x64xf32>
    %298 = arith.subf %291, %297 : vector<64x64xf32>
    %299 = vector.broadcast %293 : f32 to vector<64x64xf32>
    %300 = arith.subf %291, %299 : vector<64x64xf32>
    %301 = arith.mulf %298, %300 : vector<64x64xf32>
    %302 = vector.broadcast %293 : f32 to vector<64x64xf32>
    %303 = arith.cmpf olt, %291, %302 : vector<64x64xf32>
    %304 = vector.broadcast %294 : f32 to vector<64x64xf32>
    %305 = vector.broadcast %295 : f32 to vector<64x64xf32>
    %306 = arith.select %303, %304, %305 : vector<64x64xi1>, vector<64x64xf32>
    %cst_308 = arith.constant 0.000000e+00 : f32
    %307 = vector.broadcast %cst_308 : f32 to vector<64x64xf32>
    %308 = arith.subf %307, %306 : vector<64x64xf32>
    %309 = arith.mulf %308, %301 : vector<64x64xf32>
    %310 = math.exp %309 : vector<64x64xf32>
    %311 = vector.broadcast %292 : f32 to vector<64x64xf32>
    %312 = arith.mulf %311, %310 : vector<64x64xf32>
    %cst_309 = arith.constant 1.000000e+00 : f32
    %313 = arith.subf %292, %cst_309 : f32
    %314 = vector.broadcast %313 : f32 to vector<64x64xf32>
    %315 = arith.mulf %314, %310 : vector<64x64xf32>
    %cst_310 = arith.constant 1.000000e+00 : f32
    %316 = vector.broadcast %cst_310 : f32 to vector<64x64xf32>
    %317 = arith.addf %316, %315 : vector<64x64xf32>
    %318 = arith.select %303, %312, %317 : vector<64x64xi1>, vector<64x64xf32>
    %319 = arith.mulf %287, %318 : vector<64x64xf32>
    %cst_311 = arith.constant 0.000000e+00 : f32
    %320 = vector.broadcast %cst_311 : f32 to vector<64x64xf32>
    %321 = arith.maximumf %291, %320 : vector<64x64xf32>
    %cst_312 = arith.constant 0.000000e+00 : f32
    %322 = vector.broadcast %cst_312 : f32 to vector<64x64xf32>
    %323 = arith.cmpf ogt, %321, %322 : vector<64x64xf32>
    %cst_313 = arith.constant 1.000000e-30 : f32
    %324 = vector.broadcast %cst_313 : f32 to vector<64x64xf32>
    %325 = arith.maximumf %321, %324 : vector<64x64xf32>
    %326 = math.log %325 : vector<64x64xf32>
    %327 = vector.broadcast %296 : f32 to vector<64x64xf32>
    %328 = arith.mulf %327, %326 : vector<64x64xf32>
    %329 = math.exp %328 : vector<64x64xf32>
    %cst_314 = arith.constant 0.000000e+00 : f32
    %330 = vector.broadcast %cst_314 : f32 to vector<64x64xf32>
    %331 = arith.select %323, %329, %330 : vector<64x64xi1>, vector<64x64xf32>
    %c0_315 = arith.constant 0 : index
    %c0_316 = arith.constant 0 : index
    %c0_317 = arith.constant 0 : index
    %332 = vector.load %arg8[%c0_315, %c0_316, %c0_317] : memref<1x64x64xf32, #tpu.memory_space<vmem>>, vector<1x64x64xf32>
    %333 = vector.shape_cast %332 : vector<1x64x64xf32> to vector<64x64xf32>
    %334 = vector.shape_cast %319 : vector<64x64xf32> to vector<1x64x64xf32>
    tpu.vector_store %arg8[%c0_315, %c0_316, %c0_317], %334 {strides = array<i32>} : memref<1x64x64xf32, #tpu.memory_space<vmem>>, vector<1x64x64xf32>,
    %c0_318 = arith.constant 0 : index
    %c0_319 = arith.constant 0 : index
    %c0_320 = arith.constant 0 : index
    %335 = vector.load %arg9[%c0_318, %c0_319, %c0_320] : memref<1x64x64xf32, #tpu.memory_space<vmem>>, vector<1x64x64xf32>
    %336 = vector.shape_cast %335 : vector<1x64x64xf32> to vector<64x64xf32>
    %337 = vector.shape_cast %331 : vector<64x64xf32> to vector<1x64x64xf32>
    tpu.vector_store %arg9[%c0_318, %c0_319, %c0_320], %337 {strides = array<i32>} : memref<1x64x64xf32, #tpu.memory_space<vmem>>, vector<1x64x64xf32>,
    %c0_321 = arith.constant 0 : index
    %c0_322 = arith.constant 0 : index
    %c0_323 = arith.constant 0 : index
    %338 = vector.load %arg10[%c0_321, %c0_322, %c0_323] : memref<1x64x64xf32, #tpu.memory_space<vmem>>, vector<1x64x64xf32>
    %339 = vector.shape_cast %338 : vector<1x64x64xf32> to vector<64x64xf32>
    %340 = vector.shape_cast %287 : vector<64x64xf32> to vector<1x64x64xf32>
    tpu.vector_store %arg10[%c0_321, %c0_322, %c0_323], %340 {strides = array<i32>} : memref<1x64x64xf32, #tpu.memory_space<vmem>>, vector<1x64x64xf32>,
    %c0_324 = arith.constant 0 : index
    %c0_325 = arith.constant 0 : index
    %c0_326 = arith.constant 0 : index
    %341 = vector.load %arg11[%c0_324, %c0_325, %c0_326] : memref<1x64x64xf32, #tpu.memory_space<vmem>>, vector<1x64x64xf32>
    %342 = vector.shape_cast %341 : vector<1x64x64xf32> to vector<64x64xf32>
    %343 = vector.shape_cast %318 : vector<64x64xf32> to vector<1x64x64xf32>
    tpu.vector_store %arg11[%c0_324, %c0_325, %c0_326], %343 {strides = array<i32>} : memref<1x64x64xf32, #tpu.memory_space<vmem>>, vector<1x64x64xf32>,
    return
  }
  func.func @transform_0(%arg0: i32, %arg1: i32, %arg2: i32) -> i32 {
    %c0_i32 = arith.constant 0 : i32
    %c0_i32_0 = arith.constant 0 : i32
    return %c0_i32 : i32
  }
  func.func @transform_1(%arg0: i32, %arg1: i32, %arg2: i32) -> (i32, i32, i32, i32, i32, i32) {
    %c0_i32 = arith.constant 0 : i32
    %c0_i32_0 = arith.constant 0 : i32
    %c0_i32_1 = arith.constant 0 : i32
    %c0_i32_2 = arith.constant 0 : i32
    %c0_i32_3 = arith.constant 0 : i32
    %c0_i32_4 = arith.constant 0 : i32
    return %arg0, %c0_i32, %c0_i32_0, %c0_i32_1, %c0_i32_2, %c0_i32_3 : i32, i32, i32, i32, i32, i32
  }
  func.func @transform_2(%arg0: i32, %arg1: i32, %arg2: i32) -> (i32, i32, i32, i32, i32, i32) {
    %c0_i32 = arith.constant 0 : i32
    %c0_i32_0 = arith.constant 0 : i32
    %c0_i32_1 = arith.constant 0 : i32
    %c0_i32_2 = arith.constant 0 : i32
    %c0_i32_3 = arith.constant 0 : i32
    %c0_i32_4 = arith.constant 0 : i32
    return %arg0, %c0_i32, %c0_i32_0, %c0_i32_1, %c0_i32_2, %c0_i32_3 : i32, i32, i32, i32, i32, i32
  }
  func.func @transform_3(%arg0: i32, %arg1: i32, %arg2: i32) -> (i32, i32, i32) {
    %c0_i32 = arith.constant 0 : i32
    %c0_i32_0 = arith.constant 0 : i32
    %c0_i32_1 = arith.constant 0 : i32
    return %c0_i32, %arg1, %c0_i32_0 : i32, i32, i32
  }
  func.func @transform_4(%arg0: i32, %arg1: i32, %arg2: i32) -> (i32, i32, i32) {
    %c0_i32 = arith.constant 0 : i32
    %c0_i32_0 = arith.constant 0 : i32
    %c0_i32_1 = arith.constant 0 : i32
    return %c0_i32, %arg1, %c0_i32_0 : i32, i32, i32
  }
  func.func @transform_5(%arg0: i32, %arg1: i32, %arg2: i32) -> (i32, i32, i32) {
    %c0_i32 = arith.constant 0 : i32
    return %arg0, %arg1, %arg2 : i32, i32, i32
  }
  func.func @transform_6(%arg0: i32, %arg1: i32, %arg2: i32) -> (i32, i32, i32) {
    %c0_i32 = arith.constant 0 : i32
    return %arg0, %arg1, %arg2 : i32, i32, i32
  }
  func.func @transform_7(%arg0: i32, %arg1: i32, %arg2: i32) -> (i32, i32, i32) {
    %c0_i32 = arith.constant 0 : i32
    return %arg0, %arg1, %arg2 : i32, i32, i32
  }
  func.func @transform_8(%arg0: i32, %arg1: i32, %arg2: i32) -> (i32, i32, i32) {
    %c0_i32 = arith.constant 0 : i32
    return %arg0, %arg1, %arg2 : i32, i32, i32
  }
}

</mosaic_0001>

<bundles_post_ra>
// kernel: forward_attention_layer.1
= control target key start
LH: loop header
LB: loop body
LE: loop exit
PB: predicated region body
PF: predicated region fallthrough
CT: control target
= control target key end

     0   :  { %14 = vsyncpa [#allocation3], 0  ;;  %s11331_s27 = smov 0   ;;  %s11333_s28 = smov 0   ;;  %s14627_s0 = inlined_call_operand.vmem [shape: f32[5], index: 0, kind: input, shape index: {}]   ;;  %s14628_s1 = inlined_call_operand.vmem [shape: f32[2,2,2,4,9,9], index: 1, kind: input, shape index: {}]   ;;  %s14629_s2 = inlined_call_operand.vmem [shape: f32[2,2,2,3,9,9], index: 2, kind: input, shape index: {}]   ;;  %s14630_s3 = inlined_call_operand.vmem [shape: f32[16,64,4], index: 3, kind: input, shape index: {}]   ;;  %s14631_s4 = inlined_call_operand.vmem [shape: f32[16,64,3], index: 4, kind: input, shape index: {}]   ;;  %s14632_s5 = inlined_call_operand.vmem [shape: f32[2,64,64], index: 5, kind: output, shape index: {0}]   ;;  %s14633_s6 = inlined_call_operand.vmem [shape: f32[2,64,64], index: 6, kind: output, shape index: {1}]   ;;  %s14634_s7 = inlined_call_operand.vmem [shape: f32[2,64,64], index: 7, kind: output, shape index: {2}]   ;;  %s14635_s8 = inlined_call_operand.vmem [shape: f32[2,64,64], index: 8, kind: output, shape index: {3}]  }
   0x1   :  { %s11335_s29 = smov 0  }
   0x2 LB: > { %s9502_s30 = sadd.s32 4294967295, %s11272_s29   ;;  %s39_s9 = sadd.s32 1, %s11268_s28  ;;  %s11272_s29 = sphi %s11335_s29, %s20_s29   ;;  %s11268_s28 = sphi %s11333_s28, %s14652_s28   ;;  %s11264_s27 = sphi %s11331_s27, %s14651_s27  }
   0x3   : > { %p41_p0 = scmp.ge.s32.totalorder %s39_s9, 2  ;;  %p9504_p1 = scmp.ge.s32.totalorder %s11272_s29, 1 }
   0x4   : > { %p289_p2 = scmp.lt.s32.totalorder %s11272_s29, 3  ;;  %p11356_p4 = scmp.eq.s32.totalorder %s9502_s30, 0 }
   0x5   : > { %s14654_s9 = smov (%p41_p0, %s39_s9), 0  ;;  %s302_s14 = sshll.u32 %s14627_s0, 4  ;;  %s303_s14 = int_to_ptr.vmem [resolvable:$true] %s302_s14 }
   0x6   : > { %p11352_p3 = pnand %p9504_p1, %p289_p2  ;;  %s11231_s15 = scalar_lea.vmem %s303_s14, 16 }
   0x7   : > { %p11232_p7 = scmp.ne.s32.totalorder %s303_s14, %s11231_s15  ;;  %p11239_p11 = scmp.lt.s32.totalorder %s303_s14, %s303_s14 }
   0x8   : > { %p11141_p5 = pneg %p11352_p3  ;;  %p11240_p12 = scmp.lt.s32.totalorder %s11231_s15, %s11231_s15 }
   0xa   : > { %p11142_p6 = pnand %p11356_p4, %p11141_p5  ;;  %p11241_p13 = por %p11240_p12, %p11239_p11 }
   0xc   : > { %p11233_p8 = pneg %p11142_p6 }
   0xe   : > { %p11234_p9 = pnand %p11233_p8, %p11232_p7 }
  0x10   : > { %p11235_p10 = pneg %p11234_p9 }
  0x12   : > { %p11242_p0 = pnand %p11241_p13, %p11235_p10 }
  0x14   : > { %11245 = shalt.err (!%p11242_p0)
}
  0x15   : > { %s11274_s16 = smov [#allocation2]   ;;  %349 = sbr.rel (%p11352_p3) target bundleno = 1000 (0x3e8), region = 40 }
  0x16   : > { %11144 = dma.vmem_to_smem (!%p11142_p6), %s303_s14, 16, %s11274_s16, [#allocation3]  }
  0x1c   : > { %11259 = dma.done.wait (%p11356_p4), [#allocation3], 16  }
  0x1d   : > { %11261 = vsyncadd (%p11356_p4), [#allocation3], 4294967280 }
  0x1e   : > { %355 = sfence }
  0x1f   : > { %p442_p1 = scmp.lt.s32.totalorder %s11264_s27, 1  ;;  %v531_v0 = vlaneseq  ;;  %v11275_v1 = vmov 1983009808   ;;  %s11276_s21 = smov 127   ;;  %v11277_v8 = vmov 1934713408  }
  0x20   : > { %v529_v2 = vunpack.c.l.s4 %v11275_v1  ;;  %v561_v9 = vunpack.c.l.s4 %v11277_v8  ;;  %v11278_v18 = vmov 0.0   ;;  %s11279_s26 = smov 8   ;;  %s11280_s30 = smov 16   ;;  %vm1254_vm0 = vcmask 23552  }
  0x21   : > { %s14656_s27 = smov (!%p442_p1, %s11264_s27), 1  ;;  %v532_v4 = vshrl.u32 %v531_v0, 7  ;;  %s11281_s10 = smov 24   ;;  %vm979_vm1 = vcmask 31744   ;;  %vm622_vm2 = vcmask 64512   ;;  %vm624_vm3 = vcmask 130048  }
  0x22   : > { %s11136_s17 = smul.u32 192, %s14656_s27  ;;  %v530_v3 = vunpack.c.0.s8 %v529_v2  ;;  %s10155_s22 = sshll.u32 %s14656_s27, 8  ;;  %v562_v15 = vunpack.c.0.s8 %v561_v9  ;;  %vm626_vm4 = vcmask 195584   ;;  %vm628_vm5 = vcmask 261120  }
  0x23   : > { %s11410_s25 = scalar_lea.vmem %s14628_s1, %s10155_s22  ;;  %s11282_s11 = smov 32   ;;  %vm630_vm6 = vcmask 326656   ;;  %vm632_vm7 = vcmask 392192   ;;  %vm634_vm8 = vcmask 457728   ;;  %vm1279_vm9 = vcmask 1042432  }
  0x24   : > { %s11381_s20 = scalar_lea.vmem %s14629_s2, %s11136_s17  ;;  %v11393_v7 = vsub.s32 %v530_v3, %v532_v4  ;;  %v11415_v20 = vsub.s32 %v562_v15, %v532_v4  ;;  %v11418_v23 = vld [vmem:[%s11410_s25 + $0x10] sm:$0xff]  ;;  %v11421_v24 = vld [vmem:[%s11410_s25] sm:$0xff]  ;;  %s11283_s12 = smov 40   ;;  %vm1004_vm10 = vcmask 1043456  }
  0x25   : > { %v11384_v5 = vld [vmem:[%s11381_s20 + $0x10] sm:$0xff]  ;;  %v11387_v6 = vld [vmem:[%s11381_s20] sm:$0xff]  ;;  %s11284_s13 = smov 48   ;;  %s11285_s14 = smov 56  }
  0x26   : > { %1651 = vrot.lane.b32.xlu1 %v11384_v5, %s11276_s21  ;;  %1649 = vrot.lane.b32.xlu0 %v11387_v6, %s11276_s21  ;;  %v9619_v10 = vld [vmem:[%s11381_s20 + $0x30] sm:$0xff]  ;;  %v11397_v11 = vld [vmem:[%s11381_s20 + $0x20] sm:$0xff]  ;;  %v659_v41 = vrot.slane %v11384_v5, %v11393_v7  ;;  %v652_v52 = vcombine.high %v11384_v5, %v11278_v18  ;;  %s10148_s16 = sld [smem:[#allocation2 + $0x1]]  ;;  %s10149_s17 = sld [smem:[#allocation2 + $0x2]] }
  0x27   : > { %v9621_v12 = vld [vmem:[%s11381_s20 + $0x50] sm:$0xff]  ;;  %v9620_v14 = vld [vmem:[%s11381_s20 + $0x40] sm:$0xff]  ;;  %v636_v37 = vcombine.low %v11387_v6, %v11397_v11  ;;  %v637_v51 = vcombine.high %v11387_v6, %v11397_v11 }
  0x28   : > { %v868_v13 = vcombine.low %v9619_v10, %v9621_v12  ;;  %v891_v17 = vrot.slane %v9620_v14, %v11393_v7  ;;  %v884_v19 = vcombine.high %v9620_v14, %v11278_v18  ;;  %v869_v22 = vcombine.high %v9619_v10, %v9621_v12  ;;  %v11433_v29 = vld [vmem:[%s11410_s25 + $0x30] sm:$0xff]  ;;  %v11436_v30 = vld [vmem:[%s11410_s25 + $0x20] sm:$0xff] }
  0x29   : > { %v644_v40 = vrot.slane %v636_v37, %v11393_v7  ;;  %v9742_v42 = vld [vmem:[%s11381_s20 + $0x60] sm:$0xff]  ;;  %v9743_v47 = vld [vmem:[%s11381_s20 + $0x70] sm:$0xff]  ;;  %v651_v58 = vrot.slane %v637_v51, %v11393_v7  ;;  %v666_v59 = vrot.slane %v652_v52, %v11393_v7 }
  0x2a   : > { %2187 = vrot.lane.b32.xlu1 %v9619_v10, %s11276_s21  ;;  %1653 = vrot.lane.b32.xlu0 %v11397_v11, %s11276_s21  ;;  %v876_v16 = vrot.slane %v868_v13, %v11393_v7  ;;  %v898_v25 = vrot.slane %v884_v19, %v11393_v7  ;;  %v883_v28 = vrot.slane %v869_v22, %v11393_v7  ;;  %v9744_v43 = vld [vmem:[%s11381_s20 + $0x80] sm:$0xff]  ;;  %v9616_v55 = vld [vmem:[%s11410_s25 + $0x50] sm:$0xff] }
  0x2b   : > { %v2710_v44 = vcombine.low %v9742_v42, %v9744_v43  ;;  %v667_v46 = vcombine.low %v644_v40, %v659_v41  ;;  %v9615_v48 = vld [vmem:[%s11410_s25 + $0x40] sm:$0xff]  ;;  %v11469_v50 = vrot.slane %v9743_v47, %v11393_v7  ;;  %v668_v57 = vcombine.high %v644_v40, %v659_v41  ;;  %v9618_v61 = vld [vmem:[%s11410_s25 + $0x70] sm:$0xff] }
  0x2c   : > { %v899_v21 = vcombine.low %v876_v16, %v891_v17  ;;  %v900_v27 = vcombine.high %v876_v16, %v891_v17  ;;  %v915_v33 = vcombine.low %v883_v28, %v898_v25  ;;  %v916_v36 = vcombine.high %v883_v28, %v898_v25  ;;  %v9617_v56 = vld [vmem:[%s11410_s25 + $0x60] sm:$0xff] }
  0x2d   : > { %v11466_v49 = vrot.slane %v2710_v44, %v11393_v7  ;;  %v11480_v54 = vrot.slane %v667_v46, %v11415_v20  ;;  %v682_v63 = vrot.slane %v668_v57, %v11415_v20  ;;  %v683_v0 = vcombine.low %v651_v58, %v666_v59  ;;  %v9555_v52 = vld [vmem:[%s14631_s4 + $0x40] sm:$0xff] }
  0x2e   : > { %2189 = vrot.lane.b32.xlu1 %v9620_v14, %s11276_s21  ;;  %2191 = vrot.lane.b32.xlu0 %v9621_v12, %s11276_s21  ;;  %v11429_v26 = vrot.slane %v899_v21, %v11415_v20  ;;  %v914_v32 = vrot.slane %v900_v27, %v11415_v20  ;;  %v923_v35 = vrot.slane %v915_v33, %v11415_v20 }
  0x2f   : > { %v930_v39 = vrot.slane %v916_v36, %v11415_v20  ;;  %v2741_v53 = vcombine.low %v11466_v49, %v11469_v50  ;;  %v699_v60 = vcombine.high %v11480_v54, %v11278_v18  ;;  %v2742_v62 = vcombine.high %v11466_v49, %v11469_v50  ;;  %10478 = vmatprep.mubr.msk.f32.mxu1 %vm1254_vm0, %v9555_v52 }
  0x30   : > { %v931_v31 = vcombine.high %v11429_v26, %v11278_v18  ;;  %v932_v34 = vcombine.high %v914_v32, %v11278_v18  ;;  %v933_v38 = vcombine.high %v923_v35, %v11278_v18  ;;  %v700_v1 = vcombine.high %v682_v63, %v11278_v18 }
  0x31   : > { %v934_v45 = vcombine.high %v930_v39, %v11278_v18  ;;  %v2711_v2 = vcombine.high %v9742_v42, %v9744_v43  ;;  %v2726_v3 = vcombine.high %v9743_v47, %v11278_v18  ;;  %v691_v4 = vrot.slane %v683_v0, %v11415_v20 }
  0x32   : > { %1533 = vrot.lane.b32.xlu1 %v11418_v23, %s11276_s21  ;;  %1531 = vrot.lane.b32.xlu0 %v11421_v24, %s11276_s21  ;;  %v684_v5 = vcombine.high %v651_v58, %v666_v59  ;;  %v765_v6 = vcombine.low %v9615_v48, %v9617_v56  ;;  %v781_v8 = vcombine.low %v9616_v55, %v9618_v61 }
  0x33   : > { %v11500_v9 = vrot.slane %v2711_v2, %v11393_v7  ;;  %v11503_v10 = vrot.slane %v2726_v3, %v11393_v7  ;;  %v701_v11 = vcombine.high %v691_v4, %v11278_v18  ;;  %v766_v22 = vcombine.high %v9615_v48, %v9617_v56 }
  0x34   : > { %v698_v13 = vrot.slane %v684_v5, %v11415_v20  ;;  %v773_v14 = vrot.slane %v765_v6, %v11393_v7  ;;  %v789_v15 = vrot.slane %v781_v8, %v11393_v7  ;;  %v526_v25 = vcombine.low %v11421_v24, %v11436_v30 }
  0x35   : > { %v2757_v12 = vcombine.low %v11500_v9, %v11503_v10  ;;  %v2758_v21 = vcombine.high %v11500_v9, %v11503_v10  ;;  %v542_v27 = vcombine.low %v11418_v23, %v11433_v29  ;;  %v780_v36 = vrot.slane %v766_v22, %v11393_v7  ;;  %v9739_v22 = vld [vmem:[%s11410_s25 + $0x90] sm:$0xff] }
  0x36   : > { %1537 = vrot.lane.b32.xlu1 %v11433_v29, %s11276_s21  ;;  %1535 = vrot.lane.b32.xlu0 %v11436_v30, %s11276_s21  ;;  %v702_v16 = vcombine.high %v698_v13, %v11278_v18  ;;  %v797_v17 = vcombine.low %v773_v14, %v789_v15  ;;  %v798_v28 = vcombine.high %v773_v14, %v789_v15 }
  0x37   : > { %v534_v33 = vrot.slane %v526_v25, %v11393_v7  ;;  %v527_v40 = vcombine.high %v11421_v24, %v11436_v30  ;;  %v543_v41 = vcombine.high %v11418_v23, %v11433_v29  ;;  %v9740_v25 = vld [vmem:[%s11410_s25 + $0xa0] sm:$0xff] }
  0x38   : > { %v11519_v19 = vrot.slane %v797_v17, %v11415_v20  ;;  %v9738_v17 = vld [vmem:[%s11410_s25 + $0x80] sm:$0xff] }
  0x39   : > { %v557_v24 = vrot.slane %v543_v41, %v11393_v7  ;;  %v541_v51 = vrot.slane %v527_v40, %v11393_v7 }
  0x3a   : > { %936 = vrot.lane.b32.xlu0 %v931_v31, %s11279_s26  ;;  %940 = vrot.lane.b32.xlu1 %v914_v32, %s11280_s30  ;;  %v829_v31 = vcombine.high %v11519_v19, %v11278_v18  ;;  %v782_v32 = vcombine.high %v9616_v55, %v9618_v61 }
  0x3b   : > { %v574_v58 = vcombine.low %v541_v51, %v557_v24  ;;  %v575_v6 = vcombine.high %v541_v51, %v557_v24 }
  0x3c   : > { %v796_v37 = vrot.slane %v782_v32, %v11393_v7 }
  0x3e   : > { %944 = vrot.lane.b32.xlu0 %v932_v34, %s11281_s10  ;;  %948 = vrot.lane.b32.xlu1 %v923_v35, %s11282_s11  ;;  %v550_v34 = vrot.slane %v542_v27, %v11393_v7  ;;  %v812_v35 = vrot.slane %v798_v28, %v11415_v20  ;;  %v813_v44 = vcombine.low %v780_v36, %v796_v37  ;;  %v9741_v27 = vld [vmem:[%s11410_s25 + $0xb0] sm:$0xff]  ;;  %v9529_v28 = vld [vmem:[%s14630_s3 + $0x40] sm:$0xff] }
  0x3f   : > { %10450 = vmatprep.mubr.msk.f32.mxu0 %vm979_vm1, %v9529_v28  ;;  %v2623_v32 = vcombine.low %v9739_v22, %v9741_v27 }
  0x40   : > { %v559_v46 = vcombine.high %v534_v33, %v550_v34  ;;  %v821_v29 = vrot.slane %v813_v44, %v11415_v20 }
  0x42   : > { %952 = vrot.lane.b32.xlu0 %v933_v38, %s11283_s12  ;;  %956 = vrot.lane.b32.xlu1 %v930_v39, %s11284_s13  ;;  %v9783_v38 = vld [vmem:[%s11381_s20 + $0x90] sm:$0xff]  ;;  %v573_v30 = vrot.slane %v559_v46, %v11415_v20 }
  0x43   : > { %v9785_v39 = vld [vmem:[%s11381_s20 + $0xb0] sm:$0xff] }
  0x44   : > { %v591_v57 = vcombine.high %v573_v30, %v11278_v18 }
  0x46   : > { %960 = vrot.lane.b32.xlu0 %v934_v45, %s11285_s14  ;;  %2069 = vrot.lane.b32.xlu1 %v9615_v48, %s11276_s21  ;;  %v9784_v45 = vld [vmem:[%s11381_s20 + $0xa0] sm:$0xff] }
  0x47   : > { %v11552_v48 = vrot.slane %v9784_v45, %v11393_v7  ;;  %v3240_v0 = vcombine.high %v9784_v45, %v11278_v18 }
  0x49   : > { %v11581_v3 = vrot.slane %v3240_v0, %v11393_v7 }
  0x4a   : > { %2071 = vrot.lane.b32.xlu0 %v9616_v55, %s11276_s21  ;;  %2073 = vrot.lane.b32.xlu1 %v9617_v56, %s11276_s21  ;;  %v814_v55 = vcombine.high %v780_v36, %v796_v37  ;;  %v831_v56 = vcombine.high %v821_v29, %v11278_v18  ;;  %v2608_v37 = vcombine.high %v9738_v17, %v9740_v25 }
  0x4e   : > { %2075 = vrot.lane.b32.xlu0 %v9618_v61, %s11276_s21  ;;  %704 = vrot.lane.b32.xlu1 %v699_v60, %s11279_s26  ;;  %v828_v60 = vrot.slane %v814_v55, %v11415_v20  ;;  %v582_v61 = vrot.slane %v574_v58, %v11415_v20 }
  0x50   : > { %v592_v5 = vcombine.high %v582_v61, %v11278_v18 }
  0x52   : > { %708 = vrot.lane.b32.xlu0 %v682_v63, %s11280_s30  ;;  %712 = vrot.lane.b32.xlu1 %v700_v1, %s11281_s10  ;;  %v3225_v63 = vcombine.high %v9783_v38, %v9785_v39  ;;  %v558_v1 = vcombine.low %v534_v33, %v550_v34  ;;  %v11618_v34 = vrot.slane %v2623_v32, %v11393_v7 }
  0x54   : > { %v11578_v2 = vrot.slane %v3225_v63, %v11393_v7 }
  0x56   : > { %716 = vrot.lane.b32.xlu0 %v691_v4, %s11282_s11  ;;  %720 = vrot.lane.b32.xlu1 %v701_v11, %s11283_s12  ;;  %v832_v4 = vcombine.high %v828_v60, %v11278_v18  ;;  %v3271_v8 = vcombine.low %v11578_v2, %v11581_v3  ;;  %v11592_v11 = vrot.slane %v558_v1, %v11415_v20 }
  0x58   : > { %v590_v14 = vcombine.high %v11592_v11, %v11278_v18 }
  0x5a   : > { %724 = vrot.lane.b32.xlu0 %v698_v13, %s11284_s13  ;;  %728 = vrot.lane.b32.xlu1 %v702_v16, %s11285_s14  ;;  %v589_v13 = vrot.slane %v575_v6, %v11415_v20  ;;  %v3272_v16 = vcombine.high %v11578_v2, %v11581_v3  ;;  %v741_v2 = vld [vmem:[%s14630_s3 + $0x18] sm:$0xff]  ;;  %v742_v3 = vld [vmem:[%s14630_s3 + $0x20] sm:$0xff] }
  0x5c   : > { %v593_v15 = vcombine.high %v589_v13, %v11278_v18 }
  0x5e   : > { %3753 = vrot.lane.b32.xlu0 %v9742_v42, %s11276_s21  ;;  %3757 = vrot.lane.b32.xlu1 %v9744_v43, %s11276_s21  ;;  %v3224_v42 = vcombine.low %v9783_v38, %v9785_v39  ;;  %v830_v43 = vcombine.high %v812_v35, %v11278_v18 }
  0x62   : > { %3755 = vrot.lane.b32.xlu0 %v9743_v47, %s11276_s21  ;;  %834 = vrot.lane.b32.xlu1 %v829_v31, %s11279_s26  ;;  %v11549_v47 = vrot.slane %v3224_v42, %v11393_v7  ;;  %v2607_v31 = vcombine.low %v9738_v17, %v9740_v25 }
  0x64   : > { %v3255_v23 = vcombine.low %v11549_v47, %v11552_v48  ;;  %v3256_v59 = vcombine.high %v11549_v47, %v11552_v48  ;;  %v11615_v33 = vrot.slane %v2607_v31, %v11393_v7  ;;  %v11987_v47 = vld [vmem:[%s11381_s20 + $0x51] sm:$0xff] }
  0x65   : > { %v11990_v48 = vld [vmem:[%s11381_s20 + $0x31] sm:$0xff] }
  0x66   : > { %838 = vrot.lane.b32.xlu0 %v812_v35, %s11280_s30  ;;  %4291 = vrot.lane.b32.xlu1 %v9783_v38, %s11276_s21  ;;  %v2640_v35 = vcombine.high %v11615_v33, %v11618_v34  ;;  %v2639_v36 = vcombine.low %v11615_v33, %v11618_v34  ;;  %v2624_v38 = vcombine.high %v9739_v22, %v9741_v27 }
  0x68   : > { %v11630_v40 = vrot.slane %v2624_v38, %v11393_v7 }
  0x6a   : > { %842 = vrot.lane.b32.xlu0 %v830_v43, %s11281_s10  ;;  %4293 = vrot.lane.b32.xlu1 %v9784_v45, %s11276_s21 }
  0x6e   : > { %846 = vrot.lane.b32.xlu0 %v821_v29, %s11282_s11  ;;  %599 = vrot.lane.b32.xlu1 %v573_v30, %s11280_s30 }
  0x72   : > { %850 = vrot.lane.b32.xlu0 %v831_v56, %s11283_s12  ;;  %603 = vrot.lane.b32.xlu1 %v591_v57, %s11281_s10 }
  0x76   : > { %854 = vrot.lane.b32.xlu0 %v828_v60, %s11284_s13  ;;  %607 = vrot.lane.b32.xlu1 %v582_v61, %s11282_s11 }
  0x7a   : > { %858 = vrot.lane.b32.xlu0 %v832_v4, %s11285_s14  ;;  %611 = vrot.lane.b32.xlu1 %v592_v5, %s11283_s12 }
  0x7e   : > { %4295 = vrot.lane.b32.xlu0 %v9785_v39, %s11276_s21  ;;  %615 = vrot.lane.b32.xlu1 %v589_v13, %s11284_s13  ;;  %v11627_v39 = vrot.slane %v2608_v37, %v11393_v7 }
  0x80   : > { %v2655_v41 = vcombine.low %v11627_v39, %v11630_v40  ;;  %v2656_v44 = vcombine.high %v11627_v39, %v11630_v40 }
  0x82   : > { %595 = vrot.lane.b32.xlu0 %v590_v14, %s11279_s26  ;;  %619 = vrot.lane.b32.xlu1 %v593_v15, %s11285_s14 }
  0x86   : > { %3635 = vrot.lane.b32.xlu0 %v9738_v17, %s11276_s21  ;;  %3637 = vrot.lane.b32.xlu1 %v9739_v22, %s11276_s21 }
  0x8a   : > { %3639 = vrot.lane.b32.xlu0 %v9740_v25, %s11276_s21  ;;  %3641 = vrot.lane.b32.xlu1 %v9741_v27, %s11276_s21 }
  0x98   : > { %v1652_v42 = vpop.permute.xlu1 %1651  ;;  %v1650_v43 = vpop.permute.xlu0 %1649 }
  0x99   : > { %v1674_v17 = vcombine.high %v1652_v42, %v11278_v18 }
  0x9c   : > { %v2188_v45 = vpop.permute.xlu1 %2187  ;;  %v1654_v46 = vpop.permute.xlu0 %1653 }
  0x9d   : > { %v1658_v0 = vcombine.low %v1650_v43, %v1654_v46  ;;  %v1659_v1 = vcombine.high %v1650_v43, %v1654_v46  ;;  %v1681_v43 = vrot.slane %v1652_v42, %v11393_v7 }
  0x9f   : > { %v1666_v22 = vrot.slane %v1658_v0, %v11393_v7  ;;  %v1673_v28 = vrot.slane %v1659_v1, %v11393_v7 }
  0xa0   : > { %v2190_v24 = vpop.permute.xlu1 %2189  ;;  %v2192_v29 = vpop.permute.xlu0 %2191 }
  0xa1   : > { %v2212_v30 = vcombine.high %v2190_v24, %v11278_v18  ;;  %v2196_v51 = vcombine.low %v2188_v45, %v2192_v29  ;;  %v2197_v52 = vcombine.high %v2188_v45, %v2192_v29  ;;  %v11638_v55 = vrot.slane %v2190_v24, %v11393_v7 }
  0xa2   : > { %v1688_v29 = vrot.slane %v1674_v17, %v11393_v7 }
  0xa3   : > { %v2226_v56 = vrot.slane %v2212_v30, %v11393_v7  ;;  %v11642_v57 = vrot.slane %v2196_v51, %v11393_v7  ;;  %v2211_v58 = vrot.slane %v2197_v52, %v11393_v7  ;;  %v1690_v52 = vcombine.high %v1666_v22, %v1681_v43 }
  0xa4   : > { %v11645_v60 = vpop.permute.xlu1 %1533  ;;  %v11647_v61 = vpop.permute.xlu0 %1531 }
  0xa5   : > { %v2228_v63 = vcombine.high %v11642_v57, %v11638_v55  ;;  %v2243_v13 = vcombine.low %v2211_v58, %v2226_v56  ;;  %v2244_v32 = vcombine.high %v2211_v58, %v2226_v56  ;;  %v1706_v56 = vcombine.high %v1673_v28, %v1688_v29 }
  0xa7   : > { %v11656_v6 = vrot.slane %v2228_v63, %v11415_v20  ;;  %v11670_v31 = vrot.slane %v2243_v13, %v11415_v20  ;;  %v11683_v42 = vrot.slane %v2244_v32, %v11415_v20  ;;  %v1704_v13 = vrot.slane %v1690_v52, %v11415_v20 }
  0xa8   : > { %v11651_v4 = vpop.permute.xlu1 %1537  ;;  %v11653_v5 = vpop.permute.xlu0 %1535 }
  0xa9   : > { %v1559_v14 = vcombine.low %v11645_v60, %v11651_v4  ;;  %v1543_v15 = vcombine.low %v11647_v61, %v11653_v5  ;;  %2268 = vrot.lane.b32.xlu0 %v11656_v6, %s11280_s30 }
  0xab   : > { %v1567_v25 = vrot.slane %v1559_v14, %v11393_v7  ;;  %v1551_v27 = vrot.slane %v1543_v15, %v11393_v7  ;;  %v1705_v14 = vcombine.low %v1673_v28, %v1688_v29  ;;  %v2227_v15 = vcombine.low %v11642_v57, %v11638_v55 }
  0xac   : > { %v937_v37 = vpop.permute.xlu0 %936  ;;  %v941_v38 = vpop.permute.xlu1 %940  ;;  %v1689_v28 = vcombine.low %v1666_v22, %v1681_v43  ;;  %v9557_v22 = vld [vmem:[%s14631_s4 + $0x50] sm:$0xff] }
  0xad   : > { %v1575_v45 = vcombine.low %v1551_v27, %v1567_v25  ;;  %v1576_v46 = vcombine.high %v1551_v27, %v1567_v25  ;;  %v963_v24 = vsel %vm622_vm2, %v11429_v26, %v937_v37  ;;  %2276 = vrot.lane.b32.xlu0 %v11670_v31, %s11282_s11  ;;  %v1720_v25 = vrot.slane %v1706_v56, %v11415_v20 }
  0xae   : > { %v964_v30 = vsel %vm624_vm3, %v963_v24, %v941_v38  ;;  %v11707_v57 = vrot.slane %v2227_v15, %v11415_v20  ;;  %v11722_v43 = vrot.slane %v1689_v28, %v11415_v20 }
  0xaf   : > { %v11680_v51 = vrot.slane %v1576_v46, %v11415_v20  ;;  %v11686_v58 = vrot.slane %v1575_v45, %v11415_v20  ;;  %v1713_v45 = vrot.slane %v1705_v14, %v11415_v20  ;;  %v1724_v55 = vcombine.high %v1720_v25, %v11278_v18 }
  0xb0   : > { %v945_v26 = vpop.permute.xlu0 %944  ;;  %v949_v63 = vpop.permute.xlu1 %948  ;;  %v2259_v52 = vcombine.high %v11707_v57, %v11278_v18  ;;  %v2260_v14 = vcombine.high %v11656_v6, %v11278_v18  ;;  %v11758_v6 = vrot.slane %v2741_v53, %v11415_v20 }
  0xb1   : > { %1616 = vrot.lane.b32.xlu1 %v11680_v51, %s11280_s30  ;;  %v965_v0 = vsel %vm626_vm4, %v964_v30, %v945_v26  ;;  %2284 = vrot.lane.b32.xlu0 %v11683_v42, %s11284_s13  ;;  %v1607_v17 = vcombine.high %v11686_v58, %v11278_v18  ;;  %v9556_v30 = vld [vmem:[%s14631_s4 + $0x48] sm:$0xff] }
  0xb2   : > { %v966_v1 = vsel %vm628_vm5, %v965_v0, %v949_v63  ;;  %v9558_v63 = vld [vmem:[%s14631_s4 + $0x58] sm:$0xff]  ;;  %v9559_v0 = vld [vmem:[%s14631_s4 + $0x60] sm:$0xff] }
  0xb4   : > { %v953_v27 = vpop.permute.xlu0 %952  ;;  %v957_v32 = vpop.permute.xlu1 %956 }
  0xb5   : > { %1730 = vrot.lane.b32.xlu1 %v1704_v13, %s11280_s30  ;;  %v967_v37 = vsel %vm630_vm6, %v966_v1, %v953_v27  ;;  %1612 = vrot.lane.b32.xlu0 %v1607_v17, %s11279_s26  ;;  %v1721_v1 = vcombine.high %v11722_v43, %v11278_v18 }
  0xb6   : > { %v968_v38 = vsel %vm632_vm7, %v967_v37, %v957_v32  ;;  %v1722_v32 = vcombine.high %v1704_v13, %v11278_v18  ;;  %v9561_v37 = vld [vmem:[%s14631_s4 + $0x70] sm:$0xff]  ;;  %v2773_v13 = vcombine.high %v11758_v6, %v11278_v18 }
  0xb8   : > { %v961_v46 = vpop.permute.xlu0 %960  ;;  %v11709_v24 = vpop.permute.xlu1 %2069 }
  0xb9   : > { %1738 = vrot.lane.b32.xlu1 %v1713_v45, %s11282_s11  ;;  %v969_v29 = vsel %vm634_vm8, %v968_v38, %v961_v46  ;;  %1750 = vrot.lane.b32.xlu0 %v1724_v55, %s11285_s14  ;;  %v2261_v38 = vcombine.high %v11670_v31, %v11278_v18  ;;  %v1560_v31 = vcombine.high %v11645_v60, %v11651_v4 }
  0xba   : > { %10476 = vmatprep.subr.msk.mxu1 %vm1279_vm9, %v969_v29  ;;  %v2756_v60 = vrot.slane %v2742_v62, %v11415_v20 }
  0xbb   : > { %10477 = vmatpush3.msk.msra.mxu1 %vm1279_vm9, %v969_v29  ;;  %v1544_v29 = vcombine.high %v11647_v61, %v11653_v5  ;;  %v1574_v4 = vrot.slane %v1560_v31, %v11393_v7  ;;  %v749_v31 = vld [vmem:[%s14631_s4 + $0x18] sm:$0xff] }
  0xbc   : > { %v11727_v56 = vpop.permute.xlu0 %2071  ;;  %v11729_v26 = vpop.permute.xlu1 %2073  ;;  %10479 = vmatmul.mubr.msk.f32.vlgmr.msra.gmra.mrb[0].mxu1 %vm1254_vm0, %v9556_v30  ;;  %v1723_v30 = vcombine.high %v1713_v45, %v11278_v18  ;;  %v2262_v45 = vcombine.high %v11683_v42, %v11278_v18  ;;  %v2774_v62 = vcombine.high %v2756_v60, %v11278_v18  ;;  %v11815_v42 = vld [vmem:[%s11381_s20 + $0x11] sm:$0xff] }
  0xbd   : > { %1746 = vrot.lane.b32.xlu1 %v1720_v25, %s11284_s13  ;;  %10481 = vmatprep.mubr.msk.f32.mxu1 %vm1254_vm0, %v9557_v22  ;;  %v9560_v25 = vld [vmem:[%s14631_s4 + $0x68] sm:$0xff]  ;;  %v746_v22 = vld [vmem:[%s14631_s4] sm:$0xff]  ;;  %v1558_v5 = vrot.slane %v1544_v29, %v11393_v7 }
  0xbe   : > { %2264 = vrot.lane.b32.xlu0 %v2259_v52, %s11279_s26 }
  0xc0   : > { %v11745_v15 = vpop.permute.xlu0 %2075  ;;  %v705_v17 = vpop.permute.xlu1 %704  ;;  %10482 = vmatmul.mubr.msk.f32.gmra.mrb[2].mxu1 %vm1254_vm0, %v9558_v63 }
  0xc1   : > { %1726 = vrot.lane.b32.xlu1 %v1721_v1, %s11279_s26  ;;  %10484 = vmatprep.mubr.msk.f32.mxu1 %vm1254_vm0, %v9559_v0  ;;  %v731_v27 = vsel %vm622_vm2, %v11480_v54, %v705_v17  ;;  %v9562_v54 = vld [vmem:[%s14631_s4 + $0x78] sm:$0xff]  ;;  %v11802_v17 = vld [vmem:[%s11381_s20 + $0x1] sm:$0xff] }
  0xc2   : > { %2272 = vrot.lane.b32.xlu0 %v2260_v14, %s11281_s10 }
  0xc4   : > { %v709_v28 = vpop.permute.xlu0 %708  ;;  %v713_v55 = vpop.permute.xlu1 %712  ;;  %10485 = vmatmul.mubr.msk.f32.gmra.mrb[4].mxu1 %vm1254_vm0, %v9560_v25  ;;  %v11805_v25 = vld [vmem:[%s11381_s20 + $0x21] sm:$0xff] }
  0xc5   : > { %1734 = vrot.lane.b32.xlu1 %v1722_v32, %s11281_s10  ;;  %v732_v53 = vsel %vm624_vm3, %v731_v27, %v709_v28  ;;  %10487 = vmatprep.mubr.msk.f32.mxu1 %vm1254_vm0, %v9561_v37  ;;  %v4813_v50 = vcombine.low %v11802_v17, %v11805_v25  ;;  %v747_v32 = vld [vmem:[%s14631_s4 + $0x8] sm:$0xff]  ;;  %v1608_v37 = vcombine.high %v11680_v51, %v11278_v18  ;;  %v748_v28 = vld [vmem:[%s14631_s4 + $0x10] sm:$0xff] }
  0xc6   : > { %2280 = vrot.lane.b32.xlu0 %v2261_v38, %s11283_s12  ;;  %v733_v46 = vsel %vm626_vm4, %v732_v53, %v713_v55  ;;  %v1591_v38 = vcombine.low %v1558_v5, %v1574_v4  ;;  %v11831_v53 = vrot.slane %v11815_v42, %v11393_v7 }
  0xc7   : > { %v11827_v55 = vrot.slane %v4813_v50, %v11393_v7 }
  0xc8   : > { %v717_v52 = vpop.permute.xlu0 %716  ;;  %v721_v63 = vpop.permute.xlu1 %720  ;;  %10488 = vmatmul.mubr.msk.f32.gmra.mrb[6].mxu1 %vm1254_vm0, %v9562_v54  ;;  %v1599_v29 = vrot.slane %v1591_v38, %v11415_v20  ;;  %v4829_v38 = vcombine.high %v11815_v42, %v11278_v18 }
  0xc9   : > { %1742 = vrot.lane.b32.xlu1 %v1723_v30, %s11283_s12  ;;  %v734_v0 = vsel %vm628_vm5, %v733_v46, %v717_v52  ;;  %10492 = vmatprep.mubr.msk.f32.mxu1 %vm1254_vm0, %v746_v22  ;;  %v4844_v51 = vcombine.low %v11827_v55, %v11831_v53  ;;  %v2765_v46 = vrot.slane %v2757_v12, %v11415_v20  ;;  %v750_v30 = vld [vmem:[%s14631_s4 + $0x20] sm:$0xff] }
  0xca   : > { %2778 = vrot.lane.b32.xlu0 %v2773_v13, %s11279_s26  ;;  %v735_v61 = vsel %vm630_vm6, %v734_v0, %v721_v63  ;;  %v1609_v63 = vcombine.high %v1599_v29, %v11278_v18  ;;  %v1592_v0 = vcombine.high %v1558_v5, %v1574_v4  ;;  %v752_v4 = vld [vmem:[%s14631_s4 + $0x30] sm:$0xff]  ;;  %v2772_v5 = vrot.slane %v2758_v21, %v11415_v20 }
  0xcb   : > { %v2775_v12 = vcombine.high %v2765_v46, %v11278_v18 }
  0xcc   : > { %v725_v1 = vpop.permute.xlu0 %724  ;;  %v729_v14 = vpop.permute.xlu1 %728  ;;  %v1606_v50 = vrot.slane %v1592_v0, %v11415_v20  ;;  %v2776_v0 = vcombine.high %v2772_v5, %v11278_v18 }
  0xcd   : > { %2288 = vrot.lane.b32.xlu1 %v2262_v45, %s11285_s14  ;;  %v736_v49 = vsel %vm632_vm7, %v735_v61, %v725_v1  ;;  %v2097_v45 = vcombine.low %v11727_v56, %v11745_v15  ;;  %v2081_v1 = vcombine.low %v11709_v24, %v11729_v26 }
  0xce   : > { %2782 = vrot.lane.b32.xlu0 %v2756_v60, %s11280_s30  ;;  %v737_v27 = vsel %vm634_vm8, %v736_v49, %v729_v14  ;;  %v751_v60 = vld [vmem:[%s14631_s4 + $0x28] sm:$0xff] }
  0xcf   : > { %10490 = vmatprep.subr.msk.mxu1 %vm1279_vm9, %v737_v27  ;;  %v2105_v9 = vrot.slane %v2097_v45, %v11393_v7  ;;  %v2089_v10 = vrot.slane %v2081_v1, %v11393_v7  ;;  %v11927_v1 = vld [vmem:[%s11410_s25 + $0xe0] sm:$0xff] }
  0xd0   : > { %v11833_v54 = vpop.permute.xlu0 %3753  ;;  %v11835_v13 = vpop.permute.xlu1 %3757  ;;  %10491 = vmatpush3.msk.msra.mxu1 %vm1279_vm9, %v737_v27  ;;  %v753_v27 = vld [vmem:[%s14631_s4 + $0x38] sm:$0xff] }
  0xd1   : > { %1620 = vrot.lane.b32.xlu1 %v1608_v37, %s11281_s10  ;;  %10493 = vmatmul.mubr.msk.f32.vlgmr.msra.gmra.mrb[0].mxu1 %vm1254_vm0, %v747_v32  ;;  %v4814_v32 = vcombine.high %v11802_v17, %v11805_v25 }
  0xd2   : > { %2786 = vrot.lane.b32.xlu0 %v2774_v62, %s11281_s10  ;;  %10495 = vmatprep.mubr.msk.f32.mxu1 %vm1254_vm0, %v748_v28 }
  0xd4   : > { %v11855_v22 = vpop.permute.xlu0 %3755  ;;  %v835_v52 = vpop.permute.xlu1 %834 }
  0xd5   : > { %1624 = vrot.lane.b32.xlu1 %v1599_v29, %s11282_s11  ;;  %10496 = vmatmul.mubr.msk.f32.gmra.mrb[2].mxu1 %vm1254_vm0, %v749_v31  ;;  %v861_v62 = vsel %vm622_vm2, %v11519_v19, %v835_v52  ;;  %v9598_v19 = vld [vmem:[%s14631_s4 + $0x80] sm:$0xff]  ;;  %v1610_v31 = vcombine.high %v1606_v50, %v11278_v18  ;;  %v2113_v52 = vcombine.low %v2089_v10, %v2105_v9 }
  0xd6   : > { %2790 = vrot.lane.b32.xlu0 %v2765_v46, %s11282_s11  ;;  %10498 = vmatprep.mubr.msk.f32.mxu1 %vm1254_vm0, %v750_v30  ;;  %v11907_v46 = vrot.slane %v4814_v32, %v11393_v7  ;;  %v11911_v29 = vld [vmem:[%s11410_s25 + $0xc0] sm:$0xff]  ;;  %v11915_v30 = vrot.slane %v4829_v38, %v11393_v7 }
  0xd8   : > { %v839_v14 = vpop.permute.xlu0 %838  ;;  %v11872_v49 = vpop.permute.xlu1 %4291 }
  0xd9   : > { %1628 = vrot.lane.b32.xlu1 %v1609_v63, %s11283_s12  ;;  %10499 = vmatmul.mubr.msk.f32.gmra.mrb[4].mxu1 %vm1254_vm0, %v751_v60  ;;  %v862_v28 = vsel %vm624_vm3, %v861_v62, %v839_v14  ;;  %v11930_v14 = vrot.slane %v2113_v52, %v11415_v20 }
  0xda   : > { %2794 = vrot.lane.b32.xlu0 %v2775_v12, %s11283_s12  ;;  %10501 = vmatprep.mubr.msk.f32.mxu1 %vm1254_vm0, %v752_v4 }
  0xdc   : > { %v843_v21 = vpop.permute.xlu0 %842  ;;  %v11895_v37 = vpop.permute.xlu1 %4293 }
  0xdd   : > { %1632 = vrot.lane.b32.xlu1 %v1606_v50, %s11284_s13  ;;  %10502 = vmatmul.mubr.msk.f32.gmra.mrb[6].mxu1 %vm1254_vm0, %v753_v27  ;;  %v863_v60 = vsel %vm626_vm4, %v862_v28, %v843_v21  ;;  %v11943_v27 = vrot.slane %v3255_v23, %v11415_v20 }
  0xde   : > { %2798 = vrot.lane.b32.xlu0 %v2772_v5, %s11284_s13  ;;  %10520 = vmatprep.mubr.msk.f32.mxu1 %vm1254_vm0, %v9598_v19  ;;  %v11937_v5 = vld [vmem:[%s11410_s25 + $0xd0] sm:$0xff]  ;;  %v2145_v19 = vcombine.high %v11930_v14, %v11278_v18 }
  0xdf   : > { %v3287_v23 = vcombine.high %v11943_v27, %v11278_v18 }
  0xe0   : > { %v847_v12 = vpop.permute.xlu0 %846  ;;  %v11917_v63 = vpop.permute.xlu1 %599 }
  0xe1   : > { %1636 = vrot.lane.b32.xlu1 %v1610_v31, %s11285_s14  ;;  %v864_v4 = vsel %vm628_vm5, %v863_v60, %v847_v12  ;;  %v11954_v31 = vld [vmem:[%s11410_s25 + $0xf0] sm:$0xff]  ;;  %v2098_v12 = vcombine.high %v11727_v56, %v11745_v15  ;;  %v2114_v60 = vcombine.high %v2089_v10, %v2105_v9 }
  0xe2   : > { %4173 = vrot.lane.b32.xlu0 %v11911_v29, %s11276_s21  ;;  %v9531_v56 = vld [vmem:[%s14630_s3 + $0x50] sm:$0xff] }
  0xe3   : > { %v2128_v9 = vrot.slane %v2114_v60, %v11415_v20 }
  0xe4   : > { %v851_v50 = vpop.permute.xlu0 %850  ;;  %v604_v62 = vpop.permute.xlu1 %603 }
  0xe5   : > { %2802 = vrot.lane.b32.xlu1 %v2776_v0, %s11285_s14  ;;  %v865_v32 = vsel %vm630_vm6, %v864_v4, %v851_v50  ;;  %v2082_v0 = vcombine.high %v11709_v24, %v11729_v26  ;;  %v3270_v24 = vrot.slane %v3256_v59, %v11415_v20  ;;  %v2112_v26 = vrot.slane %v2098_v12, %v11393_v7  ;;  %v9532_v59 = vld [vmem:[%s14630_s3 + $0x58] sm:$0xff] }
  0xe6   : > { %4177 = vrot.lane.b32.xlu0 %v11927_v1, %s11276_s21  ;;  %v2146_v12 = vcombine.high %v2128_v9, %v11278_v18 }
  0xe7   : > { %v2096_v15 = vrot.slane %v2082_v0, %v11393_v7 }
  0xe8   : > { %v855_v38 = vpop.permute.xlu0 %854  ;;  %v608_v28 = vpop.permute.xlu1 %607 }
  0xe9   : > { %4175 = vrot.lane.b32.xlu1 %v11937_v5, %s11276_s21  ;;  %v866_v52 = vsel %vm632_vm7, %v865_v32, %v855_v38  ;;  %v9530_v32 = vld [vmem:[%s14630_s3 + $0x48] sm:$0xff]  ;;  %v3288_v38 = vcombine.high %v3270_v24, %v11278_v18  ;;  %v2129_v0 = vcombine.low %v2096_v15, %v2112_v26 }
  0xea   : > { %2150 = vrot.lane.b32.xlu0 %v2145_v19, %s11279_s26 }
  0xec   : > { %v859_v4 = vpop.permute.xlu0 %858  ;;  %v612_v19 = vpop.permute.xlu1 %611 }
  0xed   : > { %4179 = vrot.lane.b32.xlu1 %v11954_v31, %s11276_s21  ;;  %v867_v50 = vsel %vm634_vm8, %v866_v52, %v859_v4  ;;  %v5327_v52 = vcombine.low %v11990_v48, %v11987_v47  ;;  %v9533_v4 = vld [vmem:[%s14630_s3 + $0x60] sm:$0xff] }
  0xee   : > { %3292 = vrot.lane.b32.xlu0 %v3287_v23, %s11279_s26  ;;  %10448 = vmatprep.subr.msk.mxu0 %vm1004_vm10, %v867_v50  ;;  %v11999_v23 = vld [vmem:[%s11381_s20 + $0x41] sm:$0xff] }
  0xef   : > { %10449 = vmatpush3.msk.msra.mxu0 %vm1004_vm10, %v867_v50  ;;  %v12009_v50 = vrot.slane %v11999_v23, %v11393_v7 }
  0xf0   : > { %v11982_v10 = vpop.permute.xlu0 %4295  ;;  %10451 = vmatmul.mubr.msk.f32.vlgmr.msra.gmra.mrb[0].mxu0 %vm979_vm1, %v9530_v32  ;;  %v616_v60 = vpop.permute.xlu1 %615 }
  0xf1   : > { %2154 = vrot.lane.b32.xlu1 %v2128_v9, %s11280_s30  ;;  %10453 = vmatprep.mubr.msk.f32.mxu0 %vm979_vm1, %v9531_v56  ;;  %v9534_v56 = vld [vmem:[%s14630_s3 + $0x68] sm:$0xff]  ;;  %v3279_v9 = vrot.slane %v3271_v8, %v11415_v20 }
  0xf2   : > { %3296 = vrot.lane.b32.xlu0 %v3270_v24, %s11280_s30  ;;  %v12013_v24 = vrot.slane %v5327_v52, %v11393_v7  ;;  %v2137_v52 = vrot.slane %v2129_v0, %v11415_v20  ;;  %v9536_v0 = vld [vmem:[%s14630_s3 + $0x78] sm:$0xff] }
  0xf4   : > { %v596_v32 = vpop.permute.xlu0 %595  ;;  %10454 = vmatmul.mubr.msk.f32.gmra.mrb[2].mxu0 %vm979_vm1, %v9532_v59 }
  0xf5   : > { %2158 = vrot.lane.b32.xlu1 %v2146_v12, %s11281_s10  ;;  %v623_v21 = vsel %vm622_vm2, %v11592_v11, %v596_v32  ;;  %10456 = vmatprep.mubr.msk.f32.mxu0 %vm979_vm1, %v9533_v4  ;;  %v620_v11 = vpop.permute.xlu1 %619  ;;  %v2130_v4 = vcombine.high %v2096_v15, %v2112_v26  ;;  %v3286_v26 = vrot.slane %v3272_v16, %v11415_v20  ;;  %v740_v15 = vld [vmem:[%s14630_s3 + $0x10] sm:$0xff] }
  0xf6   : > { %3300 = vrot.lane.b32.xlu0 %v3288_v38, %s11281_s10  ;;  %v625_v12 = vsel %vm624_vm3, %v623_v21, %v11917_v63  ;;  %v9535_v38 = vld [vmem:[%s14630_s3 + $0x70] sm:$0xff]  ;;  %v3289_v63 = vcombine.high %v3279_v9, %v11278_v18 }
  0xf7   : > { %v627_v45 = vsel %vm626_vm4, %v625_v12, %v604_v62  ;;  %v2147_v62 = vcombine.high %v2137_v52, %v11278_v18 }
  0xf8   : > { %10457 = vmatmul.mubr.msk.f32.gmra.mrb[4].mxu0 %vm979_vm1, %v9534_v56  ;;  %v629_v8 = vsel %vm628_vm5, %v627_v45, %v608_v28  ;;  %v738_v56 = vld [vmem:[%s14630_s3] sm:$0xff] }
  0xf9   : > { %2162 = vrot.lane.b32.xlu1 %v2137_v52, %s11282_s11  ;;  %v631_v21 = vsel %vm630_vm6, %v629_v8, %v612_v19  ;;  %10459 = vmatprep.mubr.msk.f32.mxu0 %vm979_vm1, %v9535_v38  ;;  %v739_v19 = vld [vmem:[%s14630_s3 + $0x8] sm:$0xff]  ;;  %v5343_v52 = vcombine.high %v11999_v23, %v11278_v18  ;;  %v3762_v38 = vcombine.low %v11833_v54, %v11835_v13 }
  0xfa   : > { %3304 = vrot.lane.b32.xlu0 %v3279_v9, %s11282_s11  ;;  %v633_v32 = vsel %vm632_vm7, %v631_v21, %v616_v60  ;;  %v2144_v60 = vrot.slane %v2130_v4, %v11415_v20  ;;  %v5328_v9 = vcombine.high %v11990_v48, %v11987_v47  ;;  %v744_v21 = vld [vmem:[%s14630_s3 + $0x30] sm:$0xff] }
  0xfb   : > { %v635_v28 = vsel %vm634_vm8, %v633_v32, %v620_v11  ;;  %v12089_v12 = vrot.slane %v5343_v52, %v11393_v7  ;;  %v3770_v4 = vrot.slane %v3762_v38, %v11393_v7  ;;  %v12117_v32 = vrot.slane %v2639_v36, %v11415_v20  ;;  %v9581_v36 = vld [vmem:[%s14630_s3 + $0x80] sm:$0xff]  ;;  %v12164_v52 = vld [vmem:[%s11410_s25 + $0x11] sm:$0xff] }
  0xfc   : > { %10460 = vmatmul.mubr.msk.f32.gmra.mrb[6].mxu0 %vm979_vm1, %v9536_v0  ;;  %10462 = vmatprep.subr.msk.mxu0 %vm1004_vm10, %v635_v28  ;;  %v12086_v16 = vrot.slane %v5328_v9, %v11393_v7  ;;  %v2148_v8 = vcombine.high %v2144_v60, %v11278_v18  ;;  %v3290_v0 = vcombine.high %v3286_v26, %v11278_v18  ;;  %v12161_v9 = vld [vmem:[%s11410_s25 + $0x21] sm:$0xff] }
  0xfd   : > { %2166 = vrot.lane.b32.xlu1 %v2147_v62, %s11283_s12  ;;  %10463 = vmatpush3.msk.msra.mxu0 %vm1004_vm10, %v635_v28  ;;  %v3785_v62 = vrot.slane %v11855_v22, %v11393_v7  ;;  %v2654_v28 = vrot.slane %v2640_v35, %v11415_v20  ;;  %v2671_v33 = vcombine.high %v12117_v32, %v11278_v18 }
  0xfe   : > { %3308 = vrot.lane.b32.xlu0 %v3289_v63, %s11283_s12  ;;  %10464 = vmatprep.mubr.msk.f32.mxu0 %vm979_vm1, %v738_v56  ;;  %v743_v63 = vld [vmem:[%s14630_s3 + $0x28] sm:$0xff]  ;;  %v3122_v11 = vcombine.high %v11911_v29, %v11927_v1 }
  0xff   : > { %v3793_v56 = vcombine.low %v3770_v4, %v3785_v62  ;;  %v2672_v34 = vcombine.high %v2654_v28, %v11278_v18 }
 0x100   : > { %10465 = vmatmul.mubr.msk.f32.vlgmr.msra.gmra.mrb[0].mxu0 %vm979_vm1, %v739_v19 }
 0x101   : > { %2170 = vrot.lane.b32.xlu1 %v2144_v60, %s11284_s13  ;;  %10467 = vmatprep.mubr.msk.f32.mxu0 %vm979_vm1, %v740_v15  ;;  %v12143_v35 = vrot.slane %v3793_v56, %v11415_v20  ;;  %v3763_v15 = vcombine.high %v11833_v54, %v11835_v13  ;;  %v2663_v60 = vrot.slane %v2655_v41, %v11415_v20 }
 0x102   : > { %3312 = vrot.lane.b32.xlu0 %v3286_v26, %s11284_s13  ;;  %v12149_v26 = vld [vmem:[%s11410_s25 + $0x1] sm:$0xff]  ;;  %v3121_v56 = vcombine.low %v11911_v29, %v11927_v1  ;;  %v3136_v1 = vrot.slane %v3122_v11, %v11393_v7 }
 0x103   : > { %v4710_v54 = vcombine.low %v12149_v26, %v12161_v9 }
 0x104   : > { %10468 = vmatmul.mubr.msk.f32.gmra.mrb[2].mxu0 %vm979_vm1, %v741_v2  ;;  %v12167_v2 = vld [vmem:[%s11410_s25 + $0x31] sm:$0xff] }
 0x105   : > { %2174 = vrot.lane.b32.xlu1 %v2148_v8, %s11285_s14  ;;  %10470 = vmatprep.mubr.msk.f32.mxu0 %vm979_vm1, %v742_v3  ;;  %v3794_v3 = vcombine.high %v3770_v4, %v3785_v62  ;;  %v4726_v13 = vcombine.low %v12164_v52, %v12167_v2  ;;  %v12177_v41 = vrot.slane %v4710_v54, %v11393_v7 }
 0x106   : > { %5856 = vrot.lane.b32.xlu0 %v11802_v17, %s11276_s21  ;;  %v745_v17 = vld [vmem:[%s14630_s3 + $0x38] sm:$0xff]  ;;  %v3129_v54 = vrot.slane %v3121_v56, %v11393_v7 }
 0x107   : > { %v12180_v38 = vrot.slane %v4726_v13, %v11393_v7  ;;  %v3808_v62 = vrot.slane %v3794_v3, %v11415_v20 }
 0x108   : > { %10471 = vmatmul.mubr.msk.f32.gmra.mrb[4].mxu0 %vm979_vm1, %v743_v63 }
 0x109   : > { %3316 = vrot.lane.b32.xlu1 %v3290_v0, %s11285_s14  ;;  %10473 = vmatprep.mubr.msk.f32.mxu0 %vm979_vm1, %v744_v21  ;;  %v2673_v0 = vcombine.high %v2663_v60, %v11278_v18  ;;  %v3777_v21 = vrot.slane %v3763_v15, %v11393_v7  ;;  %v4711_v15 = vcombine.high %v12149_v26, %v12161_v9 }
 0x10a   : > { %5858 = vrot.lane.b32.xlu0 %v11815_v42, %s11276_s21  ;;  %v12145_v42 = vpop.permute.xlu0 %3635 }
 0x10b   : > { %v12214_v39 = vrot.slane %v4711_v15, %v11393_v7 }
 0x10c   : > { %10474 = vmatmul.mubr.msk.f32.gmra.mrb[6].mxu0 %vm979_vm1, %v745_v17  ;;  %v12191_v17 = vpop.permute.xlu1 %3637 }
 0x10d   : > { %5860 = vrot.lane.b32.xlu1 %v11805_v25, %s11276_s21  ;;  %10506 = vmatprep.mubr.msk.f32.mxu0 %vm979_vm1, %v9581_v36  ;;  %v3778_v25 = vcombine.high %v11855_v22, %v11278_v18  ;;  %v3825_v22 = vcombine.high %v12143_v35, %v11278_v18  ;;  %v2670_v36 = vrot.slane %v2656_v44, %v11415_v20 }
 0x10e   : > { %2680 = vrot.lane.b32.xlu0 %v2654_v28, %s11280_s30  ;;  %v12183_v8 = vpop.permute.xlu0 %3639 }
 0x10f   : > { %v3792_v63 = vrot.slane %v3778_v25, %v11393_v7  ;;  %v3826_v25 = vcombine.high %v3808_v62, %v11278_v18  ;;  %v2674_v44 = vcombine.high %v2670_v36, %v11278_v18 }
 0x111   : > { %2676 = vrot.lane.b32.xlu1 %v2671_v33, %s11279_s26  ;;  %v3137_v33 = vcombine.low %v11937_v5, %v11954_v31  ;;  %v3810_v3 = vcombine.high %v3777_v21, %v3792_v63 }
 0x112   : > { %2684 = vrot.lane.b32.xlu0 %v2672_v34, %s11281_s10  ;;  %v3809_v34 = vcombine.low %v3777_v21, %v3792_v63 }
 0x113   : > { %v3145_v13 = vrot.slane %v3137_v33, %v11393_v7  ;;  %v3824_v15 = vrot.slane %v3810_v3, %v11415_v20 }
 0x114   : > { %v3817_v63 = vrot.slane %v3809_v34, %v11415_v20  ;;  %v4323_v34 = vrot.slane %v11895_v37, %v11393_v7 }
 0x115   : > { %3830 = vrot.lane.b32.xlu1 %v3825_v22, %s11279_s26  ;;  %v3828_v4 = vcombine.high %v3824_v15, %v11278_v18 }
 0x116   : > { %2688 = vrot.lane.b32.xlu0 %v2663_v60, %s11282_s11  ;;  %v4727_v60 = vcombine.high %v12164_v52, %v12167_v2  ;;  %v3827_v33 = vcombine.high %v3817_v63, %v11278_v18 }
 0x118   : > { %v12217_v40 = vrot.slane %v4727_v60, %v11393_v7 }
 0x119   : > { %3834 = vrot.lane.b32.xlu1 %v3808_v62, %s11280_s30  ;;  %v4300_v62 = vcombine.low %v11872_v49, %v11982_v10 }
 0x11a   : > { %2692 = vrot.lane.b32.xlu0 %v2673_v0, %s11283_s12  ;;  %v12223_v0 = vpop.permute.xlu1 %3641 }
 0x11b   : > { %v12210_v22 = vpop.permute.xlu0 %2268  ;;  %v4308_v60 = vrot.slane %v4300_v62, %v11393_v7 }
 0x11d   : > { %3838 = vrot.lane.b32.xlu1 %v3826_v25, %s11281_s10  ;;  %v4331_v28 = vcombine.low %v4308_v60, %v4323_v34  ;;  %v4332_v59 = vcombine.high %v4308_v60, %v4323_v34 }
 0x11e   : > { %2696 = vrot.lane.b32.xlu0 %v2670_v36, %s11284_s13  ;;  %v3153_v36 = vcombine.low %v3129_v54, %v3145_v13 }
 0x11f   : > { %v12230_v25 = vpop.permute.xlu0 %2276 }
 0x120   : > { %v12247_v3 = vrot.slane %v3153_v36, %v11415_v20  ;;  %v12259_v36 = vrot.slane %v4331_v28, %v11415_v20  ;;  %v4301_v28 = vcombine.high %v11872_v49, %v11982_v10 }
 0x121   : > { %3842 = vrot.lane.b32.xlu1 %v3817_v63, %s11282_s11  ;;  %v3154_v63 = vcombine.high %v3129_v54, %v3145_v13  ;;  %v4346_v13 = vrot.slane %v4332_v59, %v11415_v20 }
 0x122   : > { %2700 = vrot.lane.b32.xlu0 %v2674_v44, %s11285_s14  ;;  %v3185_v62 = vcombine.high %v12247_v3, %v11278_v18  ;;  %v4315_v49 = vrot.slane %v4301_v28, %v11393_v7 }
 0x123   : > { %v12235_v56 = vpop.permute.xlu1 %1616  ;;  %v12241_v21 = vpop.permute.xlu0 %2284  ;;  %v3168_v29 = vrot.slane %v3154_v63, %v11415_v20  ;;  %v4364_v59 = vcombine.high %v4346_v13, %v11278_v18 }
 0x125   : > { %3846 = vrot.lane.b32.xlu1 %v3827_v33, %s11283_s12  ;;  %v3186_v11 = vcombine.high %v3168_v29, %v11278_v18 }
 0x126   : > { %3854 = vrot.lane.b32.xlu0 %v3828_v4, %s11285_s14 }
 0x127   : > { %v1731_v44 = vpop.permute.xlu1 %1730  ;;  %v12251_v19 = vpop.permute.xlu0 %1612 }
 0x129   : > { %3850 = vrot.lane.b32.xlu1 %v3824_v15, %s11284_s13  ;;  %v3138_v15 = vcombine.high %v11937_v5, %v11954_v31 }
 0x12a   : > { %6398 = vrot.lane.b32.xlu0 %v11987_v47, %s11276_s21  ;;  %v4316_v47 = vcombine.high %v11895_v37, %v11278_v18 }
 0x12b   : > { %v1739_v33 = vpop.permute.xlu1 %1738  ;;  %v1751_v4 = vpop.permute.xlu0 %1750  ;;  %v3152_v5 = vrot.slane %v3138_v15, %v11393_v7 }
 0x12c   : > { %v4330_v37 = vrot.slane %v4316_v47, %v11393_v7 }
 0x12d   : > { %6394 = vrot.lane.b32.xlu1 %v11990_v48, %s11276_s21  ;;  %v4363_v48 = vcombine.high %v12259_v36, %v11278_v18  ;;  %v3169_v34 = vcombine.low %v3136_v1, %v3152_v5 }
 0x12e   : > { %3190 = vrot.lane.b32.xlu0 %v3185_v62, %s11279_s26 }
 0x12f   : > { %v1747_v45 = vpop.permute.xlu1 %1746  ;;  %v3177_v47 = vrot.slane %v3169_v34, %v11415_v20 }
 0x130   : > { %v2265_v61 = vpop.permute.xlu0 %2264 }
 0x131   : > { %6396 = vrot.lane.b32.xlu1 %v11999_v23, %s11276_s21  ;;  %v2291_v10 = vsel %vm622_vm2, %v11707_v57, %v2265_v61  ;;  %v4347_v57 = vcombine.low %v4315_v49, %v4330_v37 }
 0x132   : > { %4368 = vrot.lane.b32.xlu0 %v4363_v48, %s11279_s26  ;;  %v2292_v60 = vsel %vm624_vm3, %v2291_v10, %v12210_v22 }
 0x133   : > { %v1727_v31 = vpop.permute.xlu1 %1726  ;;  %v4355_v10 = vrot.slane %v4347_v57, %v11415_v20 }
 0x134   : > { %v1753_v54 = vsel %vm622_vm2, %v11722_v43, %v1727_v31  ;;  %v2273_v23 = vpop.permute.xlu0 %2272 }
 0x135   : > { %3194 = vrot.lane.b32.xlu1 %v3168_v29, %s11280_s30  ;;  %v1754_v63 = vsel %vm624_vm3, %v1753_v54, %v1731_v44  ;;  %v2293_v61 = vsel %vm626_vm4, %v2292_v60, %v2273_v23  ;;  %v3187_v23 = vcombine.high %v3177_v47, %v11278_v18  ;;  %v3647_v60 = vcombine.low %v12145_v42, %v12183_v8 }
 0x136   : > { %4372 = vrot.lane.b32.xlu0 %v4346_v13, %s11280_s30  ;;  %v2294_v22 = vsel %vm628_vm5, %v2293_v61, %v12230_v25  ;;  %v3170_v13 = vcombine.high %v3136_v1, %v3152_v5  ;;  %v3663_v1 = vcombine.low %v12191_v17, %v12223_v0 }
 0x137   : > { %v1735_v62 = vpop.permute.xlu1 %1734  ;;  %v12337_v57 = vrot.slane %v3647_v60, %v11393_v7  ;;  %v9641_v60 = vld [vmem:[%s14631_s4 + $0xd0] sm:$0xff] }
 0x138   : > { %v1755_v43 = vsel %vm626_vm4, %v1754_v63, %v1735_v62  ;;  %v2281_v15 = vpop.permute.xlu0 %2280  ;;  %v9601_v62 = vld [vmem:[%s14631_s4 + $0x98] sm:$0xff]  ;;  %v12340_v61 = vrot.slane %v3663_v1, %v11393_v7 }
 0x139   : > { %3198 = vrot.lane.b32.xlu1 %v3186_v11, %s11281_s10  ;;  %v1756_v44 = vsel %vm628_vm5, %v1755_v43, %v1739_v33  ;;  %v2295_v48 = vsel %vm630_vm6, %v2294_v22, %v2281_v15  ;;  %v4348_v33 = vcombine.high %v4315_v49, %v4330_v37  ;;  %v4365_v37 = vcombine.high %v4355_v10, %v11278_v18 }
 0x13a   : > { %4376 = vrot.lane.b32.xlu0 %v4364_v59, %s11281_s10  ;;  %v2296_v34 = vsel %vm632_vm7, %v2295_v48, %v12241_v21  ;;  %v9600_v21 = vld [vmem:[%s14631_s4 + $0x90] sm:$0xff]  ;;  %v3184_v49 = vrot.slane %v3170_v13, %v11415_v20  ;;  %v9602_v59 = vld [vmem:[%s14631_s4 + $0xa0] sm:$0xff]  ;;  %v1639_v13 = vsel %vm622_vm2, %v11686_v58, %v12251_v19 }
 0x13b   : > { %v1743_v28 = vpop.permute.xlu1 %1742  ;;  %v4362_v15 = vrot.slane %v4348_v33, %v11415_v20 }
 0x13c   : > { %v1757_v29 = vsel %vm630_vm6, %v1756_v44, %v1743_v28  ;;  %v2779_v31 = vpop.permute.xlu0 %2778  ;;  %v9603_v44 = vld [vmem:[%s14631_s4 + $0xa8] sm:$0xff]  ;;  %v3679_v28 = vcombine.low %v12337_v57, %v12340_v61 }
 0x13d   : > { %v1758_v54 = vsel %vm632_vm7, %v1757_v29, %v1747_v45  ;;  %3202 = vrot.lane.b32.xlu1 %v3177_v47, %s11282_s11  ;;  %v9599_v45 = vld [vmem:[%s14631_s4 + $0x88] sm:$0xff]  ;;  %v3188_v47 = vcombine.high %v3184_v49, %v11278_v18  ;;  %v9604_v29 = vld [vmem:[%s14631_s4 + $0xb0] sm:$0xff] }
 0x13e   : > { %4380 = vrot.lane.b32.xlu0 %v4355_v10, %s11282_s11  ;;  %v1759_v25 = vsel %vm634_vm8, %v1758_v54, %v1751_v4  ;;  %v4366_v54 = vcombine.high %v4362_v15, %v11278_v18 }
 0x13f   : > { %v2289_v11 = vpop.permute.xlu1 %2288  ;;  %10518 = vmatprep.subr.msk.mxu1 %vm1279_vm9, %v1759_v25 }
 0x140   : > { %v2297_v5 = vsel %vm634_vm8, %v2296_v34, %v2289_v11  ;;  %v2783_v4 = vpop.permute.xlu0 %2782  ;;  %10519 = vmatpush3.msk.msra.mxu1 %vm1279_vm9, %v1759_v25  ;;  %v2805_v25 = vsel %vm622_vm2, %v11758_v6, %v2779_v31  ;;  %v9639_v11 = vld [vmem:[%s14631_s4 + $0xc0] sm:$0xff]  ;;  %v12384_v34 = vrot.slane %v4844_v51, %v11415_v20  ;;  %v1640_v6 = vsel %vm624_vm3, %v1639_v13, %v12235_v56  ;;  %v9640_v31 = vld [vmem:[%s14631_s4 + $0xc8] sm:$0xff] }
 0x141   : > { %3206 = vrot.lane.b32.xlu1 %v3187_v23, %s11283_s12  ;;  %10546 = vmatprep.subr.msk.mxu1 %vm1279_vm9, %v2297_v5  ;;  %v9605_v23 = vld [vmem:[%s14631_s4 + $0xb8] sm:$0xff]  ;;  %v2806_v58 = vsel %vm624_vm3, %v2805_v25, %v2783_v4  ;;  %v9585_v13 = vld [vmem:[%s14630_s3 + $0xa0] sm:$0xff] }
 0x142   : > { %4384 = vrot.lane.b32.xlu0 %v4365_v37, %s11283_s12  ;;  %10521 = vmatmul.mubr.msk.f32.vlgmr.msra.gmra.mrb[0].mxu1 %vm1254_vm0, %v9599_v45  ;;  %v4876_v56 = vcombine.high %v12384_v34, %v11278_v18 }
 0x143   : > { %10547 = vmatpush3.msk.msra.mxu1 %vm1279_vm9, %v2297_v5  ;;  %v1621_v63 = vpop.permute.xlu1 %1620  ;;  %10523 = vmatprep.mubr.msk.f32.mxu1 %vm1254_vm0, %v9600_v21  ;;  %v3648_v5 = vcombine.high %v12145_v42, %v12183_v8  ;;  %v3664_v21 = vcombine.high %v12191_v17, %v12223_v0  ;;  %v9582_v17 = vld [vmem:[%s14630_s3 + $0x88] sm:$0xff] }
 0x144   : > { %v2787_v43 = vpop.permute.xlu0 %2786  ;;  %v1641_v51 = vsel %vm626_vm4, %v1640_v6, %v1621_v63 }
 0x145   : > { %3210 = vrot.lane.b32.xlu1 %v3184_v49, %s11284_s13  ;;  %v2807_v4 = vsel %vm626_vm4, %v2806_v58, %v2787_v43  ;;  %v12439_v43 = vrot.slane %v3648_v5, %v11393_v7  ;;  %v14639_v5 = vcombine.low %v11907_v46, %v11915_v30 }
 0x146   : > { %4388 = vrot.lane.b32.xlu0 %v4362_v15, %s11284_s13  ;;  %10524 = vmatmul.mubr.msk.f32.gmra.mrb[2].mxu1 %vm1254_vm0, %v9601_v62  ;;  %v9642_v62 = vld [vmem:[%s14631_s4 + $0xd8] sm:$0xff] }
 0x147   : > { %v1625_v22 = vpop.permute.xlu1 %1624  ;;  %10526 = vmatprep.mubr.msk.f32.mxu1 %vm1254_vm0, %v9602_v59 }
 0x148   : > { %v2791_v48 = vpop.permute.xlu0 %2790  ;;  %v1642_v1 = vsel %vm628_vm5, %v1641_v51, %v1625_v22 }
 0x149   : > { %3214 = vrot.lane.b32.xlu1 %v3188_v47, %s11285_s14  ;;  %v2808_v0 = vsel %vm628_vm5, %v2807_v4, %v2791_v48  ;;  %v12449_v47 = vrot.slane %v3664_v21, %v11393_v7  ;;  %v9644_v48 = vld [vmem:[%s14631_s4 + $0xe8] sm:$0xff]  ;;  %v4868_v4 = vrot.slane %v14639_v5, %v11415_v20 }
 0x14a   : > { %5738 = vrot.lane.b32.xlu0 %v12149_v26, %s11276_s21  ;;  %10527 = vmatmul.mubr.msk.f32.gmra.mrb[4].mxu1 %vm1254_vm0, %v9603_v44  ;;  %v12374_v26 = vrot.slane %v3679_v28, %v11415_v20 }
 0x14b   : > { %v1629_v10 = vpop.permute.xlu1 %1628  ;;  %10529 = vmatprep.mubr.msk.f32.mxu1 %vm1254_vm0, %v9604_v29 }
 0x14c   : > { %v2795_v33 = vpop.permute.xlu0 %2794  ;;  %v1643_v37 = vsel %vm630_vm6, %v1642_v1, %v1629_v10  ;;  %v12467_v10 = vld [vmem:[%s11381_s20 + $0x61] sm:$0xff] }
 0x14d   : > { %4392 = vrot.lane.b32.xlu1 %v4366_v54, %s11285_s14  ;;  %v2809_v15 = vsel %vm630_vm6, %v2808_v0, %v2795_v33  ;;  %v12470_v54 = vld [vmem:[%s11381_s20 + $0x81] sm:$0xff] }
 0x14e   : > { %5742 = vrot.lane.b32.xlu0 %v12161_v9, %s11276_s21  ;;  %10530 = vmatmul.mubr.msk.f32.gmra.mrb[6].mxu1 %vm1254_vm0, %v9605_v23  ;;  %v3711_v9 = vcombine.high %v12374_v26, %v11278_v18  ;;  %v9645_v23 = vld [vmem:[%s14631_s4 + $0xf0] sm:$0xff]  ;;  %v6917_v25 = vcombine.low %v12467_v10, %v12470_v54  ;;  %v9680_v1 = vld [vmem:[%s14631_s4 + $0x100] sm:$0xff] }
 0x14f   : > { %v1633_v19 = vpop.permute.xlu1 %1632  ;;  %10548 = vmatprep.mubr.msk.f32.mxu1 %vm1254_vm0, %v9639_v11  ;;  %v3695_v11 = vcombine.low %v12439_v43, %v12449_v47  ;;  %v9622_v0 = vld [vmem:[%s14630_s3 + $0xc0] sm:$0xff] }
 0x150   : > { %v2799_v45 = vpop.permute.xlu0 %2798  ;;  %v1644_v49 = vsel %vm632_vm7, %v1643_v37, %v1633_v19  ;;  %v12493_v19 = vld [vmem:[%s11381_s20 + $0x71] sm:$0xff] }
 0x151   : > { %5740 = vrot.lane.b32.xlu1 %v12164_v52, %s11276_s21  ;;  %v3680_v52 = vcombine.high %v12337_v57, %v12340_v61  ;;  %v9643_v57 = vld [vmem:[%s14631_s4 + $0xe0] sm:$0xff]  ;;  %v9583_v61 = vld [vmem:[%s14630_s3 + $0x90] sm:$0xff]  ;;  %v2810_v22 = vsel %vm632_vm7, %v2809_v15, %v2799_v45  ;;  %v9646_v45 = vld [vmem:[%s14631_s4 + $0xf8] sm:$0xff] }
 0x152   : > { %3716 = vrot.lane.b32.xlu0 %v3711_v9, %s11279_s26  ;;  %10549 = vmatmul.mubr.msk.f32.vlgmr.msra.gmra.mrb[0].mxu1 %vm1254_vm0, %v9640_v31  ;;  %v12496_v31 = vrot.slane %v6917_v25, %v11393_v7  ;;  %v9586_v9 = vld [vmem:[%s14630_s3 + $0xa8] sm:$0xff] }
 0x153   : > { %v1637_v63 = vpop.permute.xlu1 %1636  ;;  %10551 = vmatprep.mubr.msk.f32.mxu1 %vm1254_vm0, %v9641_v60  ;;  %v3694_v28 = vrot.slane %v3680_v52, %v11415_v20  ;;  %v12510_v60 = vrot.slane %v12493_v19, %v11393_v7  ;;  %v3703_v52 = vrot.slane %v3695_v11, %v11415_v20 }
 0x154   : > { %v1645_v42 = vsel %vm634_vm8, %v1644_v49, %v1637_v63  ;;  %v12420_v8 = vpop.permute.xlu0 %4173  ;;  %v9681_v63 = vld [vmem:[%s14631_s4 + $0x108] sm:$0xff] }
 0x155   : > { %5744 = vrot.lane.b32.xlu1 %v12167_v2, %s11276_s21  ;;  %10504 = vmatprep.subr.msk.mxu0 %vm1004_vm10, %v1645_v42  ;;  %v14638_v2 = vcombine.high %v11827_v55, %v11831_v53  ;;  %v9584_v53 = vld [vmem:[%s14630_s3 + $0x98] sm:$0xff]  ;;  %v3712_v6 = vcombine.high %v3694_v28, %v11278_v18  ;;  %v6948_v37 = vcombine.low %v12496_v31, %v12510_v60 }
 0x156   : > { %4881 = vrot.lane.b32.xlu0 %v4876_v56, %s11279_s26  ;;  %10505 = vmatpush3.msk.msra.mxu0 %vm1004_vm10, %v1645_v42  ;;  %v9587_v56 = vld [vmem:[%s14630_s3 + $0xb0] sm:$0xff]  ;;  %v9588_v42 = vld [vmem:[%s14630_s3 + $0xb8] sm:$0xff]  ;;  %v3713_v15 = vcombine.high %v3703_v52, %v11278_v18 }
 0x157   : > { %v4859_v59 = vrot.slane %v14638_v2, %v11415_v20  ;;  %v2803_v44 = vpop.permute.xlu1 %2802  ;;  %10552 = vmatmul.mubr.msk.f32.gmra.mrb[2].mxu1 %vm1254_vm0, %v9642_v62  ;;  %10507 = vmatmul.mubr.msk.f32.vlgmr.msra.gmra.mrb[0].mxu0 %vm979_vm1, %v9582_v17  ;;  %v9682_v62 = vld [vmem:[%s14631_s4 + $0x110] sm:$0xff]  ;;  %v4878_v17 = vcombine.high %v4868_v4, %v11278_v18  ;;  %v6949_v2 = vcombine.high %v12496_v31, %v12510_v60  ;;  %v9748_v31 = vld [vmem:[%s14630_s3 + $0x198] sm:$0xff] }
 0x158   : > { %v2811_v29 = vsel %vm634_vm8, %v2810_v22, %v2803_v44  ;;  %v12459_v55 = vpop.permute.xlu0 %4177  ;;  %10554 = vmatprep.mubr.msk.f32.mxu1 %vm1254_vm0, %v9643_v57  ;;  %10509 = vmatprep.mubr.msk.f32.mxu0 %vm979_vm1, %v9583_v61  ;;  %v3696_v57 = vcombine.high %v12439_v43, %v12449_v47  ;;  %v9683_v43 = vld [vmem:[%s14631_s4 + $0x118] sm:$0xff]  ;;  %v9684_v47 = vld [vmem:[%s14631_s4 + $0x120] sm:$0xff] }
 0x159   : > { %3720 = vrot.lane.b32.xlu1 %v3694_v28, %s11280_s30  ;;  %10574 = vmatprep.subr.msk.mxu1 %vm1279_vm9, %v2811_v29  ;;  %v4877_v33 = vcombine.high %v4859_v59, %v11278_v18  ;;  %v4185_v44 = vcombine.low %v12420_v8, %v12459_v55  ;;  %v14640_v28 = vcombine.high %v11907_v46, %v11915_v30  ;;  %v9685_v46 = vld [vmem:[%s14631_s4 + $0x128] sm:$0xff]  ;;  %v9686_v30 = vld [vmem:[%s14631_s4 + $0x130] sm:$0xff] }
 0x15a   : > { %4885 = vrot.lane.b32.xlu0 %v4859_v59, %s11280_s30  ;;  %10575 = vmatpush3.msk.msra.mxu1 %vm1279_vm9, %v2811_v29 }
 0x15b   : > { %v12487_v58 = vpop.permute.xlu1 %4175  ;;  %10555 = vmatmul.mubr.msk.f32.gmra.mrb[4].mxu1 %vm1254_vm0, %v9644_v48  ;;  %10510 = vmatmul.mubr.msk.f32.gmra.mrb[2].mxu0 %vm979_vm1, %v9584_v53  ;;  %v4875_v48 = vrot.slane %v14640_v28, %v11415_v20  ;;  %v3710_v53 = vrot.slane %v3696_v57, %v11415_v20 }
 0x15c   : > { %v12498_v51 = vpop.permute.xlu0 %2150  ;;  %10557 = vmatprep.mubr.msk.f32.mxu1 %vm1254_vm0, %v9645_v23  ;;  %10512 = vmatprep.mubr.msk.f32.mxu0 %vm979_vm1, %v9585_v13  ;;  %v6918_v23 = vcombine.high %v12467_v10, %v12470_v54  ;;  %v6933_v13 = vcombine.high %v12493_v19, %v11278_v18 }
 0x15d   : > { %3724 = vrot.lane.b32.xlu1 %v3712_v6, %s11281_s10  ;;  %v4193_v6 = vrot.slane %v4185_v44, %v11393_v7 }
 0x15e   : > { %4889 = vrot.lane.b32.xlu0 %v4877_v33, %s11281_s10  ;;  %v12591_v11 = vrot.slane %v6918_v23, %v11393_v7 }
 0x15f   : > { %v12526_v21 = vpop.permute.xlu1 %4179  ;;  %10558 = vmatmul.mubr.msk.f32.gmra.mrb[6].mxu1 %vm1254_vm0, %v9646_v45  ;;  %10513 = vmatmul.mubr.msk.f32.gmra.mrb[4].mxu0 %vm979_vm1, %v9586_v9  ;;  %v12596_v45 = vrot.slane %v6933_v13, %v11393_v7 }
 0x160   : > { %v3293_v49 = vpop.permute.xlu0 %3292  ;;  %10576 = vmatprep.mubr.msk.f32.mxu1 %vm1254_vm0, %v9680_v1  ;;  %10515 = vmatprep.mubr.msk.f32.mxu0 %vm979_vm1, %v9587_v56  ;;  %v4201_v59 = vcombine.low %v12487_v58, %v12526_v21  ;;  %v3714_v1 = vcombine.high %v3710_v53, %v11278_v18  ;;  %v12600_v56 = vld [vmem:[%s11410_s25 + $0x41] sm:$0xff] }
 0x161   : > { %3728 = vrot.lane.b32.xlu1 %v3703_v52, %s11282_s11  ;;  %v9687_v52 = vld [vmem:[%s14631_s4 + $0x138] sm:$0xff]  ;;  %v3319_v57 = vsel %vm622_vm2, %v11943_v27, %v3293_v49  ;;  %v14641_v27 = vcombine.low %v12013_v24, %v12009_v50 }
 0x162   : > { %4893 = vrot.lane.b32.xlu0 %v4868_v4, %s11282_s11  ;;  %v12580_v25 = vrot.slane %v4201_v59, %v11393_v7 }
 0x163   : > { %v2155_v61 = vpop.permute.xlu1 %2154  ;;  %10577 = vmatmul.mubr.msk.f32.vlgmr.msra.gmra.mrb[0].mxu1 %vm1254_vm0, %v9681_v63  ;;  %10516 = vmatmul.mubr.msk.f32.gmra.mrb[6].mxu0 %vm979_vm1, %v9588_v42  ;;  %v6964_v63 = vcombine.low %v12591_v11, %v12596_v45  ;;  %v4879_v42 = vcombine.high %v4875_v48, %v11278_v18  ;;  %v12640_v49 = vrot.slane %v14641_v27, %v11415_v20  ;;  %v9626_v27 = vld [vmem:[%s14630_s3 + $0xe0] sm:$0xff] }
 0x164   : > { %v3297_v22 = vpop.permute.xlu0 %3296  ;;  %10579 = vmatprep.mubr.msk.f32.mxu1 %vm1254_vm0, %v9682_v62  ;;  %10534 = vmatprep.mubr.msk.f32.mxu0 %vm979_vm1, %v9622_v0  ;;  %v4217_v5 = vcombine.low %v4193_v6, %v12580_v25  ;;  %v9721_v62 = vld [vmem:[%s14631_s4 + $0x140] sm:$0xff] }
 0x165   : > { %3732 = vrot.lane.b32.xlu1 %v3713_v15, %s11283_s12  ;;  %v12618_v0 = vld [vmem:[%s11410_s25 + $0x61] sm:$0xff]  ;;  %v3320_v28 = vsel %vm624_vm3, %v3319_v57, %v3297_v22  ;;  %v12656_v22 = vld [vmem:[%s11410_s25 + $0x71] sm:$0xff] }
 0x166   : > { %4897 = vrot.lane.b32.xlu0 %v4878_v17, %s11283_s12  ;;  %v12624_v59 = vrot.slane %v4217_v5, %v11415_v20 }
 0x167   : > { %v2159_v29 = vpop.permute.xlu1 %2158  ;;  %10580 = vmatmul.mubr.msk.f32.gmra.mrb[2].mxu1 %vm1254_vm0, %v9683_v43  ;;  %v2177_v43 = vsel %vm622_vm2, %v11930_v14, %v12498_v51  ;;  %v6965_v14 = vcombine.high %v12591_v11, %v12596_v45  ;;  %v13346_v45 = vld [vmem:[%s11410_s25 + $0xc1] sm:$0xff] }
 0x168   : > { %v3301_v33 = vpop.permute.xlu0 %3300  ;;  %10582 = vmatprep.mubr.msk.f32.mxu1 %vm1254_vm0, %v9684_v47  ;;  %v12634_v47 = vld [vmem:[%s11410_s25 + $0x51] sm:$0xff]  ;;  %v2178_v44 = vsel %vm624_vm3, %v2177_v43, %v2155_v61  ;;  %v4249_v23 = vcombine.high %v12624_v59, %v11278_v18 }
 0x169   : > { %3736 = vrot.lane.b32.xlu1 %v3710_v53, %s11284_s13  ;;  %v2179_v51 = vsel %vm626_vm4, %v2178_v44, %v2159_v29  ;;  %v5390_v29 = vcombine.high %v12640_v49, %v11278_v18 }
 0x16a   : > { %4901 = vrot.lane.b32.xlu0 %v4875_v48, %s11284_s13 }
 0x16b   : > { %v2163_v9 = vpop.permute.xlu1 %2162  ;;  %10583 = vmatmul.mubr.msk.f32.gmra.mrb[4].mxu1 %vm1254_vm0, %v9685_v46  ;;  %v3321_v46 = vsel %vm626_vm4, %v3320_v28, %v3301_v33  ;;  %v9723_v28 = vld [vmem:[%s14631_s4 + $0x150] sm:$0xff] }
 0x16c   : > { %v3305_v4 = vpop.permute.xlu0 %3304  ;;  %10585 = vmatprep.mubr.msk.f32.mxu1 %vm1254_vm0, %v9686_v30  ;;  %v2180_v13 = vsel %vm628_vm5, %v2179_v51, %v2163_v9  ;;  %v4202_v30 = vcombine.high %v12487_v58, %v12526_v21  ;;  %v9624_v58 = vld [vmem:[%s14630_s3 + $0xd0] sm:$0xff] }
 0x16d   : > { %3740 = vrot.lane.b32.xlu1 %v3714_v1, %s11285_s14  ;;  %v4218_v1 = vcombine.high %v4193_v6, %v12580_v25  ;;  %v12715_v51 = vld [vmem:[%s11381_s20 + $0x91] sm:$0xff] }
 0x16e   : > { %6276 = vrot.lane.b32.xlu0 %v12600_v56, %s11276_s21  ;;  %v12687_v25 = vrot.slane %v4202_v30, %v11393_v7 }
 0x16f   : > { %v2167_v17 = vpop.permute.xlu1 %2166  ;;  %10586 = vmatmul.mubr.msk.f32.gmra.mrb[6].mxu1 %vm1254_vm0, %v9687_v52  ;;  %v4232_v57 = vrot.slane %v4218_v1, %v11415_v20 }
 0x170   : > { %v3309_v15 = vpop.permute.xlu0 %3308  ;;  %10604 = vmatprep.mubr.msk.f32.mxu1 %vm1254_vm0, %v9721_v62  ;;  %v2181_v61 = vsel %vm630_vm6, %v2180_v13, %v2167_v17  ;;  %v4186_v62 = vcombine.high %v12420_v8, %v12459_v55  ;;  %v3322_v17 = vsel %vm628_vm5, %v3321_v46, %v3305_v4  ;;  %v14642_v8 = vcombine.high %v12013_v24, %v12009_v50  ;;  %v9722_v50 = vld [vmem:[%s14631_s4 + $0x148] sm:$0xff]  ;;  %v9625_v24 = vld [vmem:[%s14630_s3 + $0xd8] sm:$0xff] }
 0x171   : > { %4905 = vrot.lane.b32.xlu1 %v4879_v42, %s11285_s14  ;;  %v9623_v42 = vld [vmem:[%s14630_s3 + $0xc8] sm:$0xff]  ;;  %v3323_v21 = vsel %vm630_vm6, %v3322_v17, %v3309_v15 }
 0x172   : > { %6280 = vrot.lane.b32.xlu0 %v12618_v0, %s11276_s21  ;;  %v5373_v55 = vrot.slane %v14642_v8, %v11415_v20  ;;  %v4200_v44 = vrot.slane %v4186_v62, %v11393_v7  ;;  %v14643_v62 = vcombine.low %v12086_v16, %v12089_v12 }
 0x173   : > { %v2171_v48 = vpop.permute.xlu1 %2170 }
 0x174   : > { %v3313_v53 = vpop.permute.xlu0 %3312  ;;  %v2182_v9 = vsel %vm632_vm7, %v2181_v61, %v2171_v48  ;;  %v12712_v48 = vld [vmem:[%s11381_s20 + $0xb1] sm:$0xff]  ;;  %v4233_v46 = vcombine.low %v4200_v44, %v12687_v25  ;;  %v5382_v17 = vrot.slane %v14643_v62, %v11415_v20 }
 0x175   : > { %6278 = vrot.lane.b32.xlu1 %v12634_v47, %s11276_s21  ;;  %v3324_v6 = vsel %vm632_vm7, %v3323_v21, %v3313_v53  ;;  %v5391_v53 = vcombine.high %v5373_v55, %v11278_v18  ;;  %v7431_v13 = vcombine.low %v12715_v51, %v12712_v48  ;;  %v7432_v62 = vcombine.high %v12715_v51, %v12712_v48 }
 0x176   : > { %4254 = vrot.lane.b32.xlu0 %v4249_v23, %s11279_s26  ;;  %v12721_v23 = vld [vmem:[%s11381_s20 + $0xa1] sm:$0xff] }
 0x177   : > { %v2175_v5 = vpop.permute.xlu1 %2174  ;;  %v12733_v30 = vrot.slane %v12721_v23, %v11393_v7 }
 0x178   : > { %v2183_v52 = vsel %vm634_vm8, %v2182_v9, %v2175_v5  ;;  %v12665_v33 = vpop.permute.xlu0 %5856  ;;  %v9627_v9 = vld [vmem:[%s14630_s3 + $0xe8] sm:$0xff]  ;;  %v9724_v5 = vld [vmem:[%s14631_s4 + $0x158] sm:$0xff] }
 0x179   : > { %6282 = vrot.lane.b32.xlu1 %v12656_v22, %s11276_s21  ;;  %10532 = vmatprep.subr.msk.mxu0 %vm1004_vm10, %v2183_v52 }
 0x17a   : > { %5395 = vrot.lane.b32.xlu0 %v5390_v29, %s11279_s26  ;;  %10533 = vmatpush3.msk.msra.mxu0 %vm1004_vm10, %v2183_v52  ;;  %v4250_v29 = vcombine.high %v4232_v57, %v11278_v18  ;;  %v12744_v52 = vrot.slane %v7431_v13, %v11393_v7 }
 0x17b   : > { %v3317_v4 = vpop.permute.xlu1 %3316  ;;  %10535 = vmatmul.mubr.msk.f32.vlgmr.msra.gmra.mrb[0].mxu0 %vm979_vm1, %v9623_v42  ;;  %v9628_v42 = vld [vmem:[%s14630_s3 + $0xf0] sm:$0xff] }
 0x17c   : > { %v3325_v15 = vsel %vm634_vm8, %v3324_v6, %v3317_v4  ;;  %v12693_v43 = vpop.permute.xlu0 %5858  ;;  %10537 = vmatprep.mubr.msk.f32.mxu0 %vm979_vm1, %v9624_v58  ;;  %v9725_v58 = vld [vmem:[%s14631_s4 + $0x160] sm:$0xff]  ;;  %v7462_v21 = vcombine.low %v12744_v52, %v12733_v30  ;;  %v9629_v4 = vld [vmem:[%s14630_s3 + $0xf8] sm:$0xff] }
 0x17d   : > { %4258 = vrot.lane.b32.xlu1 %v4232_v57, %s11280_s30  ;;  %10602 = vmatprep.subr.msk.mxu1 %vm1279_vm9, %v3325_v15  ;;  %v9726_v57 = vld [vmem:[%s14631_s4 + $0x168] sm:$0xff] }
 0x17e   : > { %5399 = vrot.lane.b32.xlu0 %v5373_v55, %s11280_s30  ;;  %10603 = vmatpush3.msk.msra.mxu1 %vm1279_vm9, %v3325_v15  ;;  %v4241_v55 = vrot.slane %v4233_v46, %v11415_v20  ;;  %v9663_v15 = vld [vmem:[%s14630_s3 + $0x100] sm:$0xff]  ;;  %v9728_v46 = vld [vmem:[%s14631_s4 + $0x178] sm:$0xff] }
 0x17f   : > { %v12726_v61 = vpop.permute.xlu1 %5860  ;;  %10605 = vmatmul.mubr.msk.f32.vlgmr.msra.gmra.mrb[0].mxu1 %vm1254_vm0, %v9722_v50  ;;  %10538 = vmatmul.mubr.msk.f32.gmra.mrb[2].mxu0 %vm979_vm1, %v9625_v24  ;;  %v5392_v50 = vcombine.high %v5382_v17, %v11278_v18  ;;  %v9727_v24 = vld [vmem:[%s14631_s4 + $0x170] sm:$0xff] }
 0x180   : > { %v2681_v1 = vpop.permute.xlu0 %2680  ;;  %10540 = vmatprep.mubr.msk.f32.mxu0 %vm979_vm1, %v9626_v27  ;;  %10607 = vmatprep.mubr.msk.f32.mxu1 %vm1254_vm0, %v9723_v28  ;;  %v4234_v27 = vcombine.high %v4200_v44, %v12687_v25  ;;  %v9762_v25 = vld [vmem:[%s14631_s4 + $0x180] sm:$0xff]  ;;  %v7463_v44 = vcombine.high %v12744_v52, %v12733_v30  ;;  %v9789_v30 = vld [vmem:[%s14630_s3 + $0x1d8] sm:$0xff] }
 0x181   : > { %4262 = vrot.lane.b32.xlu1 %v4250_v29, %s11281_s10 }
 0x182   : > { %5403 = vrot.lane.b32.xlu0 %v5391_v53, %s11281_s10  ;;  %v4251_v53 = vcombine.high %v4241_v55, %v11278_v18 }
 0x183   : > { %v2677_v8 = vpop.permute.xlu1 %2676  ;;  %10541 = vmatmul.mubr.msk.f32.gmra.mrb[4].mxu0 %vm979_vm1, %v9627_v9  ;;  %10608 = vmatmul.mubr.msk.f32.gmra.mrb[2].mxu1 %vm1254_vm0, %v9724_v5  ;;  %v14644_v9 = vcombine.high %v12086_v16, %v12089_v12  ;;  %v12812_v16 = vrot.slane %v7432_v62, %v11393_v7  ;;  %v14646_v62 = vcombine.high %v12177_v41, %v12180_v38 }
 0x184   : > { %v2685_v6 = vpop.permute.xlu0 %2684  ;;  %10543 = vmatprep.mubr.msk.f32.mxu0 %vm979_vm1, %v9628_v42  ;;  %10610 = vmatprep.mubr.msk.f32.mxu1 %vm1254_vm0, %v9725_v58  ;;  %v2703_v29 = vsel %vm622_vm2, %v12117_v32, %v2677_v8  ;;  %v4248_v32 = vrot.slane %v4234_v27, %v11415_v20 }
 0x185   : > { %4266 = vrot.lane.b32.xlu1 %v4241_v55, %s11282_s11  ;;  %v5389_v5 = vrot.slane %v14644_v9, %v11415_v20  ;;  %v2704_v58 = vsel %vm624_vm3, %v2703_v29, %v2681_v1  ;;  %v5865_v55 = vcombine.low %v12665_v33, %v12726_v61 }
 0x186   : > { %5407 = vrot.lane.b32.xlu0 %v5382_v17, %s11282_s11  ;;  %v7447_v17 = vcombine.high %v12721_v23, %v11278_v18  ;;  %v4252_v1 = vcombine.high %v4248_v32, %v11278_v18 }
 0x187   : > { %v3831_v28 = vpop.permute.xlu1 %3830  ;;  %10544 = vmatmul.mubr.msk.f32.gmra.mrb[6].mxu0 %vm979_vm1, %v9629_v4  ;;  %10611 = vmatmul.mubr.msk.f32.gmra.mrb[4].mxu1 %vm1254_vm0, %v9726_v57  ;;  %v2705_v4 = vsel %vm626_vm4, %v2704_v58, %v2685_v6  ;;  %v12834_v6 = vrot.slane %v5865_v55, %v11393_v7  ;;  %v9665_v58 = vld [vmem:[%s14630_s3 + $0x110] sm:$0xff] }
 0x188   : > { %v2689_v13 = vpop.permute.xlu0 %2688  ;;  %10562 = vmatprep.mubr.msk.f32.mxu0 %vm979_vm1, %v9663_v15  ;;  %10613 = vmatprep.mubr.msk.f32.mxu1 %vm1254_vm0, %v9727_v24  ;;  %v12815_v12 = vrot.slane %v7447_v17, %v11393_v7  ;;  %v5393_v24 = vcombine.high %v5389_v5, %v11278_v18  ;;  %v4757_v17 = vrot.slane %v14646_v62, %v11415_v20  ;;  %v9764_v62 = vld [vmem:[%s14631_s4 + $0x190] sm:$0xff] }
 0x189   : > { %4270 = vrot.lane.b32.xlu1 %v4251_v53, %s11283_s12  ;;  %v2706_v27 = vsel %vm628_vm5, %v2705_v4, %v2689_v13  ;;  %v12831_v53 = vrot.slane %v12693_v43, %v11393_v7  ;;  %v3857_v55 = vsel %vm622_vm2, %v12143_v35, %v3831_v28  ;;  %v9666_v35 = vld [vmem:[%s14630_s3 + $0x118] sm:$0xff] }
 0x18a   : > { %5411 = vrot.lane.b32.xlu0 %v5392_v50, %s11283_s12  ;;  %v7478_v15 = vcombine.low %v12812_v16, %v12815_v12  ;;  %v7479_v4 = vcombine.high %v12812_v16, %v12815_v12 }
 0x18b   : > { %v3835_v42 = vpop.permute.xlu1 %3834  ;;  %10614 = vmatmul.mubr.msk.f32.gmra.mrb[6].mxu1 %vm1254_vm0, %v9728_v46 }
 0x18c   : > { %v2693_v8 = vpop.permute.xlu0 %2692  ;;  %10632 = vmatprep.mubr.msk.f32.mxu1 %vm1254_vm0, %v9762_v25 }
 0x18d   : > { %4274 = vrot.lane.b32.xlu1 %v4248_v32, %s11284_s13  ;;  %v2707_v46 = vsel %vm630_vm6, %v2706_v27, %v2693_v8  ;;  %v9664_v32 = vld [vmem:[%s14630_s3 + $0x108] sm:$0xff]  ;;  %v5896_v8 = vcombine.low %v12834_v6, %v12831_v53 }
 0x18e   : > { %5415 = vrot.lane.b32.xlu0 %v5389_v5, %s11284_s13 }
 0x18f   : > { %v3839_v57 = vpop.permute.xlu1 %3838  ;;  %v12885_v27 = vrot.slane %v5896_v8, %v11415_v20  ;;  %v5897_v8 = vcombine.high %v12834_v6, %v12831_v53  ;;  %v9766_v53 = vld [vmem:[%s14631_s4 + $0x1a0] sm:$0xff] }
 0x190   : > { %v2697_v50 = vpop.permute.xlu0 %2696 }
 0x191   : > { %4278 = vrot.lane.b32.xlu1 %v4252_v1, %s11285_s14  ;;  %v2708_v25 = vsel %vm632_vm7, %v2707_v46, %v2697_v50  ;;  %v3858_v1 = vsel %vm624_vm3, %v3857_v55, %v3835_v42  ;;  %v4775_v42 = vcombine.high %v4757_v17, %v11278_v18 }
 0x192   : > { %7960 = vrot.lane.b32.xlu0 %v12467_v10, %s11276_s21  ;;  %v14645_v10 = vcombine.low %v12177_v41, %v12180_v38  ;;  %v3859_v38 = vsel %vm626_vm4, %v3858_v1, %v3839_v57  ;;  %v9667_v57 = vld [vmem:[%s14630_s3 + $0x120] sm:$0xff]  ;;  %v9669_v1 = vld [vmem:[%s14630_s3 + $0x130] sm:$0xff] }
 0x193   : > { %v3843_v29 = vpop.permute.xlu1 %3842 }
 0x194   : > { %v2701_v9 = vpop.permute.xlu0 %2700  ;;  %v12844_v13 = vrot.slane %v14645_v10, %v11415_v20  ;;  %v3860_v28 = vsel %vm628_vm5, %v3859_v38, %v3843_v29  ;;  %v14647_v10 = vcombine.low %v12214_v39, %v12217_v40 }
 0x195   : > { %v2709_v5 = vsel %vm634_vm8, %v2708_v25, %v2701_v9  ;;  %5419 = vrot.lane.b32.xlu1 %v5393_v24, %s11285_s14  ;;  %v9763_v9 = vld [vmem:[%s14631_s4 + $0x188] sm:$0xff] }
 0x196   : > { %7962 = vrot.lane.b32.xlu0 %v12493_v19, %s11276_s21  ;;  %10560 = vmatprep.subr.msk.mxu0 %vm1004_vm10, %v2709_v5  ;;  %v4774_v50 = vcombine.high %v12844_v13, %v11278_v18 }
 0x197   : > { %10561 = vmatpush3.msk.msra.mxu0 %vm1004_vm10, %v2709_v5  ;;  %v3847_v19 = vpop.permute.xlu1 %3846  ;;  %v9668_v5 = vld [vmem:[%s14630_s3 + $0x128] sm:$0xff] }
 0x198   : > { %v3855_v41 = vpop.permute.xlu0 %3854  ;;  %10563 = vmatmul.mubr.msk.f32.vlgmr.msra.gmra.mrb[0].mxu0 %vm979_vm1, %v9664_v32  ;;  %v4766_v32 = vrot.slane %v14647_v10, %v11415_v20 }
 0x199   : > { %7964 = vrot.lane.b32.xlu1 %v12470_v54, %s11276_s21  ;;  %10565 = vmatprep.mubr.msk.f32.mxu0 %vm979_vm1, %v9665_v58  ;;  %v3861_v54 = vsel %vm630_vm6, %v3860_v28, %v3847_v19  ;;  %v5866_v58 = vcombine.high %v12665_v33, %v12726_v61  ;;  %v5928_v19 = vcombine.high %v12885_v27, %v11278_v18  ;;  %v9765_v33 = vld [vmem:[%s14631_s4 + $0x198] sm:$0xff]  ;;  %v9704_v28 = vld [vmem:[%s14630_s3 + $0x140] sm:$0xff] }
 0x19a   : > { %4783 = vrot.lane.b32.xlu0 %v4757_v17, %s11280_s30  ;;  %v5881_v17 = vcombine.high %v12693_v43, %v11278_v18  ;;  %v9670_v43 = vld [vmem:[%s14630_s3 + $0x138] sm:$0xff]  ;;  %v4776_v61 = vcombine.high %v4766_v32, %v11278_v18 }
 0x19b   : > { %v3851_v24 = vpop.permute.xlu1 %3850  ;;  %v5880_v38 = vrot.slane %v5866_v58, %v11393_v7 }
 0x19c   : > { %v3862_v46 = vsel %vm632_vm7, %v3861_v54, %v3851_v24  ;;  %v12888_v25 = vpop.permute.xlu0 %6398  ;;  %10566 = vmatmul.mubr.msk.f32.gmra.mrb[2].mxu0 %vm979_vm1, %v9666_v35  ;;  %v5895_v6 = vrot.slane %v5881_v17, %v11393_v7  ;;  %v5911_v35 = vrot.slane %v5897_v8, %v11415_v20  ;;  %v14648_v54 = vcombine.high %v12214_v39, %v12217_v40  ;;  %v9769_v39 = vld [vmem:[%s14631_s4 + $0x1b8] sm:$0xff] }
 0x19d   : > { %4779 = vrot.lane.b32.xlu1 %v4774_v50, %s11279_s26  ;;  %v3863_v29 = vsel %vm634_vm8, %v3862_v46, %v3855_v41  ;;  %10568 = vmatprep.mubr.msk.f32.mxu0 %vm979_vm1, %v9667_v57  ;;  %v9767_v57 = vld [vmem:[%s14631_s4 + $0x1a8] sm:$0xff]  ;;  %v5224_v46 = vcombine.low %v12600_v56, %v12618_v0 }
 0x19e   : > { %4787 = vrot.lane.b32.xlu0 %v4775_v42, %s11281_s10  ;;  %10630 = vmatprep.subr.msk.mxu1 %vm1279_vm9, %v3863_v29  ;;  %v4773_v24 = vrot.slane %v14648_v54, %v11415_v20 }
 0x19f   : > { %v12915_v55 = vpop.permute.xlu1 %6394  ;;  %10631 = vmatpush3.msk.msra.mxu1 %vm1279_vm9, %v3863_v29  ;;  %v5240_v29 = vcombine.low %v12634_v47, %v12656_v22  ;;  %v5232_v58 = vrot.slane %v5224_v46, %v11393_v7 }
 0x1a0   : > { %v12923_v41 = vpop.permute.xlu0 %3190  ;;  %10633 = vmatmul.mubr.msk.f32.vlgmr.msra.gmra.mrb[0].mxu1 %vm1254_vm0, %v9763_v9  ;;  %10569 = vmatmul.mubr.msk.f32.gmra.mrb[4].mxu0 %vm979_vm1, %v9668_v5  ;;  %v9768_v9 = vld [vmem:[%s14631_s4 + $0x1b0] sm:$0xff]  ;;  %v5912_v5 = vcombine.low %v5880_v38, %v5895_v6  ;;  %v4777_v40 = vcombine.high %v4773_v24, %v11278_v18 }
 0x1a1   : > { %5933 = vrot.lane.b32.xlu1 %v5928_v19, %s11279_s26  ;;  %10635 = vmatprep.mubr.msk.f32.mxu1 %vm1254_vm0, %v9764_v62  ;;  %v5913_v62 = vcombine.high %v5880_v38, %v5895_v6  ;;  %v5248_v8 = vrot.slane %v5240_v29, %v11393_v7  ;;  %v9803_v19 = vld [vmem:[%s14631_s4 + $0x1c0] sm:$0xff] }
 0x1a2   : > { %4791 = vrot.lane.b32.xlu0 %v4766_v32, %s11282_s11  ;;  %10571 = vmatprep.mubr.msk.f32.mxu0 %vm979_vm1, %v9669_v1  ;;  %v5929_v32 = vcombine.high %v5911_v35, %v11278_v18 }
 0x1a3   : > { %v12943_v50 = vpop.permute.xlu1 %6396  ;;  %v5256_v6 = vcombine.low %v5232_v58, %v5248_v8 }
 0x1a4   : > { %v12949_v42 = vpop.permute.xlu0 %4368  ;;  %10636 = vmatmul.mubr.msk.f32.gmra.mrb[2].mxu1 %vm1254_vm0, %v9765_v33  ;;  %10572 = vmatmul.mubr.msk.f32.gmra.mrb[6].mxu0 %vm979_vm1, %v9670_v43  ;;  %v5920_v33 = vrot.slane %v5912_v5, %v11415_v20 }
 0x1a5   : > { %5937 = vrot.lane.b32.xlu1 %v5911_v35, %s11280_s30  ;;  %10638 = vmatprep.mubr.msk.f32.mxu1 %vm1254_vm0, %v9766_v53  ;;  %v6403_v53 = vcombine.low %v12915_v55, %v12888_v25  ;;  %v13001_v46 = vrot.slane %v5256_v6, %v11415_v20 }
 0x1a6   : > { %4795 = vrot.lane.b32.xlu0 %v4776_v61, %s11283_s12  ;;  %10590 = vmatprep.mubr.msk.f32.mxu0 %vm979_vm1, %v9704_v28  ;;  %v5927_v61 = vrot.slane %v5913_v62, %v11415_v20  ;;  %v5930_v35 = vcombine.high %v5920_v33, %v11278_v18  ;;  %v6426_v28 = vrot.slane %v12943_v50, %v11393_v7 }
 0x1a7   : > { %v3195_v10 = vpop.permute.xlu1 %3194  ;;  %v5288_v62 = vcombine.high %v13001_v46, %v11278_v18 }
 0x1a8   : > { %v4373_v17 = vpop.permute.xlu0 %4372  ;;  %10639 = vmatmul.mubr.msk.f32.gmra.mrb[4].mxu1 %vm1254_vm0, %v9767_v57  ;;  %v5931_v54 = vcombine.high %v5927_v61, %v11278_v18 }
 0x1a9   : > { %5941 = vrot.lane.b32.xlu1 %v5929_v32, %s11281_s10  ;;  %10641 = vmatprep.mubr.msk.f32.mxu1 %vm1254_vm0, %v9768_v9  ;;  %v3217_v9 = vsel %vm622_vm2, %v12247_v3, %v12923_v41 }
 0x1aa   : > { %4799 = vrot.lane.b32.xlu0 %v4773_v24, %s11284_s13  ;;  %v6411_v24 = vrot.slane %v6403_v53, %v11393_v7 }
 0x1ab   : > { %v3199_v1 = vpop.permute.xlu1 %3198 }
 0x1ac   : > { %v4377_v43 = vpop.permute.xlu0 %4376  ;;  %10642 = vmatmul.mubr.msk.f32.gmra.mrb[6].mxu1 %vm1254_vm0, %v9769_v39  ;;  %v6434_v5 = vcombine.low %v6411_v24, %v6426_v28  ;;  %v3218_v39 = vsel %vm624_vm3, %v3217_v9, %v3195_v10  ;;  %v4395_v10 = vsel %vm622_vm2, %v12259_v36, %v12949_v42 }
 0x1ad   : > { %5945 = vrot.lane.b32.xlu1 %v5920_v33, %s11282_s11  ;;  %10660 = vmatprep.mubr.msk.f32.mxu1 %vm1254_vm0, %v9803_v19  ;;  %v5257_v19 = vcombine.high %v5232_v58, %v5248_v8  ;;  %v3219_v53 = vsel %vm626_vm4, %v3218_v39, %v3199_v1  ;;  %v6419_v8 = vcombine.high %v12943_v50, %v11278_v18  ;;  %v9705_v50 = vld [vmem:[%s14630_s3 + $0x148] sm:$0xff]  ;;  %v9708_v39 = vld [vmem:[%s14630_s3 + $0x160] sm:$0xff] }
 0x1ae   : > { %4803 = vrot.lane.b32.xlu0 %v4777_v40, %s11285_s14  ;;  %v13013_v33 = vrot.slane %v6434_v5, %v11415_v20  ;;  %v4396_v1 = vsel %vm624_vm3, %v4395_v10, %v4373_v17  ;;  %v9707_v5 = vld [vmem:[%s14630_s3 + $0x158] sm:$0xff] }
 0x1af   : > { %v3203_v38 = vpop.permute.xlu1 %3202  ;;  %v9806_v10 = vld [vmem:[%s14631_s4 + $0x1d8] sm:$0xff] }
 0x1b0   : > { %v4381_v57 = vpop.permute.xlu0 %4380  ;;  %v3220_v41 = vsel %vm628_vm5, %v3219_v53, %v3203_v38  ;;  %v6466_v42 = vcombine.high %v13013_v33, %v11278_v18 }
 0x1b1   : > { %5949 = vrot.lane.b32.xlu1 %v5930_v35, %s11283_s12  ;;  %v9706_v35 = vld [vmem:[%s14630_s3 + $0x150] sm:$0xff] }
 0x1b2   : > { %5957 = vrot.lane.b32.xlu0 %v5931_v54, %s11285_s14 }
 0x1b3   : > { %v3207_v29 = vpop.permute.xlu1 %3206 }
 0x1b4   : > { %v4385_v32 = vpop.permute.xlu0 %4384  ;;  %v3221_v58 = vsel %vm630_vm6, %v3220_v41, %v3207_v29 }
 0x1b5   : > { %5953 = vrot.lane.b32.xlu1 %v5927_v61, %s11284_s13  ;;  %v5241_v61 = vcombine.high %v12634_v47, %v12656_v22  ;;  %v4397_v47 = vsel %vm626_vm4, %v4396_v1, %v4377_v43  ;;  %v9807_v1 = vld [vmem:[%s14631_s4 + $0x1e0] sm:$0xff] }
 0x1b6   : > { %8502 = vrot.lane.b32.xlu0 %v12712_v48, %s11276_s21  ;;  %v5225_v48 = vcombine.high %v12600_v56, %v12618_v0  ;;  %v5271_v56 = vrot.slane %v5257_v19, %v11415_v20  ;;  %v6435_v0 = vcombine.high %v6411_v24, %v6426_v28  ;;  %v4398_v17 = vsel %vm628_vm5, %v4397_v47, %v4381_v57  ;;  %v9808_v47 = vld [vmem:[%s14631_s4 + $0x1e8] sm:$0xff] }
 0x1b7   : > { %v3211_v40 = vpop.permute.xlu1 %3210  ;;  %v13050_v38 = vrot.slane %v5241_v61, %v11393_v7  ;;  %v6404_v28 = vcombine.high %v12915_v55, %v12888_v25  ;;  %v4399_v57 = vsel %vm630_vm6, %v4398_v17, %v4385_v32  ;;  %v13063_v24 = vrot.slane %v6419_v8, %v11393_v7  ;;  %v9804_v55 = vld [vmem:[%s14631_s4 + $0x1c8] sm:$0xff]  ;;  %v9710_v8 = vld [vmem:[%s14630_s3 + $0x170] sm:$0xff] }
 0x1b8   : > { %v4389_v3 = vpop.permute.xlu0 %4388  ;;  %v13047_v43 = vrot.slane %v5225_v48, %v11393_v7  ;;  %v6449_v25 = vrot.slane %v6435_v0, %v11415_v20  ;;  %v5289_v32 = vcombine.high %v5271_v56, %v11278_v18  ;;  %v9709_v61 = vld [vmem:[%s14630_s3 + $0x168] sm:$0xff]  ;;  %v9711_v0 = vld [vmem:[%s14630_s3 + $0x178] sm:$0xff]  ;;  %v9809_v17 = vld [vmem:[%s14631_s4 + $0x1f0] sm:$0xff] }
 0x1b9   : > { %8498 = vrot.lane.b32.xlu1 %v12715_v51, %s11276_s21  ;;  %v3222_v51 = vsel %vm632_vm7, %v3221_v58, %v3211_v40  ;;  %v9805_v40 = vld [vmem:[%s14631_s4 + $0x1d0] sm:$0xff]  ;;  %v6418_v19 = vrot.slane %v6404_v28, %v11393_v7 }
 0x1ba   : > { %5293 = vrot.lane.b32.xlu0 %v5288_v62, %s11279_s26  ;;  %v5272_v62 = vcombine.low %v13047_v43, %v13050_v38  ;;  %v6467_v48 = vcombine.high %v6449_v25, %v11278_v18 }
 0x1bb   : > { %v3215_v6 = vpop.permute.xlu1 %3214  ;;  %v6451_v28 = vcombine.high %v6418_v19, %v13063_v24 }
 0x1bc   : > { %v3223_v22 = vsel %vm634_vm8, %v3222_v51, %v3215_v6  ;;  %v13035_v36 = vpop.permute.xlu0 %5738  ;;  %v5280_v58 = vrot.slane %v5272_v62, %v11415_v20 }
 0x1bd   : > { %8500 = vrot.lane.b32.xlu1 %v12721_v23, %s11276_s21  ;;  %10588 = vmatprep.subr.msk.mxu0 %vm1004_vm10, %v3223_v22  ;;  %v4400_v23 = vsel %vm632_vm7, %v4399_v57, %v4389_v3  ;;  %v6450_v3 = vcombine.low %v6418_v19, %v13063_v24  ;;  %v9844_v24 = vld [vmem:[%s14631_s4 + $0x200] sm:$0xff] }
 0x1be   : > { %6471 = vrot.lane.b32.xlu0 %v6466_v42, %s11279_s26  ;;  %10589 = vmatpush3.msk.msra.mxu0 %vm1004_vm10, %v3223_v22  ;;  %v5290_v22 = vcombine.high %v5280_v58, %v11278_v18  ;;  %v5273_v42 = vcombine.high %v13047_v43, %v13050_v38  ;;  %v13167_v19 = vld [vmem:[%s11410_s25 + $0x81] sm:$0xff] }
 0x1bf   : > { %v4393_v54 = vpop.permute.xlu1 %4392  ;;  %10591 = vmatmul.mubr.msk.f32.vlgmr.msra.gmra.mrb[0].mxu0 %vm979_vm1, %v9705_v50  ;;  %v9745_v50 = vld [vmem:[%s14630_s3 + $0x180] sm:$0xff] }
 0x1c0   : > { %v4401_v29 = vsel %vm634_vm8, %v4400_v23, %v4393_v54  ;;  %v13066_v9 = vpop.permute.xlu0 %5742  ;;  %10593 = vmatprep.mubr.msk.f32.mxu0 %vm979_vm1, %v9706_v35  ;;  %v9810_v23 = vld [vmem:[%s14631_s4 + $0x1f8] sm:$0xff]  ;;  %v5287_v54 = vrot.slane %v5273_v42, %v11415_v20 }
 0x1c1   : > { %5297 = vrot.lane.b32.xlu1 %v5271_v56, %s11280_s30  ;;  %10658 = vmatprep.subr.msk.mxu1 %vm1279_vm9, %v4401_v29  ;;  %v6458_v56 = vrot.slane %v6450_v3, %v11415_v20 }
 0x1c2   : > { %6475 = vrot.lane.b32.xlu0 %v6449_v25, %s11280_s30  ;;  %10659 = vmatpush3.msk.msra.mxu1 %vm1279_vm9, %v4401_v29  ;;  %v5750_v29 = vcombine.low %v13035_v36, %v13066_v9  ;;  %v5291_v62 = vcombine.high %v5287_v54, %v11278_v18 }
 0x1c3   : > { %v13090_v53 = vpop.permute.xlu1 %5740  ;;  %10661 = vmatmul.mubr.msk.f32.vlgmr.msra.gmra.mrb[0].mxu1 %vm1254_vm0, %v9804_v55  ;;  %10594 = vmatmul.mubr.msk.f32.gmra.mrb[2].mxu0 %vm979_vm1, %v9707_v5  ;;  %v6468_v57 = vcombine.high %v6458_v56, %v11278_v18 }
 0x1c4   : > { %v13095_v41 = vpop.permute.xlu0 %3716  ;;  %10596 = vmatprep.mubr.msk.f32.mxu0 %vm979_vm1, %v9708_v39  ;;  %10663 = vmatprep.mubr.msk.f32.mxu1 %vm1254_vm0, %v9805_v40  ;;  %v5758_v39 = vrot.slane %v5750_v29, %v11393_v7 }
 0x1c5   : > { %5301 = vrot.lane.b32.xlu1 %v5289_v32, %s11281_s10  ;;  %v6465_v32 = vrot.slane %v6451_v28, %v11415_v20 }
 0x1c6   : > { %6479 = vrot.lane.b32.xlu0 %v6467_v48, %s11281_s10 }
 0x1c7   : > { %v13115_v51 = vpop.permute.xlu1 %5744  ;;  %10597 = vmatmul.mubr.msk.f32.gmra.mrb[4].mxu0 %vm979_vm1, %v9709_v61  ;;  %10664 = vmatmul.mubr.msk.f32.gmra.mrb[2].mxu1 %vm1254_vm0, %v9806_v10  ;;  %v6469_v10 = vcombine.high %v6465_v32, %v11278_v18 }
 0x1c8   : > { %v4882_v6 = vpop.permute.xlu0 %4881  ;;  %10599 = vmatprep.mubr.msk.f32.mxu0 %vm979_vm1, %v9710_v8  ;;  %10666 = vmatprep.mubr.msk.f32.mxu1 %vm1254_vm0, %v9807_v1  ;;  %v5766_v43 = vcombine.low %v13090_v53, %v13115_v51 }
 0x1c9   : > { %5305 = vrot.lane.b32.xlu1 %v5280_v58, %s11282_s11  ;;  %v13174_v58 = vld [vmem:[%s11410_s25 + $0xa1] sm:$0xff]  ;;  %v4908_v8 = vsel %vm622_vm2, %v12384_v34, %v4882_v6  ;;  %v13194_v34 = vrot.slane %v6948_v37, %v11415_v20 }
 0x1ca   : > { %6483 = vrot.lane.b32.xlu0 %v6458_v56, %s11282_s11  ;;  %v5774_v55 = vrot.slane %v5766_v43, %v11393_v7 }
 0x1cb   : > { %v3721_v35 = vpop.permute.xlu1 %3720  ;;  %10600 = vmatmul.mubr.msk.f32.gmra.mrb[6].mxu0 %vm979_vm1, %v9711_v0  ;;  %10667 = vmatmul.mubr.msk.f32.gmra.mrb[4].mxu1 %vm1254_vm0, %v9808_v47  ;;  %v3743_v0 = vsel %vm622_vm2, %v12374_v26, %v13095_v41  ;;  %v13188_v47 = vld [vmem:[%s11410_s25 + $0x91] sm:$0xff]  ;;  %v6980_v43 = vcombine.high %v13194_v34, %v11278_v18 }
 0x1cc   : > { %v4886_v38 = vpop.permute.xlu0 %4885  ;;  %10618 = vmatprep.mubr.msk.f32.mxu0 %vm979_vm1, %v9745_v50  ;;  %10669 = vmatprep.mubr.msk.f32.mxu1 %vm1254_vm0, %v9809_v17  ;;  %v5782_v3 = vcombine.low %v5758_v39, %v5774_v55  ;;  %v3744_v6 = vsel %vm624_vm3, %v3743_v0, %v3721_v35  ;;  %v13208_v35 = vld [vmem:[%s11410_s25 + $0xb1] sm:$0xff] }
 0x1cd   : > { %5309 = vrot.lane.b32.xlu1 %v5290_v22, %s11283_s12  ;;  %v4909_v22 = vsel %vm624_vm3, %v4908_v8, %v4886_v38  ;;  %v5767_v38 = vcombine.high %v13090_v53, %v13115_v51  ;;  %v9747_v53 = vld [vmem:[%s14630_s3 + $0x190] sm:$0xff] }
 0x1ce   : > { %6487 = vrot.lane.b32.xlu0 %v6468_v57, %s11283_s12  ;;  %v13179_v56 = vrot.slane %v5782_v3, %v11415_v20  ;;  %v5783_v57 = vcombine.high %v5758_v39, %v5774_v55 }
 0x1cf   : > { %v3725_v25 = vpop.permute.xlu1 %3724  ;;  %10670 = vmatmul.mubr.msk.f32.gmra.mrb[6].mxu1 %vm1254_vm0, %v9810_v23 }
 0x1d0   : > { %v4890_v5 = vpop.permute.xlu0 %4889  ;;  %10688 = vmatprep.mubr.msk.f32.mxu1 %vm1254_vm0, %v9844_v24  ;;  %v3745_v50 = vsel %vm626_vm4, %v3744_v6, %v3725_v25  ;;  %v5814_v26 = vcombine.high %v13179_v56, %v11278_v18  ;;  %v9746_v25 = vld [vmem:[%s14630_s3 + $0x188] sm:$0xff]  ;;  %v5797_v39 = vrot.slane %v5783_v57, %v11415_v20 }
 0x1d1   : > { %5313 = vrot.lane.b32.xlu1 %v5287_v54, %s11284_s13  ;;  %v4910_v28 = vsel %vm626_vm4, %v4909_v22, %v4890_v5  ;;  %v5751_v5 = vcombine.high %v13035_v36, %v13066_v9  ;;  %v6963_v36 = vrot.slane %v6949_v2, %v11415_v20  ;;  %v13238_v9 = vrot.slane %v5767_v38, %v11393_v7  ;;  %v9749_v2 = vld [vmem:[%s14630_s3 + $0x1a0] sm:$0xff]  ;;  %v9750_v22 = vld [vmem:[%s14630_s3 + $0x1a8] sm:$0xff] }
 0x1d2   : > { %6491 = vrot.lane.b32.xlu0 %v6465_v32, %s11284_s13  ;;  %v5815_v0 = vcombine.high %v5797_v39, %v11278_v18  ;;  %v9786_v38 = vld [vmem:[%s14630_s3 + $0x1c0] sm:$0xff] }
 0x1d3   : > { %v3729_v40 = vpop.permute.xlu1 %3728  ;;  %v5765_v60 = vrot.slane %v5751_v5, %v11393_v7 }
 0x1d4   : > { %v4894_v48 = vpop.permute.xlu0 %4893  ;;  %v3746_v41 = vsel %vm628_vm5, %v3745_v50, %v3729_v40  ;;  %v9751_v50 = vld [vmem:[%s14630_s3 + $0x1b0] sm:$0xff] }
 0x1d5   : > { %5317 = vrot.lane.b32.xlu1 %v5291_v62, %s11285_s14  ;;  %v4911_v32 = vsel %vm628_vm5, %v4910_v28, %v4894_v48  ;;  %v9845_v48 = vld [vmem:[%s14631_s4 + $0x208] sm:$0xff]  ;;  %v5798_v8 = vcombine.low %v5765_v60, %v13238_v9 }
 0x1d6   : > { %7842 = vrot.lane.b32.xlu0 %v13167_v19, %s11276_s21 }
 0x1d7   : > { %v3733_v61 = vpop.permute.xlu1 %3732  ;;  %v5806_v28 = vrot.slane %v5798_v8, %v11415_v20 }
 0x1d8   : > { %v4898_v1 = vpop.permute.xlu0 %4897  ;;  %v3747_v37 = vsel %vm630_vm6, %v3746_v41, %v3733_v61  ;;  %v9846_v61 = vld [vmem:[%s14631_s4 + $0x210] sm:$0xff] }
 0x1d9   : > { %6495 = vrot.lane.b32.xlu1 %v6469_v10, %s11285_s14  ;;  %v4912_v51 = vsel %vm630_vm6, %v4911_v32, %v4898_v1  ;;  %v6981_v10 = vcombine.high %v6963_v36, %v11278_v18 }
 0x1da   : > { %7846 = vrot.lane.b32.xlu0 %v13174_v58, %s11276_s21 }
 0x1db   : > { %v3737_v42 = vpop.permute.xlu1 %3736 }
 0x1dc   : > { %v4902_v17 = vpop.permute.xlu0 %4901  ;;  %v3748_v23 = vsel %vm632_vm7, %v3747_v37, %v3737_v42  ;;  %v9847_v42 = vld [vmem:[%s14631_s4 + $0x218] sm:$0xff] }
 0x1dd   : > { %7844 = vrot.lane.b32.xlu1 %v13188_v47, %s11276_s21  ;;  %v4913_v55 = vsel %vm632_vm7, %v4912_v51, %v4902_v17  ;;  %v9848_v17 = vld [vmem:[%s14631_s4 + $0x220] sm:$0xff] }
 0x1de   : > { %5819 = vrot.lane.b32.xlu0 %v5814_v26, %s11279_s26  ;;  %v6972_v26 = vrot.slane %v6964_v63, %v11415_v20  ;;  %v9849_v63 = vld [vmem:[%s14631_s4 + $0x228] sm:$0xff]  ;;  %v9885_v51 = vld [vmem:[%s14631_s4 + $0x240] sm:$0xff] }
 0x1df   : > { %v3741_v54 = vpop.permute.xlu1 %3740 }
 0x1e0   : > { %v3749_v24 = vsel %vm634_vm8, %v3748_v23, %v3741_v54  ;;  %v13216_v29 = vpop.permute.xlu0 %6276  ;;  %v6982_v57 = vcombine.high %v6972_v26, %v11278_v18  ;;  %v9850_v23 = vld [vmem:[%s14631_s4 + $0x230] sm:$0xff]  ;;  %v5799_v54 = vcombine.high %v5765_v60, %v13238_v9  ;;  %v6979_v9 = vrot.slane %v6965_v14, %v11415_v20 }
 0x1e1   : > { %7848 = vrot.lane.b32.xlu1 %v13208_v35, %s11276_s21  ;;  %10616 = vmatprep.subr.msk.mxu0 %vm1004_vm10, %v3749_v24 }
 0x1e2   : > { %6985 = vrot.lane.b32.xlu0 %v6980_v43, %s11279_s26  ;;  %10617 = vmatpush3.msk.msra.mxu0 %vm1004_vm10, %v3749_v24  ;;  %v9752_v43 = vld [vmem:[%s14630_s3 + $0x1b8] sm:$0xff] }
 0x1e3   : > { %v4906_v62 = vpop.permute.xlu1 %4905  ;;  %10619 = vmatmul.mubr.msk.f32.vlgmr.msra.gmra.mrb[0].mxu0 %vm979_vm1, %v9746_v25  ;;  %v5816_v25 = vcombine.high %v5806_v28, %v11278_v18 }
 0x1e4   : > { %v4914_v40 = vsel %vm634_vm8, %v4913_v55, %v4906_v62  ;;  %v13244_v3 = vpop.permute.xlu0 %6280  ;;  %10621 = vmatprep.mubr.msk.f32.mxu0 %vm979_vm1, %v9747_v53  ;;  %v9851_v53 = vld [vmem:[%s14631_s4 + $0x238] sm:$0xff]  ;;  %v5813_v62 = vrot.slane %v5799_v54, %v11415_v20 }
 0x1e5   : > { %5823 = vrot.lane.b32.xlu1 %v5797_v39, %s11280_s30  ;;  %10686 = vmatprep.subr.msk.mxu1 %vm1279_vm9, %v4914_v40 }
 0x1e6   : > { %6989 = vrot.lane.b32.xlu0 %v6963_v36, %s11280_s30  ;;  %10687 = vmatpush3.msk.msra.mxu1 %vm1279_vm9, %v4914_v40  ;;  %v6288_v36 = vcombine.low %v13216_v29, %v13244_v3  ;;  %v5817_v11 = vcombine.high %v5813_v62, %v11278_v18 }
 0x1e7   : > { %v13266_v1 = vpop.permute.xlu1 %6278  ;;  %10689 = vmatmul.mubr.msk.f32.vlgmr.msra.gmra.mrb[0].mxu1 %vm1254_vm0, %v9845_v48  ;;  %10622 = vmatmul.mubr.msk.f32.gmra.mrb[2].mxu0 %vm979_vm1, %v9748_v31 }
 0x1e8   : > { %v13271_v6 = vpop.permute.xlu0 %4254  ;;  %10624 = vmatprep.mubr.msk.f32.mxu0 %vm979_vm1, %v9749_v2  ;;  %10691 = vmatprep.mubr.msk.f32.mxu1 %vm1254_vm0, %v9846_v61  ;;  %v6296_v48 = vrot.slane %v6288_v36, %v11393_v7  ;;  %v6983_v2 = vcombine.high %v6979_v9, %v11278_v18 }
 0x1e9   : > { %5827 = vrot.lane.b32.xlu1 %v5815_v0, %s11281_s10 }
 0x1ea   : > { %6993 = vrot.lane.b32.xlu0 %v6981_v10, %s11281_s10  ;;  %v13353_v10 = vld [vmem:[%s11410_s25 + $0xe1] sm:$0xff] }
 0x1eb   : > { %v13293_v41 = vpop.permute.xlu1 %6282  ;;  %10625 = vmatmul.mubr.msk.f32.gmra.mrb[4].mxu0 %vm979_vm1, %v9750_v22  ;;  %10692 = vmatmul.mubr.msk.f32.gmra.mrb[2].mxu1 %vm1254_vm0, %v9847_v42  ;;  %v4281_v42 = vsel %vm622_vm2, %v12624_v59, %v13271_v6 }
 0x1ec   : > { %v5396_v37 = vpop.permute.xlu0 %5395  ;;  %10627 = vmatprep.mubr.msk.f32.mxu0 %vm979_vm1, %v9751_v50  ;;  %10694 = vmatprep.mubr.msk.f32.mxu1 %vm1254_vm0, %v9848_v17  ;;  %v6304_v5 = vcombine.low %v13266_v1, %v13293_v41  ;;  %v13367_v50 = vld [vmem:[%s11410_s25 + $0xd1] sm:$0xff] }
 0x1ed   : > { %5831 = vrot.lane.b32.xlu1 %v5806_v28, %s11282_s11  ;;  %v5422_v8 = vsel %vm622_vm2, %v12640_v49, %v5396_v37  ;;  %v13373_v49 = vrot.slane %v7462_v21, %v11415_v20 }
 0x1ee   : > { %6997 = vrot.lane.b32.xlu0 %v6972_v26, %s11282_s11  ;;  %v6312_v39 = vrot.slane %v6304_v5, %v11393_v7 }
 0x1ef   : > { %v4259_v24 = vpop.permute.xlu1 %4258  ;;  %10628 = vmatmul.mubr.msk.f32.gmra.mrb[6].mxu0 %vm979_vm1, %v9752_v43  ;;  %10695 = vmatmul.mubr.msk.f32.gmra.mrb[4].mxu1 %vm1254_vm0, %v9849_v63 }
 0x1f0   : > { %v5400_v32 = vpop.permute.xlu0 %5399  ;;  %10646 = vmatprep.mubr.msk.f32.mxu0 %vm979_vm1, %v9786_v38  ;;  %10697 = vmatprep.mubr.msk.f32.mxu1 %vm1254_vm0, %v9850_v23  ;;  %v6320_v14 = vcombine.low %v6296_v48, %v6312_v39  ;;  %v4282_v17 = vsel %vm624_vm3, %v4281_v42, %v4259_v24  ;;  %v13387_v38 = vld [vmem:[%s11410_s25 + $0xf1] sm:$0xff]  ;;  %v6305_v23 = vcombine.high %v13266_v1, %v13293_v41  ;;  %v9791_v42 = vld [vmem:[%s14630_s3 + $0x1e8] sm:$0xff] }
 0x1f1   : > { %5835 = vrot.lane.b32.xlu1 %v5816_v25, %s11283_s12  ;;  %v5423_v26 = vsel %vm624_vm3, %v5422_v8, %v5400_v32  ;;  %v6321_v54 = vcombine.high %v6296_v48, %v6312_v39  ;;  %v9788_v1 = vld [vmem:[%s14630_s3 + $0x1d0] sm:$0xff]  ;;  %v9886_v48 = vld [vmem:[%s14631_s4 + $0x248] sm:$0xff] }
 0x1f2   : > { %7001 = vrot.lane.b32.xlu0 %v6982_v57, %s11283_s12  ;;  %v13358_v22 = vrot.slane %v6320_v14, %v11415_v20  ;;  %v7494_v57 = vcombine.high %v13373_v49, %v11278_v18  ;;  %v6814_v14 = vcombine.low %v13167_v19, %v13174_v58 }
 0x1f3   : > { %v4263_v55 = vpop.permute.xlu1 %4262  ;;  %10698 = vmatmul.mubr.msk.f32.gmra.mrb[6].mxu1 %vm1254_vm0, %v9851_v53  ;;  %v9787_v53 = vld [vmem:[%s14630_s3 + $0x1c8] sm:$0xff] }
 0x1f4   : > { %v5404_v40 = vpop.permute.xlu0 %5403  ;;  %10716 = vmatprep.mubr.msk.f32.mxu1 %vm1254_vm0, %v9885_v51  ;;  %v4283_v37 = vsel %vm626_vm4, %v4282_v17, %v4263_v55  ;;  %v6352_v59 = vcombine.high %v13358_v22, %v11278_v18  ;;  %v6289_v51 = vcombine.high %v13216_v29, %v13244_v3  ;;  %v7477_v29 = vrot.slane %v7463_v44, %v11415_v20  ;;  %v9790_v44 = vld [vmem:[%s14630_s3 + $0x1e0] sm:$0xff]  ;;  %v9888_v17 = vld [vmem:[%s14631_s4 + $0x258] sm:$0xff] }
 0x1f5   : > { %5839 = vrot.lane.b32.xlu1 %v5813_v62, %s11284_s13  ;;  %v5424_v63 = vsel %vm626_vm4, %v5423_v26, %v5404_v40  ;;  %v13417_v3 = vrot.slane %v6305_v23, %v11393_v7  ;;  %v6335_v62 = vrot.slane %v6321_v54, %v11415_v20  ;;  %v9792_v26 = vld [vmem:[%s14630_s3 + $0x1f0] sm:$0xff]  ;;  %v9890_v23 = vld [vmem:[%s14631_s4 + $0x268] sm:$0xff]  ;;  %v9827_v54 = vld [vmem:[%s14630_s3 + $0x200] sm:$0xff] }
 0x1f6   : > { %7005 = vrot.lane.b32.xlu0 %v6979_v9, %s11284_s13  ;;  %v6303_v52 = vrot.slane %v6289_v51, %v11393_v7 }
 0x1f7   : > { %v4267_v31 = vpop.permute.xlu1 %4266  ;;  %v6353_v8 = vcombine.high %v6335_v62, %v11278_v18 }
 0x1f8   : > { %v5408_v60 = vpop.permute.xlu0 %5407  ;;  %v4284_v6 = vsel %vm628_vm5, %v4283_v37, %v4267_v31  ;;  %v9887_v31 = vld [vmem:[%s14631_s4 + $0x250] sm:$0xff]  ;;  %v13472_v37 = vrot.slane %v6814_v14, %v11393_v7 }
 0x1f9   : > { %5843 = vrot.lane.b32.xlu1 %v5817_v11, %s11285_s14  ;;  %v5425_v36 = vsel %vm628_vm5, %v5424_v63, %v5408_v60  ;;  %v7495_v11 = vcombine.high %v7477_v29, %v11278_v18  ;;  %v6830_v60 = vcombine.low %v13188_v47, %v13208_v35 }
 0x1fa   : > { %8380 = vrot.lane.b32.xlu0 %v13346_v45, %s11276_s21 }
 0x1fb   : > { %v4271_v61 = vpop.permute.xlu1 %4270 }
 0x1fc   : > { %v5412_v0 = vpop.permute.xlu0 %5411  ;;  %v4285_v21 = vsel %vm630_vm6, %v4284_v6, %v4271_v61 }
 0x1fd   : > { %7009 = vrot.lane.b32.xlu1 %v6983_v2, %s11285_s14  ;;  %v5426_v41 = vsel %vm630_vm6, %v5425_v36, %v5412_v0  ;;  %v6336_v2 = vcombine.low %v6303_v52, %v13417_v3 }
 0x1fe   : > { %8384 = vrot.lane.b32.xlu0 %v13353_v10, %s11276_s21 }
 0x1ff   : > { %v4275_v28 = vpop.permute.xlu1 %4274  ;;  %v6344_v63 = vrot.slane %v6336_v2, %v11415_v20 }
 0x200   : > { %v5416_v43 = vpop.permute.xlu0 %5415  ;;  %v4286_v24 = vsel %vm632_vm7, %v4285_v21, %v4275_v28  ;;  %v7486_v28 = vrot.slane %v7478_v15, %v11415_v20 }
 0x201   : > { %8382 = vrot.lane.b32.xlu1 %v13367_v50, %s11276_s21  ;;  %v5427_v9 = vsel %vm632_vm7, %v5426_v41, %v5416_v43  ;;  %v13475_v43 = vrot.slane %v6830_v60, %v11393_v7  ;;  %v6354_v36 = vcombine.high %v6344_v63, %v11278_v18 }
 0x202   : > { %6357 = vrot.lane.b32.xlu0 %v6352_v59, %s11279_s26  ;;  %v9889_v59 = vld [vmem:[%s14631_s4 + $0x260] sm:$0xff] }
 0x203   : > { %v4279_v25 = vpop.permute.xlu1 %4278  ;;  %v6847_v2 = vcombine.high %v13472_v37, %v13475_v43 }
 0x204   : > { %v4287_v5 = vsel %vm634_vm8, %v4286_v24, %v4279_v25  ;;  %v13395_v32 = vpop.permute.xlu0 %7960  ;;  %v7496_v24 = vcombine.high %v7486_v28, %v11278_v18  ;;  %v6846_v25 = vcombine.low %v13472_v37, %v13475_v43 }
 0x205   : > { %8386 = vrot.lane.b32.xlu1 %v13387_v38, %s11276_s21  ;;  %10644 = vmatprep.subr.msk.mxu0 %vm1004_vm10, %v4287_v5 }
 0x206   : > { %7499 = vrot.lane.b32.xlu0 %v7494_v57, %s11279_s26  ;;  %10645 = vmatpush3.msk.msra.mxu0 %vm1004_vm10, %v4287_v5  ;;  %v9793_v57 = vld [vmem:[%s14630_s3 + $0x1f8] sm:$0xff]  ;;  %v9891_v5 = vld [vmem:[%s14631_s4 + $0x270] sm:$0xff] }
 0x207   : > { %v5420_v55 = vpop.permute.xlu1 %5419  ;;  %10647 = vmatmul.mubr.msk.f32.vlgmr.msra.gmra.mrb[0].mxu0 %vm979_vm1, %v9787_v53  ;;  %v6337_v53 = vcombine.high %v6303_v52, %v13417_v3 }
 0x208   : > { %v5428_v39 = vsel %vm634_vm8, %v5427_v9, %v5420_v55  ;;  %v13423_v40 = vpop.permute.xlu0 %7962  ;;  %10649 = vmatprep.mubr.msk.f32.mxu0 %vm979_vm1, %v9788_v1  ;;  %v9892_v9 = vld [vmem:[%s14631_s4 + $0x278] sm:$0xff]  ;;  %v9926_v55 = vld [vmem:[%s14631_s4 + $0x280] sm:$0xff] }
 0x209   : > { %6361 = vrot.lane.b32.xlu1 %v6335_v62, %s11280_s30  ;;  %10714 = vmatprep.subr.msk.mxu1 %vm1279_vm9, %v5428_v39  ;;  %v7992_v1 = vrot.slane %v13423_v40, %v11393_v7  ;;  %v7493_v62 = vrot.slane %v7479_v4, %v11415_v20 }
 0x20a   : > { %7503 = vrot.lane.b32.xlu0 %v7477_v29, %s11280_s30  ;;  %10715 = vmatpush3.msk.msra.mxu1 %vm1279_vm9, %v5428_v39  ;;  %v13528_v39 = vrot.slane %v6846_v25, %v11415_v20 }
 0x20b   : > { %v13449_v61 = vpop.permute.xlu1 %7964  ;;  %10717 = vmatmul.mubr.msk.f32.vlgmr.msra.gmra.mrb[0].mxu1 %vm1254_vm0, %v9886_v48  ;;  %10650 = vmatmul.mubr.msk.f32.gmra.mrb[2].mxu0 %vm979_vm1, %v9789_v30  ;;  %v7497_v60 = vcombine.high %v7493_v62, %v11278_v18 }
 0x20c   : > { %v4784_v0 = vpop.permute.xlu0 %4783  ;;  %10652 = vmatprep.mubr.msk.f32.mxu0 %vm979_vm1, %v9790_v44  ;;  %10719 = vmatprep.mubr.msk.f32.mxu1 %vm1254_vm0, %v9887_v31  ;;  %v7969_v15 = vcombine.low %v13395_v32, %v13449_v61  ;;  %v6878_v16 = vcombine.high %v13528_v39, %v11278_v18 }
 0x20d   : > { %6365 = vrot.lane.b32.xlu1 %v6353_v8, %s11281_s10  ;;  %v6815_v8 = vcombine.high %v13167_v19, %v13174_v58 }
 0x20e   : > { %7507 = vrot.lane.b32.xlu0 %v7495_v11, %s11281_s10  ;;  %v7977_v41 = vrot.slane %v7969_v15, %v11393_v7 }
 0x20f   : > { %v4780_v6 = vpop.permute.xlu1 %4779  ;;  %10653 = vmatmul.mubr.msk.f32.gmra.mrb[4].mxu0 %vm979_vm1, %v9791_v42  ;;  %10720 = vmatmul.mubr.msk.f32.gmra.mrb[2].mxu1 %vm1254_vm0, %v9888_v17  ;;  %v7985_v17 = vcombine.high %v13423_v40, %v11278_v18  ;;  %v13565_v40 = vrot.slane %v6815_v8, %v11393_v7 }
 0x210   : > { %v4788_v21 = vpop.permute.xlu0 %4787  ;;  %10655 = vmatprep.mubr.msk.f32.mxu0 %vm979_vm1, %v9792_v26  ;;  %10722 = vmatprep.mubr.msk.f32.mxu1 %vm1254_vm0, %v9889_v59  ;;  %v4806_v3 = vsel %vm622_vm2, %v12844_v13, %v4780_v6  ;;  %v6351_v13 = vrot.slane %v6337_v53, %v11415_v20  ;;  %v8000_v30 = vcombine.low %v7977_v41, %v7992_v1  ;;  %v9830_v53 = vld [vmem:[%s14630_s3 + $0x218] sm:$0xff] }
 0x211   : > { %6369 = vrot.lane.b32.xlu1 %v6344_v63, %s11282_s11  ;;  %v4807_v52 = vsel %vm624_vm3, %v4806_v3, %v4784_v0  ;;  %v6831_v0 = vcombine.high %v13188_v47, %v13208_v35  ;;  %v7970_v59 = vcombine.high %v13395_v32, %v13449_v61  ;;  %v8001_v37 = vcombine.high %v7977_v41, %v7992_v1  ;;  %v9828_v32 = vld [vmem:[%s14630_s3 + $0x208] sm:$0xff]  ;;  %v9829_v61 = vld [vmem:[%s14630_s3 + $0x210] sm:$0xff]  ;;  %v9831_v41 = vld [vmem:[%s14630_s3 + $0x220] sm:$0xff] }
 0x212   : > { %7511 = vrot.lane.b32.xlu0 %v7486_v28, %s11282_s11  ;;  %v4808_v12 = vsel %vm626_vm4, %v4807_v52, %v4788_v21  ;;  %v6355_v31 = vcombine.high %v6351_v13, %v11278_v18  ;;  %v13541_v14 = vrot.slane %v8000_v30, %v11415_v20  ;;  %v6861_v35 = vrot.slane %v6847_v2, %v11415_v20  ;;  %v9927_v52 = vld [vmem:[%s14631_s4 + $0x288] sm:$0xff] }
 0x213   : > { %v5934_v51 = vpop.permute.xlu1 %5933  ;;  %10656 = vmatmul.mubr.msk.f32.gmra.mrb[6].mxu0 %vm979_vm1, %v9793_v57  ;;  %10723 = vmatmul.mubr.msk.f32.gmra.mrb[4].mxu1 %vm1254_vm0, %v9890_v23  ;;  %v13568_v6 = vrot.slane %v6831_v0, %v11393_v7  ;;  %v13582_v21 = vrot.slane %v7985_v17, %v11393_v7  ;;  %v13585_v57 = vrot.slane %v7970_v59, %v11393_v7  ;;  %v9834_v17 = vld [vmem:[%s14630_s3 + $0x238] sm:$0xff]  ;;  %v9930_v59 = vld [vmem:[%s14631_s4 + $0x2a0] sm:$0xff] }
 0x214   : > { %v4792_v29 = vpop.permute.xlu0 %4791  ;;  %10674 = vmatprep.mubr.msk.f32.mxu0 %vm979_vm1, %v9827_v54  ;;  %10725 = vmatprep.mubr.msk.f32.mxu1 %vm1254_vm0, %v9891_v5  ;;  %v8032_v58 = vcombine.high %v13541_v14, %v11278_v18  ;;  %v5960_v63 = vsel %vm622_vm2, %v12885_v27, %v5934_v51  ;;  %v6879_v27 = vcombine.high %v6861_v35, %v11278_v18 }
 0x215   : > { %6373 = vrot.lane.b32.xlu1 %v6354_v36, %s11283_s12  ;;  %v4809_v42 = vsel %vm628_vm5, %v4808_v12, %v4792_v29  ;;  %v6862_v5 = vcombine.low %v13565_v40, %v13568_v6  ;;  %v7328_v36 = vcombine.low %v13346_v45, %v13353_v10  ;;  %v7344_v1 = vcombine.low %v13367_v50, %v13387_v38 }
 0x216   : > { %7515 = vrot.lane.b32.xlu0 %v7496_v24, %s11283_s12  ;;  %v8015_v24 = vrot.slane %v8001_v37, %v11415_v20  ;;  %v8016_v3 = vcombine.low %v13585_v57, %v13582_v21  ;;  %v6863_v0 = vcombine.high %v13565_v40, %v13568_v6  ;;  %v9931_v6 = vld [vmem:[%s14631_s4 + $0x2a8] sm:$0xff] }
 0x217   : > { %v5938_v48 = vpop.permute.xlu1 %5937  ;;  %10726 = vmatmul.mubr.msk.f32.gmra.mrb[6].mxu1 %vm1254_vm0, %v9892_v9  ;;  %v6870_v30 = vrot.slane %v6862_v5, %v11415_v20  ;;  %v13632_v12 = vrot.slane %v7344_v1, %v11393_v7  ;;  %v7329_v1 = vcombine.high %v13346_v45, %v13353_v10 }
 0x218   : > { %v4796_v44 = vpop.permute.xlu0 %4795  ;;  %10744 = vmatprep.mubr.msk.f32.mxu1 %vm1254_vm0, %v9926_v55  ;;  %v5961_v23 = vsel %vm624_vm3, %v5960_v63, %v5938_v48  ;;  %v8033_v48 = vcombine.high %v8015_v24, %v11278_v18  ;;  %v8024_v2 = vrot.slane %v8016_v3, %v11415_v20  ;;  %v6877_v40 = vrot.slane %v6863_v0, %v11415_v20  ;;  %v9932_v63 = vld [vmem:[%s14631_s4 + $0x2b0] sm:$0xff] }
 0x219   : > { %6377 = vrot.lane.b32.xlu1 %v6351_v13, %s11284_s13  ;;  %v4810_v26 = vsel %vm630_vm6, %v4809_v42, %v4796_v44  ;;  %v9832_v44 = vld [vmem:[%s14630_s3 + $0x228] sm:$0xff]  ;;  %v6880_v8 = vcombine.high %v6870_v30, %v11278_v18  ;;  %v9929_v42 = vld [vmem:[%s14631_s4 + $0x298] sm:$0xff]  ;;  %v7343_v10 = vrot.slane %v7329_v1, %v11393_v7  ;;  %v9969_v1 = vld [vmem:[%s14631_s4 + $0x2d0] sm:$0xff] }
 0x21a   : > { %7519 = vrot.lane.b32.xlu0 %v7493_v62, %s11284_s13 }
 0x21b   : > { %v5942_v4 = vpop.permute.xlu1 %5941 }
 0x21c   : > { %v4800_v11 = vpop.permute.xlu0 %4799  ;;  %v5962_v25 = vsel %vm626_vm4, %v5961_v23, %v5942_v4  ;;  %v9928_v4 = vld [vmem:[%s14631_s4 + $0x290] sm:$0xff] }
 0x21d   : > { %6381 = vrot.lane.b32.xlu1 %v6355_v31, %s11285_s14  ;;  %v4811_v43 = vsel %vm632_vm7, %v4810_v26, %v4800_v11  ;;  %v9833_v11 = vld [vmem:[%s14630_s3 + $0x230] sm:$0xff] }
 0x21e   : > { %6883 = vrot.lane.b32.xlu0 %v6878_v16, %s11279_s26  ;;  %v13629_v16 = vrot.slane %v7328_v36, %v11393_v7 }
 0x21f   : > { %v5946_v28 = vpop.permute.xlu1 %5945 }
 0x220   : > { %v4804_v19 = vpop.permute.xlu0 %4803  ;;  %v5963_v51 = vsel %vm628_vm5, %v5962_v25, %v5946_v28  ;;  %v7360_v28 = vcombine.low %v13629_v16, %v13632_v12  ;;  %v7361_v36 = vcombine.high %v13629_v16, %v13632_v12 }
 0x221   : > { %v4812_v47 = vsel %vm634_vm8, %v4811_v43, %v4804_v19  ;;  %7523 = vrot.lane.b32.xlu1 %v7497_v60, %s11285_s14  ;;  %v9868_v43 = vld [vmem:[%s14630_s3 + $0x240] sm:$0xff]  ;;  %v8017_v19 = vcombine.high %v13585_v57, %v13582_v21 }
 0x222   : > { %8037 = vrot.lane.b32.xlu0 %v8032_v58, %s11279_s26  ;;  %10672 = vmatprep.subr.msk.mxu0 %vm1004_vm10, %v4812_v47  ;;  %v7375_v45 = vrot.slane %v7361_v36, %v11415_v20  ;;  %v9872_v36 = vld [vmem:[%s14630_s3 + $0x260] sm:$0xff] }
 0x223   : > { %10673 = vmatpush3.msk.msra.mxu0 %vm1004_vm10, %v4812_v47  ;;  %v5950_v15 = vpop.permute.xlu1 %5949  ;;  %v8031_v23 = vrot.slane %v8017_v19, %v11415_v20 }
 0x224   : > { %v5958_v54 = vpop.permute.xlu0 %5957  ;;  %10675 = vmatmul.mubr.msk.f32.vlgmr.msra.gmra.mrb[0].mxu0 %vm979_vm1, %v9828_v32  ;;  %v5964_v29 = vsel %vm630_vm6, %v5963_v51, %v5950_v15 }
 0x225   : > { %6887 = vrot.lane.b32.xlu1 %v6861_v35, %s11280_s30  ;;  %10677 = vmatprep.mubr.msk.f32.mxu0 %vm979_vm1, %v9829_v61  ;;  %v8034_v35 = vcombine.high %v8024_v2, %v11278_v18  ;;  %v13688_v61 = vrot.slane %v7360_v28, %v11415_v20 }
 0x226   : > { %8041 = vrot.lane.b32.xlu0 %v8015_v24, %s11280_s30  ;;  %v9933_v24 = vld [vmem:[%s14631_s4 + $0x2b8] sm:$0xff] }
 0x227   : > { %v5954_v9 = vpop.permute.xlu1 %5953  ;;  %v7392_v25 = vcombine.high %v13688_v61, %v11278_v18 }
 0x228   : > { %v5965_v55 = vsel %vm632_vm7, %v5964_v29, %v5954_v9  ;;  %v13612_v62 = vpop.permute.xlu0 %8502  ;;  %10678 = vmatmul.mubr.msk.f32.gmra.mrb[2].mxu0 %vm979_vm1, %v9830_v53  ;;  %v8035_v9 = vcombine.high %v8031_v23, %v11278_v18 }
 0x229   : > { %6891 = vrot.lane.b32.xlu1 %v6879_v27, %s11281_s10  ;;  %v5966_v13 = vsel %vm634_vm8, %v5965_v55, %v5958_v54  ;;  %10680 = vmatprep.mubr.msk.f32.mxu0 %vm979_vm1, %v9831_v41  ;;  %v6881_v54 = vcombine.high %v6877_v40, %v11278_v18  ;;  %v9967_v27 = vld [vmem:[%s14631_s4 + $0x2c0] sm:$0xff]  ;;  %v7345_v41 = vcombine.high %v13367_v50, %v13387_v38 }
 0x22a   : > { %8045 = vrot.lane.b32.xlu0 %v8033_v48, %s11281_s10  ;;  %10742 = vmatprep.subr.msk.mxu1 %vm1279_vm9, %v5966_v13 }
 0x22b   : > { %v13637_v31 = vpop.permute.xlu1 %8498  ;;  %10743 = vmatpush3.msk.msra.mxu1 %vm1279_vm9, %v5966_v13  ;;  %v7359_v50 = vrot.slane %v7345_v41, %v11393_v7 }
 0x22c   : > { %v13643_v60 = vpop.permute.xlu0 %5293  ;;  %10745 = vmatmul.mubr.msk.f32.vlgmr.msra.gmra.mrb[0].mxu1 %vm1254_vm0, %v9927_v52  ;;  %10681 = vmatmul.mubr.msk.f32.gmra.mrb[4].mxu0 %vm979_vm1, %v9832_v44  ;;  %v8507_v26 = vcombine.low %v13637_v31, %v13612_v62  ;;  %v8508_v38 = vcombine.high %v13637_v31, %v13612_v62 }
 0x22d   : > { %6895 = vrot.lane.b32.xlu1 %v6870_v30, %s11282_s11  ;;  %10747 = vmatprep.mubr.msk.f32.mxu1 %vm1254_vm0, %v9928_v4  ;;  %v5320_v52 = vsel %vm622_vm2, %v13001_v46, %v13643_v60  ;;  %v7393_v4 = vcombine.high %v7375_v45, %v11278_v18 }
 0x22e   : > { %8049 = vrot.lane.b32.xlu0 %v8024_v2, %s11282_s11  ;;  %10683 = vmatprep.mubr.msk.f32.mxu0 %vm979_vm1, %v9833_v11  ;;  %v8515_v32 = vrot.slane %v8507_v26, %v11393_v7  ;;  %v7376_v11 = vcombine.low %v7343_v10, %v7359_v50  ;;  %v8522_v2 = vrot.slane %v8508_v38, %v11393_v7 }
 0x22f   : > { %v8501_v37 = vpop.permute.xlu1 %8500 }
 0x230   : > { %v8530_v58 = vrot.slane %v8501_v37, %v11393_v7  ;;  %v13674_v47 = vpop.permute.xlu0 %6471  ;;  %10748 = vmatmul.mubr.msk.f32.gmra.mrb[2].mxu1 %vm1254_vm0, %v9929_v42  ;;  %10684 = vmatmul.mubr.msk.f32.gmra.mrb[6].mxu0 %vm979_vm1, %v9834_v17  ;;  %v8523_v3 = vcombine.high %v8501_v37, %v11278_v18  ;;  %v7384_v17 = vrot.slane %v7376_v11, %v11415_v20 }
 0x231   : > { %6899 = vrot.lane.b32.xlu1 %v6880_v8, %s11283_s12  ;;  %10750 = vmatprep.mubr.msk.f32.mxu1 %vm1254_vm0, %v9930_v59  ;;  %v6498_v26 = vsel %vm622_vm2, %v13013_v33, %v13674_v47  ;;  %v9869_v33 = vld [vmem:[%s14630_s3 + $0x248] sm:$0xff] }
 0x232   : > { %8053 = vrot.lane.b32.xlu0 %v8034_v35, %s11283_s12  ;;  %10702 = vmatprep.mubr.msk.f32.mxu0 %vm979_vm1, %v9868_v43  ;;  %v8538_v21 = vcombine.low %v8515_v32, %v8530_v58  ;;  %v8539_v55 = vcombine.high %v8515_v32, %v8530_v58  ;;  %v8537_v44 = vrot.slane %v8523_v3, %v11393_v7  ;;  %v9873_v3 = vld [vmem:[%s14630_s3 + $0x268] sm:$0xff] }
 0x233   : > { %v5298_v15 = vpop.permute.xlu1 %5297  ;;  %v7377_v32 = vcombine.high %v7343_v10, %v7359_v50 }
 0x234   : > { %v6476_v57 = vpop.permute.xlu0 %6475  ;;  %10751 = vmatmul.mubr.msk.f32.gmra.mrb[4].mxu1 %vm1254_vm0, %v9931_v6  ;;  %v13709_v53 = vrot.slane %v8538_v21, %v11415_v20  ;;  %v8553_v16 = vrot.slane %v8539_v55, %v11415_v20  ;;  %v5321_v62 = vsel %vm624_vm3, %v5320_v52, %v5298_v15  ;;  %v8554_v8 = vcombine.low %v8522_v2, %v8537_v44  ;;  %v9970_v55 = vld [vmem:[%s14631_s4 + $0x2d8] sm:$0xff] }
 0x235   : > { %6903 = vrot.lane.b32.xlu1 %v6877_v40, %s11284_s13  ;;  %10753 = vmatprep.mubr.msk.f32.mxu1 %vm1254_vm0, %v9932_v63  ;;  %v6499_v59 = vsel %vm624_vm3, %v6498_v26, %v6476_v57  ;;  %v7394_v6 = vcombine.high %v7384_v17, %v11278_v18  ;;  %v9870_v63 = vld [vmem:[%s14630_s3 + $0x250] sm:$0xff] }
 0x236   : > { %8057 = vrot.lane.b32.xlu0 %v8031_v23, %s11284_s13  ;;  %v8570_v13 = vcombine.high %v13709_v53, %v11278_v18  ;;  %v8571_v0 = vcombine.high %v8553_v16, %v11278_v18  ;;  %v8562_v40 = vrot.slane %v8554_v8, %v11415_v20  ;;  %v8555_v23 = vcombine.high %v8522_v2, %v8537_v44  ;;  %v9875_v44 = vld [vmem:[%s14630_s3 + $0x278] sm:$0xff] }
 0x237   : > { %v5302_v5 = vpop.permute.xlu1 %5301 }
 0x238   : > { %v6480_v51 = vpop.permute.xlu0 %6479  ;;  %10754 = vmatmul.mubr.msk.f32.gmra.mrb[6].mxu1 %vm1254_vm0, %v9933_v24  ;;  %v5322_v46 = vsel %vm626_vm4, %v5321_v62, %v5302_v5  ;;  %v9871_v5 = vld [vmem:[%s14630_s3 + $0x258] sm:$0xff]  ;;  %v9973_v62 = vld [vmem:[%s14631_s4 + $0x2f0] sm:$0xff] }
 0x239   : > { %6907 = vrot.lane.b32.xlu1 %v6881_v54, %s11285_s14  ;;  %10772 = vmatprep.mubr.msk.f32.mxu1 %vm1254_vm0, %v9967_v27  ;;  %v6500_v19 = vsel %vm626_vm4, %v6499_v59, %v6480_v51  ;;  %v9968_v27 = vld [vmem:[%s14631_s4 + $0x2c8] sm:$0xff]  ;;  %v7391_v51 = vrot.slane %v7377_v32, %v11415_v20 }
 0x23a   : > { %7397 = vrot.lane.b32.xlu0 %v7392_v25, %s11279_s26  ;;  %v8572_v25 = vcombine.high %v8562_v40, %v11278_v18 }
 0x23b   : > { %v5306_v29 = vpop.permute.xlu1 %5305 }
 0x23c   : > { %v6484_v48 = vpop.permute.xlu0 %6483  ;;  %v5323_v42 = vsel %vm628_vm5, %v5322_v46, %v5306_v29 }
 0x23d   : > { %8061 = vrot.lane.b32.xlu1 %v8035_v9, %s11285_s14  ;;  %v6501_v47 = vsel %vm628_vm5, %v6500_v19, %v6484_v48  ;;  %v8569_v9 = vrot.slane %v8555_v23, %v11415_v20  ;;  %v7395_v48 = vcombine.high %v7391_v51, %v11278_v18 }
 0x23e   : > { %8575 = vrot.lane.b32.xlu0 %v8570_v13, %s11279_s26  ;;  %v9874_v13 = vld [vmem:[%s14630_s3 + $0x270] sm:$0xff] }
 0x23f   : > { %v5310_v30 = vpop.permute.xlu1 %5309  ;;  %v8573_v46 = vcombine.high %v8569_v9, %v11278_v18 }
 0x240   : > { %v6488_v12 = vpop.permute.xlu0 %6487  ;;  %v5324_v28 = vsel %vm630_vm6, %v5323_v42, %v5310_v30 }
 0x241   : > { %7401 = vrot.lane.b32.xlu1 %v7375_v45, %s11280_s30  ;;  %v6502_v15 = vsel %vm630_vm6, %v6501_v47, %v6488_v12  ;;  %v9971_v45 = vld [vmem:[%s14631_s4 + $0x2e0] sm:$0xff] }
 0x242   : > { %8579 = vrot.lane.b32.xlu0 %v8553_v16, %s11280_s30  ;;  %v9972_v16 = vld [vmem:[%s14631_s4 + $0x2e8] sm:$0xff] }
 0x243   : > { %v5314_v31 = vpop.permute.xlu1 %5313 }
 0x244   : > { %v6492_v60 = vpop.permute.xlu0 %6491  ;;  %v5325_v37 = vsel %vm632_vm7, %v5324_v28, %v5314_v31  ;;  %v10008_v28 = vld [vmem:[%s14631_s4 + $0x300] sm:$0xff] }
 0x245   : > { %7405 = vrot.lane.b32.xlu1 %v7393_v4, %s11281_s10  ;;  %v6503_v21 = vsel %vm632_vm7, %v6502_v15, %v6492_v60  ;;  %v9909_v4 = vld [vmem:[%s14630_s3 + $0x280] sm:$0xff] }
 0x246   : > { %8583 = vrot.lane.b32.xlu0 %v8571_v0, %s11281_s10 }
 0x247   : > { %v5318_v43 = vpop.permute.xlu1 %5317 }
 0x248   : > { %v5326_v58 = vsel %vm634_vm8, %v5325_v37, %v5318_v43  ;;  %v13756_v35 = vpop.permute.xlu0 %7842 }
 0x249   : > { %7409 = vrot.lane.b32.xlu1 %v7384_v17, %s11282_s11  ;;  %10700 = vmatprep.subr.msk.mxu0 %vm1004_vm10, %v5326_v58  ;;  %v9974_v17 = vld [vmem:[%s14631_s4 + $0x2f8] sm:$0xff] }
 0x24a   : > { %8587 = vrot.lane.b32.xlu0 %v8562_v40, %s11282_s11  ;;  %10701 = vmatpush3.msk.msra.mxu0 %vm1004_vm10, %v5326_v58 }
 0x24b   : > { %v6496_v57 = vpop.permute.xlu1 %6495  ;;  %10703 = vmatmul.mubr.msk.f32.vlgmr.msra.gmra.mrb[0].mxu0 %vm979_vm1, %v9869_v33 }
 0x24c   : > { %v6504_v54 = vsel %vm634_vm8, %v6503_v21, %v6496_v57  ;;  %v7847_v24 = vpop.permute.xlu0 %7846  ;;  %10705 = vmatprep.mubr.msk.f32.mxu0 %vm979_vm1, %v9870_v63 }
 0x24d   : > { %7413 = vrot.lane.b32.xlu1 %v7394_v6, %s11283_s12  ;;  %10770 = vmatprep.subr.msk.mxu1 %vm1279_vm9, %v6504_v54  ;;  %v7854_v10 = vcombine.low %v13756_v35, %v7847_v24  ;;  %v7855_v12 = vcombine.high %v13756_v35, %v7847_v24 }
 0x24e   : > { %8591 = vrot.lane.b32.xlu0 %v8572_v25, %s11283_s12  ;;  %10771 = vmatpush3.msk.msra.mxu1 %vm1279_vm9, %v6504_v54 }
 0x24f   : > { %v7845_v41 = vpop.permute.xlu1 %7844  ;;  %10773 = vmatmul.mubr.msk.f32.vlgmr.msra.gmra.mrb[0].mxu1 %vm1254_vm0, %v9968_v27  ;;  %10706 = vmatmul.mubr.msk.f32.gmra.mrb[2].mxu0 %vm979_vm1, %v9871_v5  ;;  %v7862_v11 = vrot.slane %v7854_v10, %v11393_v7  ;;  %v7869_v26 = vrot.slane %v7855_v12, %v11393_v7  ;;  %v9913_v12 = vld [vmem:[%s14630_s3 + $0x2a0] sm:$0xff] }
 0x250   : > { %v13796_v29 = vpop.permute.xlu0 %5819  ;;  %10708 = vmatprep.mubr.msk.f32.mxu0 %vm979_vm1, %v9872_v36  ;;  %10775 = vmatprep.mubr.msk.f32.mxu1 %vm1254_vm0, %v9969_v1 }
 0x251   : > { %7417 = vrot.lane.b32.xlu1 %v7391_v51, %s11284_s13  ;;  %v5846_v54 = vsel %vm622_vm2, %v13179_v56, %v13796_v29 }
 0x252   : > { %8595 = vrot.lane.b32.xlu0 %v8569_v9, %s11284_s13 }
 0x253   : > { %v7849_v50 = vpop.permute.xlu1 %7848  ;;  %10709 = vmatmul.mubr.msk.f32.gmra.mrb[4].mxu0 %vm979_vm1, %v9873_v3  ;;  %10776 = vmatmul.mubr.msk.f32.gmra.mrb[2].mxu1 %vm1254_vm0, %v9970_v55  ;;  %v9910_v55 = vld [vmem:[%s14630_s3 + $0x288] sm:$0xff] }
 0x254   : > { %v7870_v38 = vcombine.low %v7845_v41, %v7849_v50  ;;  %v7871_v30 = vcombine.high %v7845_v41, %v7849_v50  ;;  %v6986_v52 = vpop.permute.xlu0 %6985  ;;  %10711 = vmatprep.mubr.msk.f32.mxu0 %vm979_vm1, %v9874_v13  ;;  %10778 = vmatprep.mubr.msk.f32.mxu1 %vm1254_vm0, %v9971_v45  ;;  %v9911_v13 = vld [vmem:[%s14630_s3 + $0x290] sm:$0xff] }
 0x255   : > { %7421 = vrot.lane.b32.xlu1 %v7395_v48, %s11285_s14  ;;  %v7012_v21 = vsel %vm622_vm2, %v13194_v34, %v6986_v52  ;;  %v10009_v52 = vld [vmem:[%s14631_s4 + $0x308] sm:$0xff] }
 0x256   : > { %v7878_v2 = vrot.slane %v7870_v38, %v11393_v7  ;;  %v7885_v31 = vrot.slane %v7871_v30, %v11393_v7 }
 0x257   : > { %v5824_v8 = vpop.permute.xlu1 %5823  ;;  %10712 = vmatmul.mubr.msk.f32.gmra.mrb[6].mxu0 %vm979_vm1, %v9875_v44  ;;  %10779 = vmatmul.mubr.msk.f32.gmra.mrb[4].mxu1 %vm1254_vm0, %v9972_v16  ;;  %v9912_v44 = vld [vmem:[%s14630_s3 + $0x298] sm:$0xff]  ;;  %v10010_v16 = vld [vmem:[%s14631_s4 + $0x310] sm:$0xff] }
 0x258   : > { %v7886_v60 = vcombine.low %v7862_v11, %v7878_v2  ;;  %v7887_v0 = vcombine.high %v7862_v11, %v7878_v2  ;;  %v6990_v42 = vpop.permute.xlu0 %6989  ;;  %10730 = vmatprep.mubr.msk.f32.mxu0 %vm979_vm1, %v9909_v4  ;;  %10781 = vmatprep.mubr.msk.f32.mxu1 %vm1254_vm0, %v9973_v62  ;;  %v7902_v43 = vcombine.low %v7869_v26, %v7885_v31  ;;  %v10011_v2 = vld [vmem:[%s14631_s4 + $0x318] sm:$0xff]  ;;  %v9914_v62 = vld [vmem:[%s14630_s3 + $0x2a8] sm:$0xff] }
 0x259   : > { %8599 = vrot.lane.b32.xlu1 %v8573_v46, %s11285_s14  ;;  %v7903_v40 = vcombine.high %v7869_v26, %v7885_v31  ;;  %v5847_v24 = vsel %vm624_vm3, %v5846_v54, %v5824_v8  ;;  %v7013_v25 = vsel %vm624_vm3, %v7012_v21, %v6990_v42  ;;  %v10012_v31 = vld [vmem:[%s14631_s4 + $0x320] sm:$0xff]  ;;  %v9915_v8 = vld [vmem:[%s14630_s3 + $0x2b0] sm:$0xff] }
 0x25a   : > { %v13852_v59 = vrot.slane %v7886_v60, %v11415_v20  ;;  %v7901_v37 = vrot.slane %v7887_v0, %v11415_v20  ;;  %v7910_v47 = vrot.slane %v7902_v43, %v11415_v20  ;;  %v10014_v43 = vld [vmem:[%s14631_s4 + $0x330] sm:$0xff] }
 0x25b   : > { %v5828_v19 = vpop.permute.xlu1 %5827  ;;  %10782 = vmatmul.mubr.msk.f32.gmra.mrb[6].mxu1 %vm1254_vm0, %v9974_v17  ;;  %v7917_v15 = vrot.slane %v7903_v40, %v11415_v20  ;;  %v9950_v40 = vld [vmem:[%s14630_s3 + $0x2c0] sm:$0xff] }
 0x25c   : > { %v6994_v58 = vpop.permute.xlu0 %6993  ;;  %v7918_v35 = vcombine.high %v13852_v59, %v11278_v18  ;;  %10800 = vmatprep.mubr.msk.f32.mxu1 %vm1254_vm0, %v10008_v28  ;;  %v7919_v32 = vcombine.high %v7901_v37, %v11278_v18  ;;  %v7920_v23 = vcombine.high %v7910_v47, %v11278_v18  ;;  %v5848_v5 = vsel %vm626_vm4, %v5847_v24, %v5828_v19  ;;  %v10013_v28 = vld [vmem:[%s14631_s4 + $0x328] sm:$0xff] }
 0x25d   : > { %7927 = vrot.lane.b32.xlu1 %v7901_v37, %s11280_s30  ;;  %v7921_v34 = vcombine.high %v7917_v15, %v11278_v18  ;;  %v7014_v1 = vsel %vm626_vm4, %v7013_v25, %v6994_v58  ;;  %v9916_v37 = vld [vmem:[%s14630_s3 + $0x2b8] sm:$0xff] }
 0x25e   : > { %7923 = vrot.lane.b32.xlu0 %v7918_v35, %s11279_s26 }
 0x25f   : > { %v5832_v33 = vpop.permute.xlu1 %5831 }
 0x260   : > { %v6998_v6 = vpop.permute.xlu0 %6997  ;;  %v5849_v36 = vsel %vm628_vm5, %v5848_v5, %v5832_v33 }
 0x261   : > { %7935 = vrot.lane.b32.xlu1 %v7910_v47, %s11282_s11  ;;  %v7015_v48 = vsel %vm628_vm5, %v7014_v1, %v6998_v6 }
 0x262   : > { %7931 = vrot.lane.b32.xlu0 %v7919_v32, %s11281_s10 }
 0x263   : > { %v5836_v63 = vpop.permute.xlu1 %5835 }
 0x264   : > { %v7002_v57 = vpop.permute.xlu0 %7001  ;;  %v5850_v41 = vsel %vm630_vm6, %v5849_v36, %v5836_v63 }
 0x265   : > { %7943 = vrot.lane.b32.xlu1 %v7917_v15, %s11284_s13  ;;  %v7016_v45 = vsel %vm630_vm6, %v7015_v48, %v7002_v57  ;;  %v10015_v15 = vld [vmem:[%s14631_s4 + $0x338] sm:$0xff] }
 0x266   : > { %7939 = vrot.lane.b32.xlu0 %v7920_v23, %s11283_s12 }
 0x267   : > { %v5840_v27 = vpop.permute.xlu1 %5839 }
 0x268   : > { %v7006_v51 = vpop.permute.xlu0 %7005  ;;  %v5851_v56 = vsel %vm632_vm7, %v5850_v41, %v5840_v27 }
 0x269   : > { %v7017_v10 = vsel %vm632_vm7, %v7016_v45, %v7006_v51 }
 0x26a   : > { %7947 = vrot.lane.b32.xlu0 %v7921_v34, %s11285_s14 }
 0x26b   : > { %v5844_v29 = vpop.permute.xlu1 %5843 }
 0x26c   : > { %v5852_v9 = vsel %vm634_vm8, %v5851_v56, %v5844_v29  ;;  %v8381_v3 = vpop.permute.xlu0 %8380 }
 0x26d   : > { %10728 = vmatprep.subr.msk.mxu0 %vm1004_vm10, %v5852_v9 }
 0x26e   : > { %10729 = vmatpush3.msk.msra.mxu0 %vm1004_vm10, %v5852_v9 }
 0x26f   : > { %v7010_v50 = vpop.permute.xlu1 %7009  ;;  %10731 = vmatmul.mubr.msk.f32.vlgmr.msra.gmra.mrb[0].mxu0 %vm979_vm1, %v9910_v55 }
 0x270   : > { %v7018_v38 = vsel %vm634_vm8, %v7017_v10, %v7010_v50  ;;  %v8385_v30 = vpop.permute.xlu0 %8384  ;;  %10733 = vmatprep.mubr.msk.f32.mxu0 %vm979_vm1, %v9911_v13 }
 0x271   : > { %10798 = vmatprep.subr.msk.mxu1 %vm1279_vm9, %v7018_v38  ;;  %v8392_v46 = vcombine.low %v8381_v3, %v8385_v30  ;;  %v8393_v0 = vcombine.high %v8381_v3, %v8385_v30 }
 0x272   : > { %10799 = vmatpush3.msk.msra.mxu1 %vm1279_vm9, %v7018_v38 }
 0x273   : > { %v8383_v4 = vpop.permute.xlu1 %8382  ;;  %10801 = vmatmul.mubr.msk.f32.vlgmr.msra.gmra.mrb[0].mxu1 %vm1254_vm0, %v10009_v52  ;;  %10734 = vmatmul.mubr.msk.f32.gmra.mrb[2].mxu0 %vm979_vm1, %v9912_v44  ;;  %v8400_v19 = vrot.slane %v8392_v46, %v11393_v7  ;;  %v8407_v47 = vrot.slane %v8393_v0, %v11393_v7  ;;  %v9953_v46 = vld [vmem:[%s14630_s3 + $0x2d8] sm:$0xff]  ;;  %v9954_v0 = vld [vmem:[%s14630_s3 + $0x2e0] sm:$0xff] }
 0x274   : > { %v6358_v11 = vpop.permute.xlu0 %6357  ;;  %10803 = vmatprep.mubr.msk.f32.mxu1 %vm1254_vm0, %v10010_v16  ;;  %10736 = vmatprep.mubr.msk.f32.mxu0 %vm979_vm1, %v9913_v12 }
 0x275   : > { %v6384_v55 = vsel %vm622_vm2, %v13358_v22, %v6358_v11  ;;  %v9952_v11 = vld [vmem:[%s14630_s3 + $0x2d0] sm:$0xff] }
 0x277   : > { %v8387_v60 = vpop.permute.xlu1 %8386  ;;  %10804 = vmatmul.mubr.msk.f32.gmra.mrb[2].mxu1 %vm1254_vm0, %v10011_v2  ;;  %10737 = vmatmul.mubr.msk.f32.gmra.mrb[4].mxu0 %vm979_vm1, %v9914_v62 }
 0x278   : > { %v8408_v42 = vcombine.low %v8383_v4, %v8387_v60  ;;  %v8409_v17 = vcombine.high %v8383_v4, %v8387_v60  ;;  %v7500_v26 = vpop.permute.xlu0 %7499  ;;  %10806 = vmatprep.mubr.msk.f32.mxu1 %vm1254_vm0, %v10012_v31  ;;  %10739 = vmatprep.mubr.msk.f32.mxu0 %vm979_vm1, %v9915_v8  ;;  %v9951_v4 = vld [vmem:[%s14630_s3 + $0x2c8] sm:$0xff]  ;;  %v10051_v60 = vld [vmem:[%s14631_s4 + $0x350] sm:$0xff] }
 0x279   : > { %v7526_v5 = vsel %vm622_vm2, %v13373_v49, %v7500_v26  ;;  %v10050_v8 = vld [vmem:[%s14631_s4 + $0x348] sm:$0xff]  ;;  %v10052_v26 = vld [vmem:[%s14631_s4 + $0x358] sm:$0xff] }
 0x27a   : > { %v8416_v58 = vrot.slane %v8408_v42, %v11393_v7  ;;  %v8423_v35 = vrot.slane %v8409_v17, %v11393_v7  ;;  %v10049_v7 = vld [vmem:[%s14631_s4 + $0x340] sm:$0xff] }
 0x27b   : > { %v6362_v33 = vpop.permute.xlu1 %6361  ;;  %10807 = vmatmul.mubr.msk.f32.gmra.mrb[4].mxu1 %vm1254_vm0, %v10013_v28  ;;  %10740 = vmatmul.mubr.msk.f32.gmra.mrb[6].mxu0 %vm979_vm1, %v9916_v37  ;;  %v9955_v28 = vld [vmem:[%s14630_s3 + $0x2e8] sm:$0xff]  ;;  %v10053_v37 = vld [vmem:[%s14631_s4 + $0x360] sm:$0xff] }
 0x27c   : > { %v8424_v6 = vcombine.low %v8400_v19, %v8416_v58  ;;  %v8425_v32 = vcombine.high %v8400_v19, %v8416_v58  ;;  %v7504_v63 = vpop.permute.xlu0 %7503  ;;  %10809 = vmatprep.mubr.msk.f32.mxu1 %vm1254_vm0, %v10014_v43  ;;  %10758 = vmatprep.mubr.msk.f32.mxu0 %vm979_vm1, %v9950_v40  ;;  %v8440_v57 = vcombine.low %v8407_v47, %v8423_v35  ;;  %v9956_v43 = vld [vmem:[%s14630_s3 + $0x2f0] sm:$0xff]  ;;  %v10054_v40 = vld [vmem:[%s14631_s4 + $0x368] sm:$0xff] }
 0x27d   : > { %v8441_v27 = vcombine.high %v8407_v47, %v8423_v35  ;;  %v7527_v41 = vsel %vm624_vm3, %v7526_v5, %v7504_v63  ;;  %v6385_v48 = vsel %vm624_vm3, %v6384_v55, %v6362_v33  ;;  %v9957_v33 = vld [vmem:[%s14630_s3 + $0x2f8] sm:$0xff]  ;;  %v10055_v47 = vld [vmem:[%s14631_s4 + $0x370] sm:$0xff] }
 0x27e   : > { %v13956_v21 = vrot.slane %v8424_v6, %v11415_v20  ;;  %v8439_v23 = vrot.slane %v8425_v32, %v11415_v20  ;;  %v8448_v51 = vrot.slane %v8440_v57, %v11415_v20  ;;  %v9991_v6 = vld [vmem:[%s14630_s3 + $0x300] sm:$0xff]  ;;  %v10056_v57 = vld [vmem:[%s14631_s4 + $0x378] sm:$0xff] }
 0x27f   : > { %v6366_v54 = vpop.permute.xlu1 %6365  ;;  %10810 = vmatmul.mubr.msk.f32.gmra.mrb[6].mxu1 %vm1254_vm0, %v10015_v15  ;;  %v8455_v56 = vrot.slane %v8441_v27, %v11415_v20 }
 0x280   : > { %v7508_v24 = vpop.permute.xlu0 %7507  ;;  %8465 = vrot.lane.b32.xlu0 %v8439_v23, %s11280_s30  ;;  %v8456_v25 = vcombine.high %v13956_v21, %v11278_v18  ;;  %10828 = vmatprep.mubr.msk.f32.mxu1 %vm1254_vm0, %v10049_v7  ;;  %v8457_v1 = vcombine.high %v8439_v23, %v11278_v18  ;;  %v8458_v3 = vcombine.high %v8448_v51, %v11278_v18  ;;  %v10090_v23 = vld [vmem:[%s14631_s4 + $0x380] sm:$0xff]  ;;  %s14346_s30 = sld [smem:[#allocation2 + $0x4]] }
 0x281   : > { %v7528_v9 = vsel %vm626_vm4, %v7527_v41, %v7508_v24  ;;  %v6386_v20 = vsel %vm626_vm4, %v6385_v48, %v6366_v54  ;;  %v8459_v50 = vcombine.high %v8455_v56, %v11278_v18 }
 0x282   : > { %8461 = vrot.lane.b32.xlu1 %v8456_v25, %s11279_s26  ;;  %s10150_s26 = sld [smem:[#allocation2 + $0x3]] }
 0x283   : > { %v6370_v34 = vpop.permute.xlu1 %6369 }
 0x284   : > { %v7512_v36 = vpop.permute.xlu0 %7511  ;;  %8473 = vrot.lane.b32.xlu0 %v8448_v51, %s11282_s11  ;;  %v6387_v38 = vsel %vm628_vm5, %v6386_v20, %v6370_v34  ;;  %v10091_v20 = vld [vmem:[%s14631_s4 + $0x388] sm:$0xff] }
 0x285   : > { %v7529_v13 = vsel %vm628_vm5, %v7528_v9, %v7512_v36  ;;  %v9992_v9 = vld [vmem:[%s14630_s3 + $0x308] sm:$0xff] }
 0x286   : > { %8469 = vrot.lane.b32.xlu1 %v8457_v1, %s11281_s10  ;;  %s14374_s10 = sld [smem:[#allocation2]] }
 0x287   : > { %v6374_v29 = vpop.permute.xlu1 %6373 }
 0x288   : > { %v7516_v49 = vpop.permute.xlu0 %7515  ;;  %8481 = vrot.lane.b32.xlu0 %v8455_v56, %s11284_s13  ;;  %v6388_v30 = vsel %vm630_vm6, %v6387_v38, %v6374_v29  ;;  %v9995_v38 = vld [vmem:[%s14630_s3 + $0x320] sm:$0xff] }
 0x289   : > { %v7530_v52 = vsel %vm630_vm6, %v7529_v13, %v7516_v49 }
 0x28a   : > { %8477 = vrot.lane.b32.xlu1 %v8458_v3, %s11283_s12  ;;  %s14435_s12 = sshll.u32 %s14656_s27, 6 }
 0x28b   : > { %v6378_v45 = vpop.permute.xlu1 %6377  ;;  %s14466_s22 = scalar_lea.vmem %s14633_s6, %s14435_s12  ;;  %s14565_s20 = scalar_lea.vmem %s14634_s7, %s14435_s12 }
 0x28c   : > { %v7520_v10 = vpop.permute.xlu0 %7519  ;;  %v6389_v22 = vsel %vm632_vm7, %v6388_v30, %v6378_v45  ;;  %s10152_s11 = sadd.f32 -1.0, %s14374_s10  ;;  %s14573_s21 = scalar_lea.vmem %s14632_s5, %s14435_s12 }
 0x28d   : > { %v7531_v18 = vsel %vm632_vm7, %v7530_v52, %v7520_v10  ;;  %v9994_v10 = vld [vmem:[%s14630_s3 + $0x318] sm:$0xff] }
 0x28e   : > { %8485 = vrot.lane.b32.xlu1 %v8459_v50, %s11285_s14  ;;  %v10092_v50 = vld [vmem:[%s14631_s4 + $0x390] sm:$0xff]  ;;  %s14456_s14 = scalar_lea.vmem %s14635_s8, %s14435_s12 }
 0x28f   : > { %v6382_v44 = vpop.permute.xlu1 %6381 }
 0x290   : > { %v6390_v16 = vsel %vm634_vm8, %v6389_v22, %v6382_v44  ;;  %v6884_v12 = vpop.permute.xlu0 %6883  ;;  %v10093_v22 = vld [vmem:[%s14631_s4 + $0x398] sm:$0xff]  ;;  %v9996_v44 = vld [vmem:[%s14630_s3 + $0x328] sm:$0xff] }
 0x291   : > { %10756 = vmatprep.subr.msk.mxu0 %vm1004_vm10, %v6390_v16  ;;  %v6910_v19 = vsel %vm622_vm2, %v13528_v39, %v6884_v12  ;;  %v9997_v12 = vld [vmem:[%s14630_s3 + $0x330] sm:$0xff] }
 0x292   : > { %10757 = vmatpush3.msk.msra.mxu0 %vm1004_vm10, %v6390_v16  ;;  %v10094_v16 = vld [vmem:[%s14631_s4 + $0x3a0] sm:$0xff] }
 0x293   : > { %v7524_v2 = vpop.permute.xlu1 %7523  ;;  %10759 = vmatmul.mubr.msk.f32.vlgmr.msra.gmra.mrb[0].mxu0 %vm979_vm1, %v9951_v4 }
 0x294   : > { %v7532_v62 = vsel %vm634_vm8, %v7531_v18, %v7524_v2  ;;  %v8038_v31 = vpop.permute.xlu0 %8037  ;;  %10761 = vmatprep.mubr.msk.f32.mxu0 %vm979_vm1, %v9952_v11  ;;  %v10095_v2 = vld [vmem:[%s14631_s4 + $0x3a8] sm:$0xff] }
 0x295   : > { %10826 = vmatprep.subr.msk.mxu1 %vm1279_vm9, %v7532_v62  ;;  %v8064_v34 = vsel %vm622_vm2, %v13541_v14, %v8038_v31  ;;  %v9993_v14 = vld [vmem:[%s14630_s3 + $0x310] sm:$0xff] }
 0x296   : > { %10827 = vmatpush3.msk.msra.mxu1 %vm1279_vm9, %v7532_v62  ;;  %v9998_v62 = vld [vmem:[%s14630_s3 + $0x338] sm:$0xff]  ;;  %v10096_v31 = vld [vmem:[%s14631_s4 + $0x3b0] sm:$0xff] }
 0x297   : > { %v6888_v42 = vpop.permute.xlu1 %6887  ;;  %10829 = vmatmul.mubr.msk.f32.vlgmr.msra.gmra.mrb[0].mxu1 %vm1254_vm0, %v10050_v8  ;;  %10762 = vmatmul.mubr.msk.f32.gmra.mrb[2].mxu0 %vm979_vm1, %v9953_v46  ;;  %v10032_v8 = vld [vmem:[%s14630_s3 + $0x340] sm:$0xff] }
 0x298   : > { %v8042_v17 = vpop.permute.xlu0 %8041  ;;  %10831 = vmatprep.mubr.msk.f32.mxu1 %vm1254_vm0, %v10051_v60  ;;  %10764 = vmatprep.mubr.msk.f32.mxu0 %vm979_vm1, %v9954_v0  ;;  %v6911_v39 = vsel %vm624_vm3, %v6910_v19, %v6888_v42  ;;  %v10097_v42 = vld [vmem:[%s14631_s4 + $0x3b8] sm:$0xff] }
 0x299   : > { %v8065_v36 = vsel %vm624_vm3, %v8064_v34, %v8042_v17  ;;  %v10131_v17 = vld [vmem:[%s14631_s4 + $0x3c0] sm:$0xff]  ;;  %v10134_v34 = vld [vmem:[%s14631_s4 + $0x3d8] sm:$0xff] }
 0x29b   : > { %v6892_v58 = vpop.permute.xlu1 %6891  ;;  %10832 = vmatmul.mubr.msk.f32.gmra.mrb[2].mxu1 %vm1254_vm0, %v10052_v26  ;;  %10765 = vmatmul.mubr.msk.f32.gmra.mrb[4].mxu0 %vm979_vm1, %v9955_v28 }
 0x29c   : > { %v8046_v35 = vpop.permute.xlu0 %8045  ;;  %10834 = vmatprep.mubr.msk.f32.mxu1 %vm1254_vm0, %v10053_v37  ;;  %10767 = vmatprep.mubr.msk.f32.mxu0 %vm979_vm1, %v9956_v43  ;;  %v6912_v63 = vsel %vm626_vm4, %v6911_v39, %v6892_v58 }
 0x29d   : > { %v8066_v41 = vsel %vm626_vm4, %v8065_v36, %v8046_v35  ;;  %v10037_v36 = vld [vmem:[%s14630_s3 + $0x368] sm:$0xff] }
 0x29f   : > { %v6896_v32 = vpop.permute.xlu1 %6895  ;;  %10835 = vmatmul.mubr.msk.f32.gmra.mrb[4].mxu1 %vm1254_vm0, %v10054_v40  ;;  %10768 = vmatmul.mubr.msk.f32.gmra.mrb[6].mxu0 %vm979_vm1, %v9957_v33 }
 0x2a0   : > { %v8050_v15 = vpop.permute.xlu0 %8049  ;;  %10837 = vmatprep.mubr.msk.f32.mxu1 %vm1254_vm0, %v10055_v47  ;;  %10786 = vmatprep.mubr.msk.f32.mxu0 %vm979_vm1, %v9991_v6  ;;  %v6913_v7 = vsel %vm628_vm5, %v6912_v63, %v6896_v32  ;;  %v10033_v32 = vld [vmem:[%s14630_s3 + $0x348] sm:$0xff] }
 0x2a1   : > { %v8067_v49 = vsel %vm628_vm5, %v8066_v41, %v8050_v15  ;;  %v10135_v41 = vld [vmem:[%s14631_s4 + $0x3e0] sm:$0xff] }
 0x2a3   : > { %v6900_v54 = vpop.permute.xlu1 %6899  ;;  %10838 = vmatmul.mubr.msk.f32.gmra.mrb[6].mxu1 %vm1254_vm0, %v10056_v57 }
 0x2a4   : > { %v8054_v24 = vpop.permute.xlu0 %8053  ;;  %10856 = vmatprep.mubr.msk.f32.mxu1 %vm1254_vm0, %v10090_v23  ;;  %v6914_v25 = vsel %vm630_vm6, %v6913_v7, %v6900_v54  ;;  %v10132_v54 = vld [vmem:[%s14631_s4 + $0x3c8] sm:$0xff] }
 0x2a5   : > { %v8068_v3 = vsel %vm630_vm6, %v8067_v49, %v8054_v24  ;;  %v10035_v24 = vld [vmem:[%s14630_s3 + $0x358] sm:$0xff] }
 0x2a6   : > { %v10039_v49 = vld [vmem:[%s14630_s3 + $0x378] sm:$0xff] }
 0x2a7   : > { %v6904_v27 = vpop.permute.xlu1 %6903 }
 0x2a8   : > { %v8058_v5 = vpop.permute.xlu0 %8057  ;;  %v6915_v51 = vsel %vm632_vm7, %v6914_v25, %v6904_v27  ;;  %v10133_v25 = vld [vmem:[%s14631_s4 + $0x3d0] sm:$0xff]  ;;  %v10036_v27 = vld [vmem:[%s14630_s3 + $0x360] sm:$0xff] }
 0x2a9   : > { %v8069_v55 = vsel %vm632_vm7, %v8068_v3, %v8058_v5 }
 0x2ab   : > { %v6908_v1 = vpop.permute.xlu1 %6907 }
 0x2ac   : > { %v6916_v56 = vsel %vm634_vm8, %v6915_v51, %v6908_v1  ;;  %v7398_v29 = vpop.permute.xlu0 %7397 }
 0x2ad   : > { %10784 = vmatprep.subr.msk.mxu0 %vm1004_vm10, %v6916_v56  ;;  %v7424_v4 = vsel %vm622_vm2, %v13688_v61, %v7398_v29 }
 0x2ae   : > { %10785 = vmatpush3.msk.msra.mxu0 %vm1004_vm10, %v6916_v56  ;;  %v10038_v56 = vld [vmem:[%s14630_s3 + $0x370] sm:$0xff] }
 0x2af   : > { %v8062_v48 = vpop.permute.xlu1 %8061  ;;  %10787 = vmatmul.mubr.msk.f32.vlgmr.msra.gmra.mrb[0].mxu0 %vm979_vm1, %v9992_v9 }
 0x2b0   : > { %v8070_v13 = vsel %vm634_vm8, %v8069_v55, %v8062_v48  ;;  %v8576_v45 = vpop.permute.xlu0 %8575  ;;  %10789 = vmatprep.mubr.msk.f32.mxu0 %vm979_vm1, %v9993_v14  ;;  %v10137_v55 = vld [vmem:[%s14631_s4 + $0x3f0] sm:$0xff]  ;;  %v10073_v48 = vld [vmem:[%s14630_s3 + $0x380] sm:$0xff] }
 0x2b1   : > { %10854 = vmatprep.subr.msk.mxu1 %vm1279_vm9, %v8070_v13  ;;  %v8602_v35 = vsel %vm622_vm2, %v13709_v53, %v8576_v45  ;;  %v10034_v53 = vld [vmem:[%s14630_s3 + $0x350] sm:$0xff] }
 0x2b2   : > { %10855 = vmatpush3.msk.msra.mxu1 %vm1279_vm9, %v8070_v13 }
 0x2b3   : > { %v7402_v30 = vpop.permute.xlu1 %7401  ;;  %10857 = vmatmul.mubr.msk.f32.vlgmr.msra.gmra.mrb[0].mxu1 %vm1254_vm0, %v10091_v20  ;;  %10790 = vmatmul.mubr.msk.f32.gmra.mrb[2].mxu0 %vm979_vm1, %v9994_v10  ;;  %v10138_v20 = vld [vmem:[%s14631_s4 + $0x3f8] sm:$0xff] }
 0x2b4   : > { %v8580_v52 = vpop.permute.xlu0 %8579  ;;  %10859 = vmatprep.mubr.msk.f32.mxu1 %vm1254_vm0, %v10092_v50  ;;  %10792 = vmatprep.mubr.msk.f32.mxu0 %vm979_vm1, %v9995_v38  ;;  %v7425_v61 = vsel %vm624_vm3, %v7424_v4, %v7402_v30  ;;  %v10078_v4 = vld [vmem:[%s14630_s3 + $0x3a8] sm:$0xff] }
 0x2b5   : > { %v8603_v40 = vsel %vm624_vm3, %v8602_v35, %v8580_v52  ;;  %v10117_v35 = vld [vmem:[%s14630_s3 + $0x3d8] sm:$0xff] }
 0x2b7   : > { %v7406_v18 = vpop.permute.xlu1 %7405  ;;  %10860 = vmatmul.mubr.msk.f32.gmra.mrb[2].mxu1 %vm1254_vm0, %v10093_v22  ;;  %10793 = vmatmul.mubr.msk.f32.gmra.mrb[4].mxu0 %vm979_vm1, %v9996_v44  ;;  %v10074_v22 = vld [vmem:[%s14630_s3 + $0x388] sm:$0xff]  ;;  %v10075_v44 = vld [vmem:[%s14630_s3 + $0x390] sm:$0xff] }
 0x2b8   : > { %v8584_v11 = vpop.permute.xlu0 %8583  ;;  %10862 = vmatprep.mubr.msk.f32.mxu1 %vm1254_vm0, %v10094_v16  ;;  %10795 = vmatprep.mubr.msk.f32.mxu0 %vm979_vm1, %v9997_v12  ;;  %v7426_v60 = vsel %vm626_vm4, %v7425_v61, %v7406_v18  ;;  %v10076_v16 = vld [vmem:[%s14630_s3 + $0x398] sm:$0xff]  ;;  %v10077_v12 = vld [vmem:[%s14630_s3 + $0x3a0] sm:$0xff]  ;;  %v10079_v18 = vld [vmem:[%s14630_s3 + $0x3b0] sm:$0xff] }
 0x2b9   : > { %v8604_v39 = vsel %vm626_vm4, %v8603_v40, %v8584_v11  ;;  %v10080_v11 = vld [vmem:[%s14630_s3 + $0x3b8] sm:$0xff]  ;;  %v10118_v40 = vld [vmem:[%s14630_s3 + $0x3e0] sm:$0xff] }
 0x2bb   : > { %v7410_v46 = vpop.permute.xlu1 %7409  ;;  %10863 = vmatmul.mubr.msk.f32.gmra.mrb[4].mxu1 %vm1254_vm0, %v10095_v2  ;;  %10796 = vmatmul.mubr.msk.f32.gmra.mrb[6].mxu0 %vm979_vm1, %v9998_v62  ;;  %v10114_v2 = vld [vmem:[%s14630_s3 + $0x3c0] sm:$0xff] }
 0x2bc   : > { %v8588_v0 = vpop.permute.xlu0 %8587  ;;  %10865 = vmatprep.mubr.msk.f32.mxu1 %vm1254_vm0, %v10096_v31  ;;  %10814 = vmatprep.mubr.msk.f32.mxu0 %vm979_vm1, %v10032_v8  ;;  %v7427_v26 = vsel %vm628_vm5, %v7426_v60, %v7410_v46 }
 0x2bd   : > { %v8605_v63 = vsel %vm628_vm5, %v8604_v39, %v8588_v0  ;;  %v10120_v39 = vld [vmem:[%s14630_s3 + $0x3f0] sm:$0xff] }
 0x2bf   : > { %v7414_v28 = vpop.permute.xlu1 %7413  ;;  %10866 = vmatmul.mubr.msk.f32.gmra.mrb[6].mxu1 %vm1254_vm0, %v10097_v42 }
 0x2c0   : > { %10884 = vmatprep.mubr.msk.f32.mxu1 %vm1254_vm0, %v10131_v17  ;;  %v7428_v37 = vsel %vm630_vm6, %v7427_v26, %v7414_v28  ;;  %v8592_v43 = vpop.permute.xlu0 %8591 }
 0x2c1   : > { %v8606_v15 = vsel %vm630_vm6, %v8605_v63, %v8592_v43  ;;  %v14310_v63 = vstv %s10150_s26 }
 0x2c3   : > { %v7418_v19 = vpop.permute.xlu1 %7417 }
 0x2c4   : > { %v7429_v58 = vsel %vm632_vm7, %v7428_v37, %v7418_v19  ;;  %v8596_v47 = vpop.permute.xlu0 %8595 }
 0x2c5   : > { %v8607_v57 = vsel %vm632_vm7, %v8606_v15, %v8596_v47  ;;  %v10121_v47 = vld [vmem:[%s14630_s3 + $0x3f8] sm:$0xff] }
 0x2c7   : > { %v7422_v33 = vpop.permute.xlu1 %7421 }
 0x2c8   : > { %v7430_v6 = vsel %vm634_vm8, %v7429_v58, %v7422_v33  ;;  %v10116_v58 = vld [vmem:[%s14630_s3 + $0x3d0] sm:$0xff]  ;;  %v10119_v33 = vld [vmem:[%s14630_s3 + $0x3e8] sm:$0xff] }
 0x2c9   : > { %10812 = vmatprep.subr.msk.mxu0 %vm1004_vm10, %v7430_v6 }
 0x2ca   : > { %10813 = vmatpush3.msk.msra.mxu0 %vm1004_vm10, %v7430_v6  ;;  %v14306_v6 = vstv %s10148_s16 }
 0x2cb   : > { %v8600_v23 = vpop.permute.xlu1 %8599  ;;  %10815 = vmatmul.mubr.msk.f32.vlgmr.msra.gmra.mrb[0].mxu0 %vm979_vm1, %v10033_v32  ;;  %v14308_v32 = vstv %s10149_s17 }
 0x2cc   : > { %v8608_v7 = vsel %vm634_vm8, %v8607_v57, %v8600_v23  ;;  %10817 = vmatprep.mubr.msk.f32.mxu0 %vm979_vm1, %v10034_v53 }
 0x2cd   : > { %10882 = vmatprep.subr.msk.mxu1 %vm1279_vm9, %v8608_v7 }
 0x2ce   : > { %10883 = vmatpush3.msk.msra.mxu1 %vm1279_vm9, %v8608_v7 }
 0x2cf   : > { %v7928_v5 = vpop.permute.xlu1 %7927  ;;  %10885 = vmatmul.mubr.msk.f32.vlgmr.msra.gmra.mrb[0].mxu1 %vm1254_vm0, %v10132_v54  ;;  %10818 = vmatmul.mubr.msk.f32.gmra.mrb[2].mxu0 %vm979_vm1, %v10035_v24 }
 0x2d0   : > { %v7924_v51 = vpop.permute.xlu0 %7923  ;;  %10887 = vmatprep.mubr.msk.f32.mxu1 %vm1254_vm0, %v10133_v25  ;;  %10820 = vmatprep.mubr.msk.f32.mxu0 %vm979_vm1, %v10036_v27 }
 0x2d1   : > { %v7950_v1 = vsel %vm622_vm2, %v13852_v59, %v7924_v51  ;;  %v10136_v59 = vld [vmem:[%s14631_s4 + $0x3e8] sm:$0xff] }
 0x2d2   : > { %v7951_v29 = vsel %vm624_vm3, %v7950_v1, %v7928_v5 }
 0x2d3   : > { %10888 = vmatmul.mubr.msk.f32.gmra.mrb[2].mxu1 %vm1254_vm0, %v10134_v34  ;;  %10821 = vmatmul.mubr.msk.f32.gmra.mrb[4].mxu0 %vm979_vm1, %v10037_v36  ;;  %v7936_v14 = vpop.permute.xlu1 %7935 }
 0x2d4   : > { %v7932_v9 = vpop.permute.xlu0 %7931  ;;  %10890 = vmatprep.mubr.msk.f32.mxu1 %vm1254_vm0, %v10135_v41  ;;  %10823 = vmatprep.mubr.msk.f32.mxu0 %vm979_vm1, %v10038_v56 }
 0x2d5   : > { %v7952_v3 = vsel %vm626_vm4, %v7951_v29, %v7932_v9 }
 0x2d6   : > { %v7953_v13 = vsel %vm628_vm5, %v7952_v3, %v7936_v14 }
 0x2d7   : > { %10891 = vmatmul.mubr.msk.f32.gmra.mrb[4].mxu1 %vm1254_vm0, %v10136_v59  ;;  %10824 = vmatmul.mubr.msk.f32.gmra.mrb[6].mxu0 %vm979_vm1, %v10039_v49  ;;  %v7944_v50 = vpop.permute.xlu1 %7943 }
 0x2d8   : > { %v7940_v45 = vpop.permute.xlu0 %7939  ;;  %10893 = vmatprep.mubr.msk.f32.mxu1 %vm1254_vm0, %v10137_v55  ;;  %10842 = vmatprep.mubr.msk.f32.mxu0 %vm979_vm1, %v10073_v48 }
 0x2d9   : > { %v7954_v10 = vsel %vm630_vm6, %v7953_v13, %v7940_v45 }
 0x2da   : > { %v7955_v38 = vsel %vm632_vm7, %v7954_v10, %v7944_v50 }
 0x2db   : > { %10894 = vmatmul.mubr.msk.f32.gmra.mrb[6].mxu1 %vm1254_vm0, %v10138_v20 }
 0x2dc   : > { %v7948_v30 = vpop.permute.xlu0 %7947 }
 0x2dd   : > { %v7956_v52 = vsel %vm634_vm8, %v7955_v38, %v7948_v30 }
 0x2de   : > { %10840 = vmatprep.subr.msk.mxu0 %vm1004_vm10, %v7956_v52 }
 0x2df   : > { %10841 = vmatpush3.msk.msra.mxu0 %vm1004_vm10, %v7956_v52 }
 0x2e0   : > { %10843 = vmatmul.mubr.msk.f32.vlgmr.msra.gmra.mrb[0].mxu0 %vm979_vm1, %v10074_v22 }
 0x2e1   : > { %10845 = vmatprep.mubr.msk.f32.mxu0 %vm979_vm1, %v10075_v44 }
 0x2e4   : > { %10846 = vmatmul.mubr.msk.f32.gmra.mrb[2].mxu0 %vm979_vm1, %v10076_v16 }
 0x2e5   : > { %10848 = vmatprep.mubr.msk.f32.mxu0 %vm979_vm1, %v10077_v12 }
 0x2e8   : > { %10849 = vmatmul.mubr.msk.f32.gmra.mrb[4].mxu0 %vm979_vm1, %v10078_v4 }
 0x2e9   : > { %10851 = vmatprep.mubr.msk.f32.mxu0 %vm979_vm1, %v10079_v18 }
 0x2ec   : > { %10852 = vmatmul.mubr.msk.f32.gmra.mrb[6].mxu0 %vm979_vm1, %v10080_v11 }
 0x2ed   : > { %10870 = vmatprep.mubr.msk.f32.mxu0 %vm979_vm1, %v10114_v2 }
 0x2f2   : > { %v8466_v62 = vpop.permute.xlu0 %8465 }
 0x2f4   : > { %v8462_v61 = vpop.permute.xlu1 %8461 }
 0x2f5   : > { %v8488_v31 = vsel %vm622_vm2, %v13956_v21, %v8462_v61  ;;  %v10115_v21 = vld [vmem:[%s14630_s3 + $0x3c8] sm:$0xff]  ;;  %vm9095_vm2 = vcmask 523264  }
 0x2f6   : > { %v8489_v46 = vsel %vm624_vm3, %v8488_v31, %v8466_v62  ;;  %v8474_v60 = vpop.permute.xlu0 %8473 }
 0x2f8   : > { %v8470_v8 = vpop.permute.xlu1 %8469 }
 0x2f9   : > { %v8490_v0 = vsel %vm626_vm4, %v8489_v46, %v8470_v8  ;;  %v14393_v46 = vstv %s14346_s30 }
 0x2fa   : > { %v8491_v17 = vsel %vm628_vm5, %v8490_v0, %v8474_v60  ;;  %v8482_v28 = vpop.permute.xlu0 %8481 }
 0x2fc   : > { %v8478_v42 = vpop.permute.xlu1 %8477 }
 0x2fd   : > { %v8492_v26 = vsel %vm630_vm6, %v8491_v17, %v8478_v42 }
 0x2fe   : > { %v8493_v43 = vsel %vm632_vm7, %v8492_v26, %v8482_v28 }
 0x300   : > { %v8486_v37 = vpop.permute.xlu1 %8485 }
 0x301   : > { %v8494_v19 = vsel %vm634_vm8, %v8493_v43, %v8486_v37 }
 0x302   : > { %10868 = vmatprep.subr.msk.mxu0 %vm1004_vm10, %v8494_v19 }
 0x303   : > { %10869 = vmatpush3.msk.msra.mxu0 %vm1004_vm10, %v8494_v19 }
 0x304   : > { %10871 = vmatmul.mubr.msk.f32.vlgmr.msra.gmra.mrb[0].mxu0 %vm979_vm1, %v10115_v21 }
 0x305   : > { %10873 = vmatprep.mubr.msk.f32.mxu0 %vm979_vm1, %v10116_v58 }
 0x308   : > { %10874 = vmatmul.mubr.msk.f32.gmra.mrb[2].mxu0 %vm979_vm1, %v10117_v35 }
 0x309   : > { %10876 = vmatprep.mubr.msk.f32.mxu0 %vm979_vm1, %v10118_v40 }
 0x30c   : > { %10877 = vmatmul.mubr.msk.f32.gmra.mrb[4].mxu0 %vm979_vm1, %v10119_v33 }
 0x30d   : > { %10879 = vmatprep.mubr.msk.f32.mxu0 %vm979_vm1, %v10120_v39 }
 0x310   : > { %10880 = vmatmul.mubr.msk.f32.gmra.mrb[6].mxu0 %vm979_vm1, %v10121_v47 }
 0x3a2   : > { %v14312_v53 = vpop.f32.mrb[0].mxu1 }
 0x3a3   : > { %v8914_v15 = vsub.f32 %v14312_v53, %v14306_v6  ;;  %vm8930_vm11 = vcmp.lt.f32.partialorder %v14312_v53, %v14306_v6  ;;  %v9023_v57 = vmax.f32 %v14312_v53, 0.0  ;;  %v14319_v23 = vpop.f32.mrb[1].mxu1 }
 0x3a4   : > { %v8940_v7 = vsel %vm8930_vm11, %v14308_v32, %v14310_v63  ;;  %v8913_v54 = vsub.f32 %v14319_v23, %v14306_v6  ;;  %vm8929_vm12 = vcmp.lt.f32.partialorder %v14319_v23, %v14306_v6  ;;  %v9022_v24 = vmax.f32 %v14319_v23, 0.0 }
 0x3a5   : > { %v8922_v25 = vmul.f32 %v8914_v15, %v8914_v15  ;;  %v8948_v27 = vsub.f32 0.0, %v8940_v7  ;;  %v9039_v5 = vmax.f32 %v9023_v57, 1e-30  ;;  %v8939_v34 = vsel %vm8929_vm12, %v14308_v32, %v14310_v63 }
 0x3a6   : > { %v8921_v51 = vmul.f32 %v8913_v54, %v8913_v54  ;;  %v9038_v36 = vmax.f32 %v9022_v24, 1e-30  ;;  %v14340_v1 = vpop.f32.mrb[2].mxu1  ;;  %v8947_v56 = vsub.f32 0.0, %v8939_v34  ;;  %vm14445_vm4 = vcmp.gt.f32.partialorder %v9023_v57, 0.0 }
 0x3a7   : > { %v8956_v41 = vmul.f32 %v8948_v27, %v8922_v25  ;;  %11183 = vlog2.f32 %v9039_v5  ;;  %v8916_v29 = vsub.f32 %v14340_v1, %v14306_v6  ;;  %v14344_v9 = vpop.f32.mrb[3].mxu1  ;;  %vm8932_vm13 = vcmp.lt.f32.partialorder %v14340_v1, %v14306_v6 }
 0x3a8   : > { %11185 = vlog2.f32 %v9038_v36  ;;  %v9025_v59 = vmax.f32 %v14340_v1, 0.0  ;;  %v8915_v49 = vsub.f32 %v14344_v9, %v14306_v6  ;;  %v8955_v3 = vmul.f32 %v8947_v56, %v8921_v51 }
 0x3a9   : > { %v8965_v14 = vmul.f32 1.442695, %v8956_v41  ;;  %v8924_v55 = vmul.f32 %v8916_v29, %v8916_v29  ;;  %v8942_v48 = vsel %vm8932_vm13, %v14308_v32, %v14310_v63  ;;  %vm8931_vm14 = vcmp.lt.f32.partialorder %v14344_v9, %v14306_v6 }
 0x3aa   : > { %v8950_v13 = vsub.f32 0.0, %v8942_v48  ;;  %v9041_v45 = vmax.f32 %v9025_v59, 1e-30  ;;  %v8923_v20 = vmul.f32 %v8915_v49, %v8915_v49  ;;  %v14360_v10 = vpop.f32.mrb[4].mxu1  ;;  %v8963_v50 = vmul.f32 1.442695, %v8955_v3 }
 0x3ab   : > { %11187 = vpow2.f32 %v8965_v14  ;;  %v9024_v38 = vmax.f32 %v14344_v9, 0.0  ;;  %v14365_v30 = vpop.f32.mrb[5].mxu1  ;;  %v8941_v22 = vsel %vm8931_vm14, %v14308_v32, %v14310_v63  ;;  %v8918_v44 = vsub.f32 %v14360_v10, %v14306_v6 }
 0x3ac   : > { %v8958_v52 = vmul.f32 %v8950_v13, %v8924_v55  ;;  %11189 = vlog2.f32 %v9041_v45  ;;  %v8949_v16 = vsub.f32 0.0, %v8941_v22  ;;  %vm8934_vm15 = vcmp.lt.f32.partialorder %v14360_v10, %v14306_v6 }
 0x3ad   : > { %11191 = vpow2.f32 %v8963_v50  ;;  %v9040_v12 = vmax.f32 %v9024_v38, 1e-30  ;;  %v8926_v18 = vmul.f32 %v8918_v44, %v8918_v44  ;;  %v9027_v11 = vmax.f32 %v14360_v10, 0.0 }
 0x3ae   : > { %v8969_v4 = vmul.f32 1.442695, %v8958_v52  ;;  %v14381_v2 = vpop.f32.mrb[6].mxu1  ;;  %v8957_v62 = vmul.f32 %v8949_v16, %v8923_v20  ;;  %v8944_v61 = vsel %vm8934_vm15, %v14308_v32, %v14310_v63  ;;  %v8917_v31 = vsub.f32 %v14365_v30, %v14306_v6 }
 0x3af   : > { %11193 = vlog2.f32 %v9040_v12  ;;  %v14390_v8 = vpop.f32.mrb[7].mxu1  ;;  %v8952_v60 = vsub.f32 0.0, %v8944_v61  ;;  %v9043_v0 = vmax.f32 %v9027_v11, 1e-30  ;;  %vm8933_vm0 = vcmp.lt.f32.partialorder %v14365_v30, %v14306_v6 }
 0x3b0   : > { %11195 = vpow2.f32 %v8969_v4  ;;  %v8967_v17 = vmul.f32 1.442695, %v8957_v62  ;;  %v8925_v26 = vmul.f32 %v8917_v31, %v8917_v31  ;;  %v9026_v28 = vmax.f32 %v14365_v30, 0.0 }
 0x3b1   : > { %v11184_v42 = vpop.eup %11183  ;;  %v8960_v19 = vmul.f32 %v8952_v60, %v8926_v18  ;;  %11197 = vlog2.f32 %v9043_v0  ;;  %v8943_v21 = vsel %vm8933_vm0, %v14308_v32, %v14310_v63  ;;  %v8920_v47 = vsub.f32 %v14381_v2, %v14306_v6 }
 0x3b2   : > { %v11186_v37 = vpop.eup %11185  ;;  %v9049_v43 = vmul.f32 0.6931472, %v11184_v42  ;;  %11199 = vpow2.f32 %v8967_v17  ;;  %v8951_v35 = vsub.f32 0.0, %v8943_v21  ;;  %v9042_v39 = vmax.f32 %v9026_v28, 1e-30 }
 0x3b3   : > { %v9047_v58 = vmul.f32 0.6931472, %v11186_v37  ;;  %v8973_v33 = vmul.f32 1.442695, %v8960_v19  ;;  %vm8936_vm1 = vcmp.lt.f32.partialorder %v14381_v2, %v14306_v6  ;;  %v9029_v25 = vmax.f32 %v14381_v2, 0.0 }
 0x3b4   : > { %v9064_v40 = vmul.f32 %v14393_v46, %v9049_v43  ;;  %v8959_v54 = vmul.f32 %v8951_v35, %v8925_v26  ;;  %v8928_v51 = vmul.f32 %v8920_v47, %v8920_v47  ;;  %v8946_v34 = vsel %vm8936_vm1, %v14308_v32, %v14310_v63 }
 0x3b5   : > { %v11188_v15 = vpop.eup %11187  ;;  %v9063_v7 = vmul.f32 %v14393_v46, %v9047_v58  ;;  %11201 = vpow2.f32 %v8973_v33  ;;  %v8954_v49 = vsub.f32 0.0, %v8946_v34  ;;  %v9045_v14 = vmax.f32 %v9029_v25, 1e-30 }
 0x3b6   : > { %v11190_v27 = vpop.eup %11189  ;;  %v9073_v5 = vmul.f32 1.442695, %v9064_v40  ;;  %v8971_v29 = vmul.f32 1.442695, %v8959_v54  ;;  %11203 = vlog2.f32 %v9042_v39  ;;  %v14422_v3 = vstv %s10152_s11 }
 0x3b7   : > { %v11192_v36 = vpop.eup %11191  ;;  %v9071_v41 = vmul.f32 1.442695, %v9063_v7  ;;  %v9053_v56 = vmul.f32 0.6931472, %v11190_v27  ;;  %v8919_v13 = vsub.f32 %v14390_v8, %v14306_v6  ;;  %vm8935_vm3 = vcmp.lt.f32.partialorder %v14390_v8, %v14306_v6 }
 0x3b8   : > { %11205 = vpow2.f32 %v9073_v5  ;;  %v8962_v50 = vmul.f32 %v8954_v49, %v8928_v51  ;;  %v8945_v52 = vsel %vm8935_vm3, %v14308_v32, %v14310_v63  ;;  %v9028_v62 = vmax.f32 %v14390_v8, 0.0 }
 0x3b9   : > { %v11194_v55 = vpop.eup %11193  ;;  %11207 = vpow2.f32 %v9071_v41  ;;  %v9066_v48 = vmul.f32 %v14393_v46, %v9053_v56  ;;  %v8927_v44 = vmul.f32 %v8919_v13, %v8919_v13  ;;  %v8953_v16 = vsub.f32 0.0, %v8945_v52 }
 0x3ba   : > { %v11196_v45 = vpop.eup %11195  ;;  %v9051_v20 = vmul.f32 0.6931472, %v11194_v55  ;;  %11209 = vpow2.f32 %v8971_v29  ;;  %v8977_v18 = vmul.f32 1.442695, %v8962_v50  ;;  %v14440_v61 = vstv %s14374_s10 }
 0x3bb   : > { %v9077_v22 = vmul.f32 1.442695, %v9066_v48  ;;  %11211 = vlog2.f32 %v9045_v14  ;;  %v11198_v12 = vpop.eup %11197  ;;  %v8961_v0 = vmul.f32 %v8953_v16, %v8927_v44  ;;  %v8991_v32 = vmul.f32 %v11188_v15, %v14422_v3 }
 0x3bc   : > { %v9065_v4 = vmul.f32 %v14393_v46, %v9051_v20  ;;  %v11200_v31 = vpop.eup %11199  ;;  %v9057_v60 = vmul.f32 0.6931472, %v11198_v12  ;;  %v9044_v17 = vmax.f32 %v9028_v62, 1e-30  ;;  %v8981_v43 = vmul.f32 %v11188_v15, %v14440_v61 }
 0x3bd   : > { %11213 = vpow2.f32 %v9077_v22  ;;  %v8975_v37 = vmul.f32 1.442695, %v8961_v0  ;;  %v8999_v57 = vadd.f32 1.0, %v8991_v32  ;;  %v8980_v21 = vmul.f32 %v11192_v36, %v14440_v61 }
 0x3be   : > { %v9075_v42 = vmul.f32 1.442695, %v9065_v4  ;;  %11215 = vpow2.f32 %v8977_v18  ;;  %v9068_v26 = vmul.f32 %v14393_v46, %v9057_v60  ;;  %v8990_v58 = vmul.f32 %v11192_v36, %v14422_v3 }
 0x3bf   : > { %v11202_v19 = vpop.eup %11201  ;;  %v8993_v35 = vmul.f32 %v11196_v45, %v14422_v3  ;;  %v14471_v39 = vsel %vm8930_vm11, %v8981_v43, %v8999_v57  ;;  %v8983_v47 = vmul.f32 %v11196_v45, %v14440_v61  ;;  %vm9030_vm5 = vcmp.gt.f32.partialorder %v9022_v24, 0.0 }
 0x3c0   : > { %11217 = vpow2.f32 %v9075_v42  ;;  %v11204_v40 = vpop.eup %11203  ;;  %v9081_v33 = vmul.f32 1.442695, %v9068_v26  ;;  %9121 = vst.msk [vmem:[%s14456_s14 + $0x8] sm:$0xff] %vm9095_vm2, %v14471_v39  ;;  %v8998_v54 = vadd.f32 1.0, %v8990_v58  ;;  %v8992_v53 = vmul.f32 %v11200_v31, %v14422_v3 }
 0x3c1   : > { %11219 = vpow2.f32 %v8975_v37  ;;  %v9055_v7 = vmul.f32 0.6931472, %v11204_v40  ;;  %v9001_v27 = vadd.f32 1.0, %v8993_v35  ;;  %v8982_v49 = vmul.f32 %v11200_v31, %v14440_v61 }
 0x3c2   : > { %v11206_v15 = vpop.eup %11205  ;;  %11221 = vlog2.f32 %v9044_v17  ;;  %v14488_v56 = vsel %vm8929_vm12, %v8980_v21, %v8998_v54  ;;  %v9000_v14 = vadd.f32 1.0, %v8992_v53  ;;  %v8995_v23 = vmul.f32 %v11202_v19, %v14422_v3 }
 0x3c3   : > { %v11208_v5 = vpop.eup %11207  ;;  %v9088_v51 = vsel %vm14445_vm4, %v11206_v15, 0.0  ;;  %11223 = vpow2.f32 %v9081_v33  ;;  %v9067_v41 = vmul.f32 %v14393_v46, %v9055_v7  ;;  %v14493_v29 = vsel %vm8932_vm13, %v8983_v47, %v9001_v27  ;;  %9120 = vst.msk [vmem:[%s14456_s14] sm:$0xff] %vm9095_vm2, %v14488_v56 }
 0x3c4   : > { %v11210_v34 = vpop.eup %11209  ;;  %9105 = vst.msk [vmem:[%s14466_s22 + $0x8] sm:$0xff] %vm9095_vm2, %v9088_v51  ;;  %v9087_v36 = vsel %vm9030_vm5, %v11208_v5, 0.0  ;;  %9123 = vst.msk [vmem:[%s14456_s14 + $0x18] sm:$0xff] %vm9095_vm2, %v14493_v29  ;;  %vm9033_vm6 = vcmp.gt.f32.partialorder %v9025_v59, 0.0  ;;  %v8985_v45 = vmul.f32 %v11202_v19, %v14440_v61  ;;  %v14512_v50 = vsel %vm8931_vm14, %v8982_v49, %v9000_v14 }
 0x3c5   : > { %v11212_v24 = vpop.eup %11211  ;;  %9104 = vst.msk [vmem:[%s14466_s22] sm:$0xff] %vm9095_vm2, %v9087_v36  ;;  %v8994_v55 = vmul.f32 %v11210_v34, %v14422_v3  ;;  %v9079_v48 = vmul.f32 1.442695, %v9067_v41  ;;  %v9003_v52 = vadd.f32 1.0, %v8995_v23  ;;  %v8984_v22 = vmul.f32 %v11210_v34, %v14440_v61  ;;  %9122 = vst.msk [vmem:[%s14456_s14 + $0x10] sm:$0xff] %vm9095_vm2, %v14512_v50 }
 0x3c6   : > { %v9061_v13 = vmul.f32 0.6931472, %v11212_v24  ;;  %vm9032_vm7 = vcmp.gt.f32.partialorder %v9024_v38, 0.0  ;;  %vm9035_vm8 = vcmp.gt.f32.partialorder %v9027_v11, 0.0  ;;  %vm9034_vm9 = vcmp.gt.f32.partialorder %v9026_v28, 0.0 }
 0x3c7   : > { %v11214_v20 = vpop.eup %11213  ;;  %v9002_v44 = vadd.f32 1.0, %v8994_v55  ;;  %11225 = vpow2.f32 %v9079_v48  ;;  %v9011_v59 = vsel %vm8934_vm15, %v8985_v45, %v9003_v52  ;;  %vm9037_vm10 = vcmp.gt.f32.partialorder %v9029_v25, 0.0 }
 0x3c8   : > { %v11216_v16 = vpop.eup %11215  ;;  %v9090_v12 = vsel %vm9033_vm6, %v11214_v20, 0.0  ;;  %v9070_v1 = vmul.f32 %v14393_v46, %v9061_v13  ;;  %9125 = vst.msk [vmem:[%s14456_s14 + $0x28] sm:$0xff] %vm9095_vm2, %v9011_v59  ;;  %vm9036_vm11 = vcmp.gt.f32.partialorder %v9028_v62, 0.0 }
 0x3c9   : > { %9107 = vst.msk [vmem:[%s14466_s22 + $0x18] sm:$0xff] %vm9095_vm2, %v9090_v12  ;;  %v14527_v4 = vsel %vm8933_vm0, %v8984_v22, %v9002_v44  ;;  %v8997_v18 = vmul.f32 %v11216_v16, %v14422_v3  ;;  %v8987_v63 = vmul.f32 %v11216_v16, %v14440_v61 }
 0x3ca   : > { %v11218_v31 = vpop.eup %11217  ;;  %v9085_v60 = vmul.f32 1.442695, %v9070_v1  ;;  %9124 = vst.msk [vmem:[%s14456_s14 + $0x20] sm:$0xff] %vm9095_vm2, %v14527_v4 }
 0x3cb   : > { %v11220_v0 = vpop.eup %11219  ;;  %v9089_v32 = vsel %vm9032_vm7, %v11218_v31, 0.0  ;;  %v9005_v42 = vadd.f32 1.0, %v8997_v18 }
 0x3cc   : > { %v11222_v17 = vpop.eup %11221  ;;  %9106 = vst.msk [vmem:[%s14466_s22 + $0x10] sm:$0xff] %vm9095_vm2, %v9089_v32  ;;  %11227 = vpow2.f32 %v9085_v60  ;;  %v8996_v9 = vmul.f32 %v11220_v0, %v14422_v3  ;;  %v8986_v57 = vmul.f32 %v11220_v0, %v14440_v61 }
 0x3cd   : > { %v11224_v38 = vpop.eup %11223  ;;  %v9059_v26 = vmul.f32 0.6931472, %v11222_v17  ;;  %v9013_v37 = vsel %vm8936_vm1, %v8987_v63, %v9005_v42 }
 0x3ce   : > { %v9092_v43 = vsel %vm9035_vm8, %v11224_v38, 0.0  ;;  %9127 = vst.msk [vmem:[%s14456_s14 + $0x38] sm:$0xff] %vm9095_vm2, %v9013_v37  ;;  %v9004_v19 = vadd.f32 1.0, %v8996_v9 }
 0x3cf   : > { %9109 = vst.msk [vmem:[%s14466_s22 + $0x28] sm:$0xff] %vm9095_vm2, %v9092_v43  ;;  %v9069_v10 = vmul.f32 %v14393_v46, %v9059_v26 }
 0x3d0   : > { %v9012_v11 = vsel %vm8935_vm3, %v8986_v57, %v9004_v19 }
 0x3d1   : > { %v9083_v3 = vmul.f32 1.442695, %v9069_v10  ;;  %9126 = vst.msk [vmem:[%s14456_s14 + $0x30] sm:$0xff] %vm9095_vm2, %v9012_v11  ;;  %v11226_v21 = vpop.eup %11225 }
 0x3d2   : > { %v9091_v58 = vsel %vm9034_vm9, %v11226_v21, 0.0 }
 0x3d3   : > { %11229 = vpow2.f32 %v9083_v3  ;;  %9108 = vst.msk [vmem:[%s14466_s22 + $0x20] sm:$0xff] %vm9095_vm2, %v9091_v58 }
 0x3d6   : > { %v11228_v6 = vpop.eup %11227 }
 0x3d7   : > { %v9094_v46 = vsel %vm9037_vm10, %v11228_v6, 0.0  ;;  %v10872_v30 = vpop.f32.mrb[0].mxu0 }
 0x3d8   : > { %9111 = vst.msk [vmem:[%s14466_s22 + $0x38] sm:$0xff] %vm9095_vm2, %v9094_v46  ;;  %v9015_v28 = vmul.f32 %v10872_v30, %v14471_v39  ;;  %9113 = vst.msk [vmem:[%s14565_s20 + $0x8] sm:$0xff] %vm9095_vm2, %v10872_v30  ;;  %v8711_v2 = vpop.f32.mrb[1].mxu0 }
 0x3d9   : > { %v9014_v25 = vmul.f32 %v14488_v56, %v8711_v2  ;;  %9112 = vst.msk [vmem:[%s14565_s20] sm:$0xff] %vm9095_vm2, %v8711_v2 }
 0x3da   : > { %9097 = vst.msk [vmem:[%s14573_s21 + $0x8] sm:$0xff] %vm9095_vm2, %v9015_v28 }
 0x3db   : > { %9096 = vst.msk [vmem:[%s14573_s21] sm:$0xff] %vm9095_vm2, %v9014_v25  ;;  %v10875_v61 = vpop.f32.mrb[2].mxu0 }
 0x3dc   : > { %v9017_v35 = vmul.f32 %v10875_v61, %v14493_v29  ;;  %9115 = vst.msk [vmem:[%s14565_s20 + $0x18] sm:$0xff] %vm9095_vm2, %v10875_v61  ;;  %v8721_v40 = vpop.f32.mrb[3].mxu0 }
 0x3dd   : > { %v11230_v33 = vpop.eup %11229  ;;  %v9016_v39 = vmul.f32 %v14512_v50, %v8721_v40  ;;  %9114 = vst.msk [vmem:[%s14565_s20 + $0x10] sm:$0xff] %vm9095_vm2, %v8721_v40 }
 0x3de   : > { %v9093_v47 = vsel %vm9036_vm11, %v11230_v33, 0.0  ;;  %9099 = vst.msk [vmem:[%s14573_s21 + $0x18] sm:$0xff] %vm9095_vm2, %v9017_v35 }
 0x3df   : > { %9110 = vst.msk [vmem:[%s14466_s22 + $0x30] sm:$0xff] %vm9095_vm2, %v9093_v47  ;;  %9098 = vst.msk [vmem:[%s14573_s21 + $0x10] sm:$0xff] %vm9095_vm2, %v9016_v39  ;;  %v10878_v15 = vpop.f32.mrb[4].mxu0 }
 0x3e0   : > { %v9019_v7 = vmul.f32 %v10878_v15, %v9011_v59  ;;  %9117 = vst.msk [vmem:[%s14565_s20 + $0x28] sm:$0xff] %vm9095_vm2, %v10878_v15  ;;  %v8731_v8 = vpop.f32.mrb[5].mxu0 }
 0x3e1   : > { %v9018_v62 = vmul.f32 %v14527_v4, %v8731_v8  ;;  %9116 = vst.msk [vmem:[%s14565_s20 + $0x20] sm:$0xff] %vm9095_vm2, %v8731_v8 }
 0x3e2   : > { %9101 = vst.msk [vmem:[%s14573_s21 + $0x28] sm:$0xff] %vm9095_vm2, %v9019_v7 }
 0x3e3   : > { %9100 = vst.msk [vmem:[%s14573_s21 + $0x20] sm:$0xff] %vm9095_vm2, %v9018_v62  ;;  %v10881_v54 = vpop.f32.mrb[6].mxu0 }
 0x3e4   : > { %v9021_v27 = vmul.f32 %v10881_v54, %v9013_v37  ;;  %9119 = vst.msk [vmem:[%s14565_s20 + $0x38] sm:$0xff] %vm9095_vm2, %v10881_v54  ;;  %v8741_v5 = vpop.f32.mrb[7].mxu0 }
 0x3e5   : > { %v9020_v51 = vmul.f32 %v9012_v11, %v8741_v5  ;;  %9118 = vst.msk [vmem:[%s14565_s20 + $0x30] sm:$0xff] %vm9095_vm2, %v8741_v5 }
 0x3e6   : > { %9103 = vst.msk [vmem:[%s14573_s21 + $0x38] sm:$0xff] %vm9095_vm2, %v9021_v27 }
 0x3e7   : > { %9102 = vst.msk [vmem:[%s14573_s21 + $0x30] sm:$0xff] %vm9095_vm2, %v9020_v51 }
 0x3e8 PF: > { %s20_s29 = sadd.s32 1, %s11272_s29   ;;  %s14651_s27 = smov %s11268_s28 }
 0x3e9   : > { %p17_p2 = scmp.ge.s32.totalorder %s20_s29, 4   ;;  %s14652_s28 = smov %s14654_s9 }
 0x3eb   :  { %19 = sbr.rel (!%p17_p2) target bundleno = 2 (0x2), region = 166 }
 0x3f2   :  { %9257 = vsyncpa [#allocation3], 1 }
 0x3f3   :  { %9259 = vsyncpa [#allocation3 + $0x1], 1 }

</bundles_post_ra>
